<compile_context>
chip_gen: v7x
topology: tpu7x:2x2x1
jax: 0.10.0
libtpu: 0.0.40
codegen_flags: <defaults>
</compile_context>

<pallas_src>
import numpy as np
import jax
import jax.numpy as jnp
from jax.experimental import pallas as pl
from jax.experimental.pallas import tpu as pltpu


# ----------------------------------------------------------------------------
# Static knowledge graph (edges (from, to)); edge index == condi_p/condi_n col.
# ----------------------------------------------------------------------------
N_KNOW = 8
KNOW_EDGES = [(0, 2), (1, 2), (2, 3), (1, 4), (3, 5), (4, 5), (0, 6), (5, 7)]
N_EDGE = len(KNOW_EDGES)


def _topo_sort(n, edges):
    from collections import deque
    indeg = [0] * n
    adj = [[] for _ in range(n)]
    for f, t in edges:
        adj[f].append(t)
        indeg[t] += 1
    q = deque(k for k in range(n) if indeg[k] == 0)
    order = []
    while q:
        u = q.popleft()
        order.append(u)
        for v in adj[u]:
            indeg[v] -= 1
            if indeg[v] == 0:
                q.append(v)
    return order


TOPO_ORDER = _topo_sort(N_KNOW, KNOW_EDGES)
PREDECESSORS = {k: sorted(f for f, t in KNOW_EDGES if t == k) for k in range(N_KNOW)}


def _pred_edge_indices(k):
    idx = [i for i, (f, t) in enumerate(KNOW_EDGES) if t == k]
    idx.sort(key=lambda i: KNOW_EDGES[i][0])   # sort_values(by='from')
    return idx


def _frac_pow(x, inv):
    """x ** inv for the static exponents that occur in the DAG (1, 1/2, ...)."""
    if inv == 1.0:
        return x
    if inv == 0.5:
        return jnp.sqrt(x)
    return jnp.exp(jnp.log(x) * inv)


# ----------------------------------------------------------------------------
# Fused Pallas kernel: posterior + NCD interaction, batch on the lane axis.
#   activation refs : (feature, TILE_B)
#   weight refs     : small, VMEM-resident across all grid steps
# ----------------------------------------------------------------------------
def hiercdf_kernel(prio_ref, cp_ref, cn_ref, ik_ref, idiff_ref, idisc_ref,
                   wcat_ref, bcat_ref, w1t_ref, b1t_ref, w2t_ref, b2_ref,
                   o_ref, xcat_ref):
    K = prio_ref.shape[0]                 # n_know
    H = wcat_ref.shape[0] // 2            # hidden_dim

    bp = jax.nn.sigmoid(prio_ref[...])    # (K, TB)
    cp = jax.nn.sigmoid(cp_ref[...])      # (E, TB)
    cn = jax.nn.sigmoid(cn_ref[...])      # (E, TB)
    ik = ik_ref[...]                      # (K, TB) item q-matrix
    item_diff = jax.nn.sigmoid(idiff_ref[...])   # (K, TB)
    item_disc = jax.nn.sigmoid(idisc_ref[...])   # (1, TB)

    # --- hierarchical posterior over the static DAG (fully unrolled) ---------
    rows = [None] * K
    for k in TOPO_ORDER:
        preds = PREDECESSORS[k]
        lp = len(preds)
        if lp == 0:
            rows[k] = bp[k:k + 1, :]                       # (1, TB)
            continue
        inv = 1.0 / lp
        margin_p, margin_n = [], []
        for p_node, e in zip(preds, _pred_edge_indices(k)):
            prior = rows[p_node]                           # (1, TB)
            margin_p.append(_frac_pow(cp[e:e + 1, :], inv) * prior)
            margin_n.append(_frac_pow(cn[e:e + 1, :], inv) * (1.0 - prior))
        post = None
        for mask_idx in range(2 ** lp):                    # enumerate all masks
            bits = format(mask_idx, '0{}b'.format(lp))
            term = None
            for j, b in enumerate(bits):
                m = margin_p[j] if b == '1' else margin_n[j]
                term = m if term is None else term * m
            post = term if post is None else post + term
        rows[k] = post                                     # (1, TB)

    # --- assemble [user_mastery*ik ; sigmoid(item_diff)*ik] -> (2K, TB) ------
    for k in range(K):
        xcat_ref[k:k + 1, :] = rows[k] * ik[k:k + 1, :]
    xcat_ref[K:, :] = item_diff * ik

    # --- single fused MXU call for user_contract + item_contract -------------
    # wcat = [[wu^T, 0], [0, wi^T]]  (2H, 2K);  bcat (2H, 1)
    acts = jnp.dot(wcat_ref[...], xcat_ref[...],
                   preferred_element_type=jnp.float32) + bcat_ref[...]
    user_factor = jnp.tanh(acts[:H, :])                    # (H, TB)
    item_factor = jax.nn.sigmoid(acts[H:, :])              # (H, TB)

    # --- NCD interaction tail -------------------------------------------------
    input_vec = (user_factor - item_factor) * item_disc    # (H, TB)
    x = jax.nn.sigmoid(jnp.dot(w1t_ref[...], input_vec,
                               preferred_element_type=jnp.float32)
                       + b1t_ref[...])                     # (h2, TB)
    # cross_layer2: elementwise mul + sublane (XLU) reduce -> lane-dense (1, TB)
    scores = jnp.sum(x * w2t_ref[...], axis=0, keepdims=True) + b2_ref[...]
    o_ref[...] = jax.nn.sigmoid(scores)                    # (1, TB)


# ----------------------------------------------------------------------------
# Wrapper: embedding gathers (XLA glue), layout plumbing, pallas_call.
# ----------------------------------------------------------------------------
# TODO(synk): embedding-row gathers by user_ids/item_ids are left to XLA; a
# scalar-prefetch / per-row DMA gather inside the kernel is possible but not
# worth it at n_know=8.
def hiercdf_forward_pallas(user_ids, item_ids, item_know, params, tile_b=2048):
    K, E = N_KNOW, N_EDGE
    H = params['wu'].shape[1]
    h2 = params['w1'].shape[1]
    B = user_ids.shape[0]

    # gathers (plain-JAX glue)
    prio = params['priori'][user_ids]      # (B, K)
    cp = params['condi_p'][user_ids]       # (B, E)
    cn = params['condi_n'][user_ids]       # (B, E)
    idiff = params['item_diff'][item_ids]  # (B, K)
    idisc = params['item_disc'][item_ids]  # (B, 1)

    # transpose to feature-major (batch on the lane axis) and pad the batch
    n_tiles = pl.cdiv(B, tile_b)
    Bp = n_tiles * tile_b

    def prep(a):                           # (B, F) -> (F, Bp)
        at = a.astype(jnp.float32).T
        return jnp.pad(at, ((0, 0), (0, Bp - B)))

    prio_t, cp_t, cn_t = prep(prio), prep(cp), prep(cn)
    ik_t, idiff_t, idisc_t = prep(item_know), prep(idiff), prep(idisc)

    # block-diagonal fused contract weight (transposed): (2H, 2K)
    wu_t, wi_t = params['wu'].T, params['wi'].T            # (H, K)
    z = jnp.zeros((H, K), jnp.float32)
    wcat = jnp.concatenate(
        [jnp.concatenate([wu_t, z], axis=1),
         jnp.concatenate([z, wi_t], axis=1)], axis=0)       # (2H, 2K)
    bcat = jnp.concatenate([params['bu'].reshape(H, 1),
                            params['bi'].reshape(H, 1)], axis=0)   # (2H, 1)
    w1_t = params['w1'].T                                  # (h2, H)
    b1_t = params['b1'].reshape(h2, 1)
    w2_t = params['w2'].reshape(h2, 1)                     # torch weight (1, h2)
    b2 = params['b2'].reshape(1, 1)

    bmap = lambda i: (0, i)                # activations: tile along batch
    wmap = lambda i: (0, 0)                # weights: resident across steps
    act_spec = lambda f: pl.BlockSpec((f, tile_b), bmap)
    w_spec = lambda s: pl.BlockSpec(s, wmap)

    out = pl.pallas_call(
        hiercdf_kernel,
        out_shape=jax.ShapeDtypeStruct((1, Bp), jnp.float32),
        grid=(n_tiles,),
        in_specs=[act_spec(K), act_spec(E), act_spec(E),
                  act_spec(K), act_spec(K), act_spec(1),
                  w_spec((2 * H, 2 * K)), w_spec((2 * H, 1)),
                  w_spec((h2, H)), w_spec((h2, 1)),
                  w_spec((h2, 1)), w_spec((1, 1))],
        out_specs=pl.BlockSpec((1, tile_b), bmap),
        scratch_shapes=[pltpu.VMEM((2 * K, tile_b), jnp.float32)],
        compiler_params=pltpu.CompilerParams(
            dimension_semantics=("parallel",),
            vmem_limit_bytes=32 * 1024 * 1024),
    )(prio_t, cp_t, cn_t, ik_t, idiff_t, idisc_t,
      wcat, bcat, w1_t, b1_t, w2_t, b2)

    return out[0, :B].reshape(B, 1)


# ----------------------------------------------------------------------------
# Parameter init (deterministic, mirrors module __init__ shapes).
# ----------------------------------------------------------------------------
def xavier_normal(key, shape):
    std = float(np.sqrt(2.0 / (shape[0] + shape[1])))
    return std * jax.random.normal(key, shape, dtype=jnp.float32)


def init_params(key, n_user, n_item, n_know, hidden_dim):
    h2 = max(hidden_dim // 2, 1)
    ks = jax.random.split(key, 16)
    return dict(
        priori=xavier_normal(ks[0], (n_user, n_know)),
        condi_p=xavier_normal(ks[1], (n_user, N_EDGE)),
        condi_n=xavier_normal(ks[2], (n_user, N_EDGE)),
        item_diff=xavier_normal(ks[3], (n_item, n_know)),   # Embedding.weight
        item_disc=xavier_normal(ks[4], (n_item, 1)),        # Embedding.weight
        wu=xavier_normal(ks[5], (n_know, hidden_dim)),      # user_contract [in,out]
        bu=0.1 * jax.random.normal(ks[6], (1, hidden_dim), jnp.float32),
        wi=xavier_normal(ks[7], (n_know, hidden_dim)),      # item_contract
        bi=0.1 * jax.random.normal(ks[8], (1, hidden_dim), jnp.float32),
        w1=xavier_normal(ks[9], (hidden_dim, h2)),          # cross_layer1
        b1=0.1 * jax.random.normal(ks[10], (1, h2), jnp.float32),
        w2=xavier_normal(ks[11], (1, h2)),                  # cross_layer2 (out=1)
        b2=0.1 * jax.random.normal(ks[12], (1, 1), jnp.float32),
    )


# ----------------------------------------------------------------------------
# Pure-JAX reference (mirrors the PyTorch forward).
# ----------------------------------------------------------------------------
def get_posterior_ref(batch_priori, batch_condi_p, batch_condi_n):
    bp = jax.nn.sigmoid(batch_priori)
    cp = jax.nn.sigmoid(batch_condi_p)
    cn = jax.nn.sigmoid(batch_condi_n)
    B = bp.shape[0]
    cols = [None] * N_KNOW
    for k in TOPO_ORDER:
        preds = PREDECESSORS[k]
        len_p = len(preds)
        if len_p == 0:
            cols[k] = bp[:, k]
            continue
        e_idx = jnp.array(_pred_edge_indices(k), dtype=jnp.int32)
        priori = jnp.stack([cols[p] for p in preds], axis=1)
        condi_p = cp[:, e_idx] ** (1.0 / len_p)
        condi_n = cn[:, e_idx] ** (1.0 / len_p)
        margin_p = condi_p * priori
        margin_n = condi_n * (1.0 - priori)
        post_k = jnp.zeros((B,), jnp.float32)
        for idx in range(2 ** len_p):
            bits = format(idx, '0{}b'.format(len_p))
            mask = jnp.array([int(b) for b in bits], dtype=jnp.float32)
            margin = mask * margin_p + (1.0 - mask) * margin_n
            post_k = post_k + jnp.prod(margin, axis=1)
        cols[k] = post_k
    return jnp.stack(cols, axis=1)


def reference_forward(user_ids, item_ids, item_know, p):
    hp = jax.lax.Precision.HIGHEST
    um = get_posterior_ref(p['priori'][user_ids], p['condi_p'][user_ids],
                           p['condi_n'][user_ids])
    idiff = jax.nn.sigmoid(p['item_diff'][item_ids])
    idisc = jax.nn.sigmoid(p['item_disc'][item_ids])
    uf = jnp.tanh(jnp.dot(um * item_know, p['wu'], precision=hp) + p['bu'])
    itf = jax.nn.sigmoid(jnp.dot(idiff * item_know, p['wi'], precision=hp) + p['bi'])
    iv = (uf - itf) * idisc
    x = jax.nn.sigmoid(jnp.dot(iv, p['w1'], precision=hp) + p['b1'])
    return jax.nn.sigmoid(jnp.dot(x, p['w2'].T, precision=hp) + p['b2'])


if __name__ == "__main__":
    n_user, n_item, n_know, hidden_dim = 16, 16, N_KNOW, 32
    B = 8

    key = jax.random.PRNGKey(0)
    kp, ku, ki, kq = jax.random.split(key, 4)
    params = init_params(kp, n_user, n_item, n_know, hidden_dim)

    user_ids = jax.random.randint(ku, (B,), 0, n_user)
    item_ids = jax.random.randint(ki, (B,), 0, n_item)
    item_know = (jax.random.uniform(kq, (B, n_know)) > 0.5).astype(jnp.float32)

    forward = jax.jit(hiercdf_forward_pallas)
    out = forward(user_ids, item_ids, item_know, params)
    out = jax.block_until_ready(out)

    ref = reference_forward(user_ids, item_ids, item_know, params)
    np.testing.assert_allclose(np.asarray(out), np.asarray(ref),
                               rtol=2e-3, atol=1e-3)
    assert out.shape == (B, 1)
    print("KERNEL_OK")
</pallas_src>

<mosaic_0001>
module attributes {stable_mosaic.version = 11 : i64} {
  func.func @hiercdf_kernel(%arg0: i32, %arg1: memref<8x2048xf32, #tpu.memory_space<vmem>>, %arg2: memref<8x2048xf32, #tpu.memory_space<vmem>>, %arg3: memref<8x2048xf32, #tpu.memory_space<vmem>>, %arg4: memref<8x2048xf32, #tpu.memory_space<vmem>>, %arg5: memref<8x2048xf32, #tpu.memory_space<vmem>>, %arg6: memref<1x2048xf32, #tpu.memory_space<vmem>>, %arg7: memref<64x16xf32, #tpu.memory_space<vmem>>, %arg8: memref<64x1xf32, #tpu.memory_space<vmem>>, %arg9: memref<16x32xf32, #tpu.memory_space<vmem>>, %arg10: memref<16x1xf32, #tpu.memory_space<vmem>>, %arg11: memref<16x1xf32, #tpu.memory_space<vmem>>, %arg12: memref<1x1xf32, #tpu.memory_space<vmem>>, %arg13: memref<1x2048xf32, #tpu.memory_space<vmem>>, %arg14: memref<16x2048xf32, #tpu.memory_space<vmem>>) attributes {dimension_semantics = [#tpu.dimension_semantics<parallel>], iteration_bounds = array<i64: 1>, scalar_prefetch = 0 : i64, scratch_operands = 1 : i64, tpu.core_type = #tpu.core_type<tc>, window_params = [{transform_indices = @transform_0, window_bounds = array<i64: 8, 2048>}, {transform_indices = @transform_1, window_bounds = array<i64: 8, 2048>}, {transform_indices = @transform_2, window_bounds = array<i64: 8, 2048>}, {transform_indices = @transform_3, window_bounds = array<i64: 8, 2048>}, {transform_indices = @transform_4, window_bounds = array<i64: 8, 2048>}, {transform_indices = @transform_5, window_bounds = array<i64: 1, 2048>}, {pipeline_mode = #tpu.pipeline_mode<synchronous>, transform_indices = @transform_6, window_bounds = array<i64: 64, 16>}, {pipeline_mode = #tpu.pipeline_mode<synchronous>, transform_indices = @transform_7, window_bounds = array<i64: 64, 1>}, {pipeline_mode = #tpu.pipeline_mode<synchronous>, transform_indices = @transform_8, window_bounds = array<i64: 16, 32>}, {pipeline_mode = #tpu.pipeline_mode<synchronous>, transform_indices = @transform_9, window_bounds = array<i64: 16, 1>}, {pipeline_mode = #tpu.pipeline_mode<synchronous>, transform_indices = @transform_10, window_bounds = array<i64: 16, 1>}, {pipeline_mode = #tpu.pipeline_mode<synchronous>, transform_indices = @transform_11, window_bounds = array<i64: 1, 1>}, {transform_indices = @transform_12, window_bounds = array<i64: 1, 2048>}]} {
    %c0 = arith.constant 0 : index
    %c0_0 = arith.constant 0 : index
    %0 = vector.load %arg1[%c0, %c0_0] : memref<8x2048xf32, #tpu.memory_space<vmem>>, vector<8x2048xf32>
    %1 = arith.negf %0 : vector<8x2048xf32>
    %2 = math.exp %1 : vector<8x2048xf32>
    %cst = arith.constant 1.000000e+00 : f32
    %3 = vector.broadcast %cst : f32 to vector<8x2048xf32>
    %4 = arith.addf %3, %2 : vector<8x2048xf32>
    %5 = arith.divf %3, %4 : vector<8x2048xf32>
    %c0_1 = arith.constant 0 : index
    %c0_2 = arith.constant 0 : index
    %6 = vector.load %arg2[%c0_1, %c0_2] : memref<8x2048xf32, #tpu.memory_space<vmem>>, vector<8x2048xf32>
    %7 = arith.negf %6 : vector<8x2048xf32>
    %8 = math.exp %7 : vector<8x2048xf32>
    %cst_3 = arith.constant 1.000000e+00 : f32
    %9 = vector.broadcast %cst_3 : f32 to vector<8x2048xf32>
    %10 = arith.addf %9, %8 : vector<8x2048xf32>
    %11 = arith.divf %9, %10 : vector<8x2048xf32>
    %c0_4 = arith.constant 0 : index
    %c0_5 = arith.constant 0 : index
    %12 = vector.load %arg3[%c0_4, %c0_5] : memref<8x2048xf32, #tpu.memory_space<vmem>>, vector<8x2048xf32>
    %13 = arith.negf %12 : vector<8x2048xf32>
    %14 = math.exp %13 : vector<8x2048xf32>
    %cst_6 = arith.constant 1.000000e+00 : f32
    %15 = vector.broadcast %cst_6 : f32 to vector<8x2048xf32>
    %16 = arith.addf %15, %14 : vector<8x2048xf32>
    %17 = arith.divf %15, %16 : vector<8x2048xf32>
    %c0_7 = arith.constant 0 : index
    %c0_8 = arith.constant 0 : index
    %18 = vector.load %arg4[%c0_7, %c0_8] : memref<8x2048xf32, #tpu.memory_space<vmem>>, vector<8x2048xf32>
    %c0_9 = arith.constant 0 : index
    %c0_10 = arith.constant 0 : index
    %19 = vector.load %arg5[%c0_9, %c0_10] : memref<8x2048xf32, #tpu.memory_space<vmem>>, vector<8x2048xf32>
    %20 = arith.negf %19 : vector<8x2048xf32>
    %21 = math.exp %20 : vector<8x2048xf32>
    %cst_11 = arith.constant 1.000000e+00 : f32
    %22 = vector.broadcast %cst_11 : f32 to vector<8x2048xf32>
    %23 = arith.addf %22, %21 : vector<8x2048xf32>
    %24 = arith.divf %22, %23 : vector<8x2048xf32>
    %c0_12 = arith.constant 0 : index
    %c0_13 = arith.constant 0 : index
    %25 = vector.load %arg6[%c0_12, %c0_13] : memref<1x2048xf32, #tpu.memory_space<vmem>>, vector<1x2048xf32>
    %26 = arith.negf %25 : vector<1x2048xf32>
    %27 = math.exp %26 : vector<1x2048xf32>
    %cst_14 = arith.constant 1.000000e+00 : f32
    %28 = vector.broadcast %cst_14 : f32 to vector<1x2048xf32>
    %29 = arith.addf %28, %27 : vector<1x2048xf32>
    %30 = arith.divf %28, %29 : vector<1x2048xf32>
    %31 = vector.extract_strided_slice %5 {offsets = [0, 0], sizes = [1, 2048], strides = [1, 1]} : vector<8x2048xf32> to vector<1x2048xf32>
    %32 = vector.extract_strided_slice %5 {offsets = [1, 0], sizes = [1, 2048], strides = [1, 1]} : vector<8x2048xf32> to vector<1x2048xf32>
    %33 = vector.extract_strided_slice %11 {offsets = [6, 0], sizes = [1, 2048], strides = [1, 1]} : vector<8x2048xf32> to vector<1x2048xf32>
    %34 = arith.mulf %33, %31 : vector<1x2048xf32>
    %35 = vector.extract_strided_slice %17 {offsets = [6, 0], sizes = [1, 2048], strides = [1, 1]} : vector<8x2048xf32> to vector<1x2048xf32>
    %cst_15 = arith.constant 1.000000e+00 : f32
    %36 = vector.broadcast %cst_15 : f32 to vector<1x2048xf32>
    %37 = arith.subf %36, %31 : vector<1x2048xf32>
    %38 = arith.mulf %35, %37 : vector<1x2048xf32>
    %39 = arith.addf %38, %34 : vector<1x2048xf32>
    %40 = vector.extract_strided_slice %11 {offsets = [0, 0], sizes = [1, 2048], strides = [1, 1]} : vector<8x2048xf32> to vector<1x2048xf32>
    %41 = math.sqrt %40 : vector<1x2048xf32>
    %42 = arith.mulf %41, %31 : vector<1x2048xf32>
    %43 = vector.extract_strided_slice %17 {offsets = [0, 0], sizes = [1, 2048], strides = [1, 1]} : vector<8x2048xf32> to vector<1x2048xf32>
    %44 = math.sqrt %43 : vector<1x2048xf32>
    %cst_16 = arith.constant 1.000000e+00 : f32
    %45 = vector.broadcast %cst_16 : f32 to vector<1x2048xf32>
    %46 = arith.subf %45, %31 : vector<1x2048xf32>
    %47 = arith.mulf %44, %46 : vector<1x2048xf32>
    %48 = vector.extract_strided_slice %11 {offsets = [1, 0], sizes = [1, 2048], strides = [1, 1]} : vector<8x2048xf32> to vector<1x2048xf32>
    %49 = math.sqrt %48 : vector<1x2048xf32>
    %50 = arith.mulf %49, %32 : vector<1x2048xf32>
    %51 = vector.extract_strided_slice %17 {offsets = [1, 0], sizes = [1, 2048], strides = [1, 1]} : vector<8x2048xf32> to vector<1x2048xf32>
    %52 = math.sqrt %51 : vector<1x2048xf32>
    %cst_17 = arith.constant 1.000000e+00 : f32
    %53 = vector.broadcast %cst_17 : f32 to vector<1x2048xf32>
    %54 = arith.subf %53, %32 : vector<1x2048xf32>
    %55 = arith.mulf %52, %54 : vector<1x2048xf32>
    %56 = arith.mulf %47, %55 : vector<1x2048xf32>
    %57 = arith.mulf %47, %50 : vector<1x2048xf32>
    %58 = arith.addf %56, %57 : vector<1x2048xf32>
    %59 = arith.mulf %42, %55 : vector<1x2048xf32>
    %60 = arith.addf %58, %59 : vector<1x2048xf32>
    %61 = arith.mulf %42, %50 : vector<1x2048xf32>
    %62 = arith.addf %60, %61 : vector<1x2048xf32>
    %63 = vector.extract_strided_slice %11 {offsets = [3, 0], sizes = [1, 2048], strides = [1, 1]} : vector<8x2048xf32> to vector<1x2048xf32>
    %64 = arith.mulf %63, %32 : vector<1x2048xf32>
    %65 = vector.extract_strided_slice %17 {offsets = [3, 0], sizes = [1, 2048], strides = [1, 1]} : vector<8x2048xf32> to vector<1x2048xf32>
    %cst_18 = arith.constant 1.000000e+00 : f32
    %66 = vector.broadcast %cst_18 : f32 to vector<1x2048xf32>
    %67 = arith.subf %66, %32 : vector<1x2048xf32>
    %68 = arith.mulf %65, %67 : vector<1x2048xf32>
    %69 = arith.addf %68, %64 : vector<1x2048xf32>
    %70 = vector.extract_strided_slice %11 {offsets = [2, 0], sizes = [1, 2048], strides = [1, 1]} : vector<8x2048xf32> to vector<1x2048xf32>
    %71 = arith.mulf %70, %62 : vector<1x2048xf32>
    %72 = vector.extract_strided_slice %17 {offsets = [2, 0], sizes = [1, 2048], strides = [1, 1]} : vector<8x2048xf32> to vector<1x2048xf32>
    %cst_19 = arith.constant 1.000000e+00 : f32
    %73 = vector.broadcast %cst_19 : f32 to vector<1x2048xf32>
    %74 = arith.subf %73, %62 : vector<1x2048xf32>
    %75 = arith.mulf %72, %74 : vector<1x2048xf32>
    %76 = arith.addf %75, %71 : vector<1x2048xf32>
    %77 = vector.extract_strided_slice %11 {offsets = [4, 0], sizes = [1, 2048], strides = [1, 1]} : vector<8x2048xf32> to vector<1x2048xf32>
    %78 = math.sqrt %77 : vector<1x2048xf32>
    %79 = arith.mulf %78, %76 : vector<1x2048xf32>
    %80 = vector.extract_strided_slice %17 {offsets = [4, 0], sizes = [1, 2048], strides = [1, 1]} : vector<8x2048xf32> to vector<1x2048xf32>
    %81 = math.sqrt %80 : vector<1x2048xf32>
    %cst_20 = arith.constant 1.000000e+00 : f32
    %82 = vector.broadcast %cst_20 : f32 to vector<1x2048xf32>
    %83 = arith.subf %82, %76 : vector<1x2048xf32>
    %84 = arith.mulf %81, %83 : vector<1x2048xf32>
    %85 = vector.extract_strided_slice %11 {offsets = [5, 0], sizes = [1, 2048], strides = [1, 1]} : vector<8x2048xf32> to vector<1x2048xf32>
    %86 = math.sqrt %85 : vector<1x2048xf32>
    %87 = arith.mulf %86, %69 : vector<1x2048xf32>
    %88 = vector.extract_strided_slice %17 {offsets = [5, 0], sizes = [1, 2048], strides = [1, 1]} : vector<8x2048xf32> to vector<1x2048xf32>
    %89 = math.sqrt %88 : vector<1x2048xf32>
    %cst_21 = arith.constant 1.000000e+00 : f32
    %90 = vector.broadcast %cst_21 : f32 to vector<1x2048xf32>
    %91 = arith.subf %90, %69 : vector<1x2048xf32>
    %92 = arith.mulf %89, %91 : vector<1x2048xf32>
    %93 = arith.mulf %84, %92 : vector<1x2048xf32>
    %94 = arith.mulf %84, %87 : vector<1x2048xf32>
    %95 = arith.addf %93, %94 : vector<1x2048xf32>
    %96 = arith.mulf %79, %92 : vector<1x2048xf32>
    %97 = arith.addf %95, %96 : vector<1x2048xf32>
    %98 = arith.mulf %79, %87 : vector<1x2048xf32>
    %99 = arith.addf %97, %98 : vector<1x2048xf32>
    %100 = vector.extract_strided_slice %11 {offsets = [7, 0], sizes = [1, 2048], strides = [1, 1]} : vector<8x2048xf32> to vector<1x2048xf32>
    %101 = arith.mulf %100, %99 : vector<1x2048xf32>
    %102 = vector.extract_strided_slice %17 {offsets = [7, 0], sizes = [1, 2048], strides = [1, 1]} : vector<8x2048xf32> to vector<1x2048xf32>
    %cst_22 = arith.constant 1.000000e+00 : f32
    %103 = vector.broadcast %cst_22 : f32 to vector<1x2048xf32>
    %104 = arith.subf %103, %99 : vector<1x2048xf32>
    %105 = arith.mulf %102, %104 : vector<1x2048xf32>
    %106 = arith.addf %105, %101 : vector<1x2048xf32>
    %107 = vector.extract_strided_slice %18 {offsets = [0, 0], sizes = [1, 2048], strides = [1, 1]} : vector<8x2048xf32> to vector<1x2048xf32>
    %108 = arith.mulf %31, %107 : vector<1x2048xf32>
    %c0_23 = arith.constant 0 : index
    %c0_24 = arith.constant 0 : index
    %109 = vector.load %arg14[%c0_23, %c0_24] : memref<16x2048xf32, #tpu.memory_space<vmem>>, vector<1x2048xf32>
    tpu.vector_store %arg14[%c0_23, %c0_24], %108 {strides = array<i32>} : memref<16x2048xf32, #tpu.memory_space<vmem>>, vector<1x2048xf32>,
    %110 = vector.extract_strided_slice %18 {offsets = [1, 0], sizes = [1, 2048], strides = [1, 1]} : vector<8x2048xf32> to vector<1x2048xf32>
    %111 = arith.mulf %32, %110 : vector<1x2048xf32>
    %c1 = arith.constant 1 : index
    %c0_25 = arith.constant 0 : index
    %112 = vector.load %arg14[%c1, %c0_25] : memref<16x2048xf32, #tpu.memory_space<vmem>>, vector<1x2048xf32>
    tpu.vector_store %arg14[%c1, %c0_25], %111 {strides = array<i32>} : memref<16x2048xf32, #tpu.memory_space<vmem>>, vector<1x2048xf32>,
    %113 = vector.extract_strided_slice %18 {offsets = [2, 0], sizes = [1, 2048], strides = [1, 1]} : vector<8x2048xf32> to vector<1x2048xf32>
    %114 = arith.mulf %62, %113 : vector<1x2048xf32>
    %c2 = arith.constant 2 : index
    %c0_26 = arith.constant 0 : index
    %115 = vector.load %arg14[%c2, %c0_26] : memref<16x2048xf32, #tpu.memory_space<vmem>>, vector<1x2048xf32>
    tpu.vector_store %arg14[%c2, %c0_26], %114 {strides = array<i32>} : memref<16x2048xf32, #tpu.memory_space<vmem>>, vector<1x2048xf32>,
    %116 = vector.extract_strided_slice %18 {offsets = [3, 0], sizes = [1, 2048], strides = [1, 1]} : vector<8x2048xf32> to vector<1x2048xf32>
    %117 = arith.mulf %76, %116 : vector<1x2048xf32>
    %c3 = arith.constant 3 : index
    %c0_27 = arith.constant 0 : index
    %118 = vector.load %arg14[%c3, %c0_27] : memref<16x2048xf32, #tpu.memory_space<vmem>>, vector<1x2048xf32>
    tpu.vector_store %arg14[%c3, %c0_27], %117 {strides = array<i32>} : memref<16x2048xf32, #tpu.memory_space<vmem>>, vector<1x2048xf32>,
    %119 = vector.extract_strided_slice %18 {offsets = [4, 0], sizes = [1, 2048], strides = [1, 1]} : vector<8x2048xf32> to vector<1x2048xf32>
    %120 = arith.mulf %69, %119 : vector<1x2048xf32>
    %c4 = arith.constant 4 : index
    %c0_28 = arith.constant 0 : index
    %121 = vector.load %arg14[%c4, %c0_28] : memref<16x2048xf32, #tpu.memory_space<vmem>>, vector<1x2048xf32>
    tpu.vector_store %arg14[%c4, %c0_28], %120 {strides = array<i32>} : memref<16x2048xf32, #tpu.memory_space<vmem>>, vector<1x2048xf32>,
    %122 = vector.extract_strided_slice %18 {offsets = [5, 0], sizes = [1, 2048], strides = [1, 1]} : vector<8x2048xf32> to vector<1x2048xf32>
    %123 = arith.mulf %99, %122 : vector<1x2048xf32>
    %c5 = arith.constant 5 : index
    %c0_29 = arith.constant 0 : index
    %124 = vector.load %arg14[%c5, %c0_29] : memref<16x2048xf32, #tpu.memory_space<vmem>>, vector<1x2048xf32>
    tpu.vector_store %arg14[%c5, %c0_29], %123 {strides = array<i32>} : memref<16x2048xf32, #tpu.memory_space<vmem>>, vector<1x2048xf32>,
    %125 = vector.extract_strided_slice %18 {offsets = [6, 0], sizes = [1, 2048], strides = [1, 1]} : vector<8x2048xf32> to vector<1x2048xf32>
    %126 = arith.mulf %39, %125 : vector<1x2048xf32>
    %c6 = arith.constant 6 : index
    %c0_30 = arith.constant 0 : index
    %127 = vector.load %arg14[%c6, %c0_30] : memref<16x2048xf32, #tpu.memory_space<vmem>>, vector<1x2048xf32>
    tpu.vector_store %arg14[%c6, %c0_30], %126 {strides = array<i32>} : memref<16x2048xf32, #tpu.memory_space<vmem>>, vector<1x2048xf32>,
    %128 = vector.extract_strided_slice %18 {offsets = [7, 0], sizes = [1, 2048], strides = [1, 1]} : vector<8x2048xf32> to vector<1x2048xf32>
    %129 = arith.mulf %106, %128 : vector<1x2048xf32>
    %c7 = arith.constant 7 : index
    %c0_31 = arith.constant 0 : index
    %130 = vector.load %arg14[%c7, %c0_31] : memref<16x2048xf32, #tpu.memory_space<vmem>>, vector<1x2048xf32>
    tpu.vector_store %arg14[%c7, %c0_31], %129 {strides = array<i32>} : memref<16x2048xf32, #tpu.memory_space<vmem>>, vector<1x2048xf32>,
    %131 = arith.mulf %24, %18 : vector<8x2048xf32>
    %c8 = arith.constant 8 : index
    %c0_32 = arith.constant 0 : index
    %132 = vector.load %arg14[%c8, %c0_32] : memref<16x2048xf32, #tpu.memory_space<vmem>>, vector<8x2048xf32>
    tpu.vector_store %arg14[%c8, %c0_32], %131 {strides = array<i32>} : memref<16x2048xf32, #tpu.memory_space<vmem>>, vector<8x2048xf32>,
    %c0_33 = arith.constant 0 : index
    %c0_34 = arith.constant 0 : index
    %133 = vector.load %arg7[%c0_33, %c0_34] : memref<64x16xf32, #tpu.memory_space<vmem>>, vector<64x16xf32>
    %c0_35 = arith.constant 0 : index
    %c0_36 = arith.constant 0 : index
    %134 = vector.load %arg14[%c0_35, %c0_36] : memref<16x2048xf32, #tpu.memory_space<vmem>>, vector<16x2048xf32>
    %cst_37 = arith.constant dense<0.000000e+00> : vector<64x2048xf32>
    %135 = tpu.matmul %133, %134, %cst_37 {dimension_numbers = #tpu.dot_dimension_numbers<[1], [0], [0], [1], [0, 0, 1, 1], [], []>} : vector<64x16xf32>, vector<16x2048xf32>, vector<64x2048xf32> -> vector<64x2048xf32>
    %c0_38 = arith.constant 0 : index
    %c0_39 = arith.constant 0 : index
    %136 = vector.load %arg8[%c0_38, %c0_39] : memref<64x1xf32, #tpu.memory_space<vmem>>, vector<64x1xf32>
    %137 = vector.broadcast %136 : vector<64x1xf32> to vector<64x2048xf32>
    %138 = arith.addf %135, %137 : vector<64x2048xf32>
    %139 = vector.extract_strided_slice %138 {offsets = [0, 0], sizes = [32, 2048], strides = [1, 1]} : vector<64x2048xf32> to vector<32x2048xf32>
    %140 = math.tanh %139 : vector<32x2048xf32>
    %141 = vector.extract_strided_slice %138 {offsets = [32, 0], sizes = [32, 2048], strides = [1, 1]} : vector<64x2048xf32> to vector<32x2048xf32>
    %142 = arith.negf %141 : vector<32x2048xf32>
    %143 = math.exp %142 : vector<32x2048xf32>
    %cst_40 = arith.constant 1.000000e+00 : f32
    %144 = vector.broadcast %cst_40 : f32 to vector<32x2048xf32>
    %145 = arith.addf %144, %143 : vector<32x2048xf32>
    %146 = arith.divf %144, %145 : vector<32x2048xf32>
    %147 = arith.subf %140, %146 : vector<32x2048xf32>
    %148 = vector.broadcast %30 : vector<1x2048xf32> to vector<32x2048xf32>
    %149 = arith.mulf %147, %148 : vector<32x2048xf32>
    %c0_41 = arith.constant 0 : index
    %c0_42 = arith.constant 0 : index
    %150 = vector.load %arg9[%c0_41, %c0_42] : memref<16x32xf32, #tpu.memory_space<vmem>>, vector<16x32xf32>
    %cst_43 = arith.constant dense<0.000000e+00> : vector<16x2048xf32>
    %151 = tpu.matmul %150, %149, %cst_43 {dimension_numbers = #tpu.dot_dimension_numbers<[1], [0], [0], [1], [0, 0, 1, 1], [], []>} : vector<16x32xf32>, vector<32x2048xf32>, vector<16x2048xf32> -> vector<16x2048xf32>
    %c0_44 = arith.constant 0 : index
    %c0_45 = arith.constant 0 : index
    %152 = vector.load %arg10[%c0_44, %c0_45] : memref<16x1xf32, #tpu.memory_space<vmem>>, vector<16x1xf32>
    %153 = vector.broadcast %152 : vector<16x1xf32> to vector<16x2048xf32>
    %154 = arith.addf %151, %153 : vector<16x2048xf32>
    %155 = arith.negf %154 : vector<16x2048xf32>
    %156 = math.exp %155 : vector<16x2048xf32>
    %cst_46 = arith.constant 1.000000e+00 : f32
    %157 = vector.broadcast %cst_46 : f32 to vector<16x2048xf32>
    %158 = arith.addf %157, %156 : vector<16x2048xf32>
    %159 = arith.divf %157, %158 : vector<16x2048xf32>
    %c0_47 = arith.constant 0 : index
    %c0_48 = arith.constant 0 : index
    %160 = vector.load %arg11[%c0_47, %c0_48] : memref<16x1xf32, #tpu.memory_space<vmem>>, vector<16x1xf32>
    %161 = vector.broadcast %160 : vector<16x1xf32> to vector<16x2048xf32>
    %162 = arith.mulf %159, %161 : vector<16x2048xf32>
    %cst_49 = arith.constant dense<0.000000e+00> : vector<2048xf32>
    %163 = vector.multi_reduction <add>, %162, %cst_49 [0] : vector<16x2048xf32> to vector<2048xf32>
    %164 = vector.shape_cast %163 : vector<2048xf32> to vector<1x2048xf32>
    %c0_50 = arith.constant 0 : index
    %c0_51 = arith.constant 0 : index
    %165 = vector.load %arg12[%c0_50, %c0_51] : memref<1x1xf32, #tpu.memory_space<vmem>>, vector<1x1xf32>
    %166 = vector.broadcast %165 : vector<1x1xf32> to vector<1x2048xf32>
    %167 = arith.addf %164, %166 : vector<1x2048xf32>
    %168 = arith.negf %167 : vector<1x2048xf32>
    %169 = math.exp %168 : vector<1x2048xf32>
    %cst_52 = arith.constant 1.000000e+00 : f32
    %170 = vector.broadcast %cst_52 : f32 to vector<1x2048xf32>
    %171 = arith.addf %170, %169 : vector<1x2048xf32>
    %172 = arith.divf %170, %171 : vector<1x2048xf32>
    %c0_53 = arith.constant 0 : index
    %c0_54 = arith.constant 0 : index
    %173 = vector.load %arg13[%c0_53, %c0_54] : memref<1x2048xf32, #tpu.memory_space<vmem>>, vector<1x2048xf32>
    tpu.vector_store %arg13[%c0_53, %c0_54], %172 {strides = array<i32>} : memref<1x2048xf32, #tpu.memory_space<vmem>>, vector<1x2048xf32>,
    return
  }
  func.func @transform_0(%arg0: i32) -> (i32, i32) {
    %c0_i32 = arith.constant 0 : i32
    %c0_i32_0 = arith.constant 0 : i32
    return %c0_i32, %arg0 : i32, i32
  }
  func.func @transform_1(%arg0: i32) -> (i32, i32) {
    %c0_i32 = arith.constant 0 : i32
    %c0_i32_0 = arith.constant 0 : i32
    return %c0_i32, %arg0 : i32, i32
  }
  func.func @transform_2(%arg0: i32) -> (i32, i32) {
    %c0_i32 = arith.constant 0 : i32
    %c0_i32_0 = arith.constant 0 : i32
    return %c0_i32, %arg0 : i32, i32
  }
  func.func @transform_3(%arg0: i32) -> (i32, i32) {
    %c0_i32 = arith.constant 0 : i32
    %c0_i32_0 = arith.constant 0 : i32
    return %c0_i32, %arg0 : i32, i32
  }
  func.func @transform_4(%arg0: i32) -> (i32, i32) {
    %c0_i32 = arith.constant 0 : i32
    %c0_i32_0 = arith.constant 0 : i32
    return %c0_i32, %arg0 : i32, i32
  }
  func.func @transform_5(%arg0: i32) -> (i32, i32) {
    %c0_i32 = arith.constant 0 : i32
    %c0_i32_0 = arith.constant 0 : i32
    return %c0_i32, %arg0 : i32, i32
  }
  func.func @transform_6(%arg0: i32) -> (i32, i32) {
    %c0_i32 = arith.constant 0 : i32
    %c0_i32_0 = arith.constant 0 : i32
    %c0_i32_1 = arith.constant 0 : i32
    return %c0_i32, %c0_i32_0 : i32, i32
  }
  func.func @transform_7(%arg0: i32) -> (i32, i32) {
    %c0_i32 = arith.constant 0 : i32
    %c0_i32_0 = arith.constant 0 : i32
    %c0_i32_1 = arith.constant 0 : i32
    return %c0_i32, %c0_i32_0 : i32, i32
  }
  func.func @transform_8(%arg0: i32) -> (i32, i32) {
    %c0_i32 = arith.constant 0 : i32
    %c0_i32_0 = arith.constant 0 : i32
    %c0_i32_1 = arith.constant 0 : i32
    return %c0_i32, %c0_i32_0 : i32, i32
  }
  func.func @transform_9(%arg0: i32) -> (i32, i32) {
    %c0_i32 = arith.constant 0 : i32
    %c0_i32_0 = arith.constant 0 : i32
    %c0_i32_1 = arith.constant 0 : i32
    return %c0_i32, %c0_i32_0 : i32, i32
  }
  func.func @transform_10(%arg0: i32) -> (i32, i32) {
    %c0_i32 = arith.constant 0 : i32
    %c0_i32_0 = arith.constant 0 : i32
    %c0_i32_1 = arith.constant 0 : i32
    return %c0_i32, %c0_i32_0 : i32, i32
  }
  func.func @transform_11(%arg0: i32) -> (i32, i32) {
    %c0_i32 = arith.constant 0 : i32
    %c0_i32_0 = arith.constant 0 : i32
    %c0_i32_1 = arith.constant 0 : i32
    return %c0_i32, %c0_i32_0 : i32, i32
  }
  func.func @transform_12(%arg0: i32) -> (i32, i32) {
    %c0_i32 = arith.constant 0 : i32
    %c0_i32_0 = arith.constant 0 : i32
    return %c0_i32, %arg0 : i32, i32
  }
}

</mosaic_0001>

<bundles_post_ra>
// kernel: hiercdf_forward_pallas.1
= control target key start
LH: loop header
LB: loop body
LE: loop exit
PB: predicated region body
PF: predicated region fallthrough
CT: control target
= control target key end

     0   :  { %s11024_s0 = inlined_call_operand.vmem [shape: f32[8,2048], index: 0, kind: input, shape index: {}]   ;;  %s11025_s1 = inlined_call_operand.vmem [shape: f32[8,2048], index: 1, kind: input, shape index: {}]   ;;  %s11026_s2 = inlined_call_operand.vmem [shape: f32[8,2048], index: 2, kind: input, shape index: {}]   ;;  %s11027_s4 = inlined_call_operand.vmem [shape: f32[8,2048], index: 4, kind: input, shape index: {}]   ;;  %s11028_s3 = inlined_call_operand.vmem [shape: f32[8,2048], index: 3, kind: input, shape index: {}]   ;;  %s11029_s6 = inlined_call_operand.vmem [shape: f32[64,16], index: 6, kind: input, shape index: {}]   ;;  %s11030_s7 = inlined_call_operand.vmem [shape: f32[64,1], index: 7, kind: input, shape index: {}]   ;;  %s11031_s11 = inlined_call_operand.<no memory space> [shape: f32[1,1], index: 11, kind: input, shape index: {}]   ;;  %s11032_s9 = inlined_call_operand.vmem [shape: f32[16,1], index: 9, kind: input, shape index: {}]   ;;  %s11033_s10 = inlined_call_operand.vmem [shape: f32[16,1], index: 10, kind: input, shape index: {}]   ;;  %s11034_s5 = inlined_call_operand.vmem [shape: f32[1,2048], index: 5, kind: input, shape index: {}]   ;;  %s11035_s8 = inlined_call_operand.vmem [shape: f32[16,32], index: 8, kind: input, shape index: {}]   ;;  %s11036_s12 = inlined_call_operand.vmem [shape: f32[1,2048], index: 12, kind: output, shape index: {}]  }
   0x1   :  { %v43_v0 = vld [vmem:[%s11024_s0] sm:$0xff]  ;;  %v44_v1 = vld [vmem:[%s11024_s0 + $0x8] sm:$0xff]  ;;  %v45_v2 = vld [vmem:[%s11024_s0 + $0x10] sm:$0xff] }
   0x2   :  { %v46_v3 = vld [vmem:[%s11024_s0 + $0x18] sm:$0xff]  ;;  %v47_v4 = vld [vmem:[%s11024_s0 + $0x20] sm:$0xff]  ;;  %v48_v5 = vld [vmem:[%s11024_s0 + $0x28] sm:$0xff]  ;;  %v6096_v6 = vmul.f32 -1.442695, %v43_v0 }
   0x3   :  { %v49_v7 = vld [vmem:[%s11024_s0 + $0x30] sm:$0xff]  ;;  %v6097_v8 = vmul.f32 -1.442695, %v44_v1  ;;  %v6098_v9 = vmul.f32 -1.442695, %v45_v2  ;;  %v50_v10 = vld [vmem:[%s11024_s0 + $0x38] sm:$0xff] }
   0x4   :  { %6455 = vpow2.f32 %v6096_v6  ;;  %v6099_v11 = vmul.f32 -1.442695, %v46_v3  ;;  %v6100_v12 = vmul.f32 -1.442695, %v47_v4  ;;  %v6101_v13 = vmul.f32 -1.442695, %v48_v5 }
   0x5   :  { %6457 = vpow2.f32 %v6097_v8  ;;  %v155_v14 = vld [vmem:[%s11025_s1] sm:$0xff]  ;;  %v6102_v15 = vmul.f32 -1.442695, %v49_v7  ;;  %v156_v16 = vld [vmem:[%s11025_s1 + $0x8] sm:$0xff]  ;;  %v6103_v17 = vmul.f32 -1.442695, %v50_v10 }
   0x6   :  { %6459 = vpow2.f32 %v6098_v9  ;;  %v157_v18 = vld [vmem:[%s11025_s1 + $0x10] sm:$0xff]  ;;  %v158_v19 = vld [vmem:[%s11025_s1 + $0x18] sm:$0xff]  ;;  %v6112_v20 = vmul.f32 -1.442695, %v155_v14  ;;  %v159_v21 = vld [vmem:[%s11025_s1 + $0x20] sm:$0xff] }
   0x7   :  { %6461 = vpow2.f32 %v6099_v11  ;;  %v6113_v22 = vmul.f32 -1.442695, %v156_v16  ;;  %v6114_v23 = vmul.f32 -1.442695, %v157_v18  ;;  %v6115_v24 = vmul.f32 -1.442695, %v158_v19 }
   0x8   :  { %6463 = vpow2.f32 %v6100_v12  ;;  %v6116_v25 = vmul.f32 -1.442695, %v159_v21  ;;  %v160_v35 = vld [vmem:[%s11025_s1 + $0x28] sm:$0xff]  ;;  %v161_v38 = vld [vmem:[%s11025_s1 + $0x30] sm:$0xff]  ;;  %v162_v41 = vld [vmem:[%s11025_s1 + $0x38] sm:$0xff] }
   0x9   :  { %6465 = vpow2.f32 %v6101_v13  ;;  %v6117_v44 = vmul.f32 -1.442695, %v160_v35  ;;  %v6118_v47 = vmul.f32 -1.442695, %v161_v38  ;;  %v6119_v49 = vmul.f32 -1.442695, %v162_v41 }
   0xa   :  { %6467 = vpow2.f32 %v6102_v15  ;;  %v267_v56 = vld [vmem:[%s11026_s2] sm:$0xff]  ;;  %v268_v59 = vld [vmem:[%s11026_s2 + $0x8] sm:$0xff]  ;;  %v269_v62 = vld [vmem:[%s11026_s2 + $0x10] sm:$0xff] }
   0xb   :  { %6469 = vpow2.f32 %v6103_v17  ;;  %v270_v0 = vld [vmem:[%s11026_s2 + $0x18] sm:$0xff]  ;;  %v6128_v1 = vmul.f32 -1.442695, %v267_v56  ;;  %v271_v3 = vld [vmem:[%s11026_s2 + $0x20] sm:$0xff]  ;;  %v6129_v4 = vmul.f32 -1.442695, %v268_v59 }
   0xc   :  { %6471 = vpow2.f32 %v6112_v20  ;;  %v272_v6 = vld [vmem:[%s11026_s2 + $0x28] sm:$0xff]  ;;  %v273_v7 = vld [vmem:[%s11026_s2 + $0x30] sm:$0xff]  ;;  %v6130_v8 = vmul.f32 -1.442695, %v269_v62  ;;  %v274_v10 = vld [vmem:[%s11026_s2 + $0x38] sm:$0xff] }
   0xd   :  { %6473 = vpow2.f32 %v6113_v22  ;;  %v6131_v11 = vmul.f32 -1.442695, %v270_v0  ;;  %v396_v12 = vld [vmem:[%s11027_s4 + $0x8] sm:$0xff]  ;;  %v6132_v14 = vmul.f32 -1.442695, %v271_v3 }
   0xe   :  { %v6456_v26 = vpop.eup %6455  ;;  %6475 = vpow2.f32 %v6114_v23  ;;  %v6133_v16 = vmul.f32 -1.442695, %v272_v6  ;;  %v6134_v17 = vmul.f32 -1.442695, %v273_v7  ;;  %v6135_v19 = vmul.f32 -1.442695, %v274_v10 }
   0xf   :  { %v6458_v27 = vpop.eup %6457  ;;  %v107_v28 = vadd.f32 1.0, %v6456_v26  ;;  %6477 = vpow2.f32 %v6115_v24  ;;  %v6145_v20 = vmul.f32 -1.442695, %v396_v12 }
  0x10   :  { %v6460_v29 = vpop.eup %6459  ;;  %v108_v30 = vadd.f32 1.0, %v6458_v27  ;;  %6479 = vpow2.f32 %v6116_v25 }
  0x11   :  { %v6462_v31 = vpop.eup %6461  ;;  %v109_v32 = vadd.f32 1.0, %v6460_v29  ;;  %6481 = vrcp.f32 %v107_v28 }
  0x12   :  { %v6464_v33 = vpop.eup %6463  ;;  %v110_v34 = vadd.f32 1.0, %v6462_v31  ;;  %6483 = vrcp.f32 %v108_v30 }
  0x13   :  { %v6466_v36 = vpop.eup %6465  ;;  %v111_v37 = vadd.f32 1.0, %v6464_v33  ;;  %6485 = vrcp.f32 %v109_v32 }
  0x14   :  { %v6468_v39 = vpop.eup %6467  ;;  %v112_v40 = vadd.f32 1.0, %v6466_v36  ;;  %6487 = vrcp.f32 %v110_v34 }
  0x15   :  { %v6470_v42 = vpop.eup %6469  ;;  %v113_v43 = vadd.f32 1.0, %v6468_v39  ;;  %6489 = vrcp.f32 %v111_v37 }
  0x16   :  { %v6472_v45 = vpop.eup %6471  ;;  %v114_v46 = vadd.f32 1.0, %v6470_v42  ;;  %6491 = vrcp.f32 %v112_v40 }
  0x17   :  { %v6474_v48 = vpop.eup %6473  ;;  %6493 = vrcp.f32 %v113_v43  ;;  %v219_v51 = vadd.f32 1.0, %v6472_v45 }
  0x18   :  { %v6476_v50 = vpop.eup %6475  ;;  %6495 = vrcp.f32 %v114_v46  ;;  %v220_v53 = vadd.f32 1.0, %v6474_v48 }
  0x19   :  { %v6478_v52 = vpop.eup %6477  ;;  %6497 = vpow2.f32 %v6117_v44  ;;  %v221_v55 = vadd.f32 1.0, %v6476_v50 }
  0x1a   :  { %v6480_v54 = vpop.eup %6479  ;;  %6499 = vpow2.f32 %v6118_v47  ;;  %v222_v58 = vadd.f32 1.0, %v6478_v52 }
  0x1b   :  { %v7488_v57 = vpop.eup %6481  ;;  %6501 = vpow2.f32 %v6119_v49  ;;  %v223_v61 = vadd.f32 1.0, %v6480_v54 }
  0x1c   :  { %11223 = vst [vmem:[#allocation4_spill] sm:$0xff] %v7488_v57  ;;  %v7493_v60 = vpop.eup %6483  ;;  %6503 = vrcp.f32 %v219_v51  ;;  %v537_v21 = vrot.slane %v7488_v57, 2  ;;  %v7530_v24 = vsub.f32 1.0, %v7488_v57  ;;  %v1145_v25 = vrot.slane %v7488_v57, 6 }
  0x1d   :  { %11224 = vst [vmem:[#allocation5_spill] sm:$0xff] %v7493_v60  ;;  %v7498_v63 = vpop.eup %6485  ;;  %6505 = vrcp.f32 %v220_v53  ;;  %v538_v28 = vrot.slane %v7493_v60, 2  ;;  %v7535_v29 = vsub.f32 1.0, %v7493_v60  ;;  %v1146_v33 = vrot.slane %v7493_v60, 6 }
  0x1e   :  { %11225 = vst [vmem:[#allocation6_spill] sm:$0xff] %v7498_v63  ;;  %v7503_v2 = vpop.eup %6487  ;;  %6507 = vrcp.f32 %v221_v55  ;;  %v539_v32 = vrot.slane %v7498_v63, 2  ;;  %v7545_v36 = vsub.f32 1.0, %v7498_v63  ;;  %v617_v37 = vrot.slane %v7530_v24, 2 }
  0x1f   :  { %11226 = vst [vmem:[#allocation7_spill] sm:$0xff] %v7503_v2  ;;  %v7508_v5 = vpop.eup %6489  ;;  %6509 = vrcp.f32 %v222_v58  ;;  %v540_v35 = vrot.slane %v7503_v2, 2  ;;  %v7552_v40 = vsub.f32 1.0, %v7503_v2  ;;  %v618_v41 = vrot.slane %v7535_v29, 2 }
  0x20   :  { %11227 = vst [vmem:[#allocation8_spill] sm:$0xff] %v7508_v5  ;;  %v7516_v9 = vpop.eup %6491  ;;  %6511 = vrcp.f32 %v223_v61  ;;  %v541_v39 = vrot.slane %v7508_v5, 2  ;;  %v7559_v44 = vsub.f32 1.0, %v7508_v5  ;;  %v619_v45 = vrot.slane %v7545_v36, 2 }
  0x21   :  { %11228 = vst [vmem:[#allocation9_spill] sm:$0xff] %v7516_v9  ;;  %v7524_v13 = vpop.eup %6493  ;;  %6513 = vpow2.f32 %v6128_v1  ;;  %v542_v43 = vrot.slane %v7516_v9, 2  ;;  %v7566_v48 = vsub.f32 1.0, %v7516_v9  ;;  %v620_v49 = vrot.slane %v7552_v40, 2 }
  0x22   :  { %11229 = vst [vmem:[#allocation10_spill] sm:$0xff] %v7524_v13  ;;  %v7526_v15 = vpop.eup %6495  ;;  %6515 = vpow2.f32 %v6129_v4  ;;  %v543_v47 = vrot.slane %v7524_v13, 2  ;;  %v7571_v52 = vsub.f32 1.0, %v7524_v13  ;;  %v621_v53 = vrot.slane %v7559_v44, 2 }
  0x23   :  { %11230 = vst [vmem:[#allocation11_spill] sm:$0xff] %v7526_v15  ;;  %v6498_v18 = vpop.eup %6497  ;;  %6517 = vpow2.f32 %v6130_v8  ;;  %v544_v51 = vrot.slane %v7526_v15, 2  ;;  %v7575_v56 = vsub.f32 1.0, %v7526_v15  ;;  %v622_v58 = vrot.slane %v7566_v48, 2 }
  0x24   :  { %v6500_v22 = vpop.eup %6499  ;;  %v224_v23 = vadd.f32 1.0, %v6498_v18  ;;  %6519 = vpow2.f32 %v6131_v11  ;;  %v623_v62 = vrot.slane %v7571_v52, 2  ;;  %v1147_v0 = vrot.slane %v7498_v63, 6 }
  0x25   :  { %v6502_v26 = vpop.eup %6501  ;;  %v225_v27 = vadd.f32 1.0, %v6500_v22  ;;  %6521 = vpow2.f32 %v6132_v14  ;;  %v624_v4 = vrot.slane %v7575_v56, 2  ;;  %v1148_v6 = vrot.slane %v7503_v2, 6 }
  0x26   :  { %v7537_v30 = vpop.eup %6503  ;;  %v226_v31 = vadd.f32 1.0, %v6502_v26  ;;  %6523 = vrcp.f32 %v224_v23  ;;  %v1149_v10 = vrot.slane %v7508_v5, 6  ;;  %v1150_v11 = vrot.slane %v7516_v9, 6 }
  0x27   :  { %11231 = vst [vmem:[#allocation12_spill] sm:$0xff] %v7537_v30  ;;  %v7541_v34 = vpop.eup %6505  ;;  %6525 = vrcp.f32 %v225_v27  ;;  %vm683_vm0 = vcmp.eq.f32.partialorder %v7537_v30, inf  ;;  %vm685_vm1 = vcmp.eq.f32.partialorder %v7537_v30, 0.0 }
  0x28   :  { %11232 = vst [vmem:[#allocation13_spill] sm:$0xff] %v7541_v34  ;;  %v7548_v38 = vpop.eup %6507  ;;  %6527 = vrcp.f32 %v226_v31  ;;  %v7596_v18 = vmul.f32 %v7541_v34, %v538_v28  ;;  %v693_v26 = vand.u32 2147483648, %v7541_v34  ;;  %vm690_vm2 = vcmp.eq.f32.partialorder %v7541_v34, inf }
  0x29   :  { %11233 = vst [vmem:[#allocation14_spill] sm:$0xff] %v7548_v38  ;;  %v7555_v42 = vpop.eup %6509  ;;  %6529 = vpow2.f32 %v6133_v16  ;;  %v7590_v16 = vmul.f32 %v7537_v30, %v537_v21  ;;  %v700_v28 = vand.u32 2147483648, %v7548_v38  ;;  %vm692_vm3 = vcmp.eq.f32.partialorder %v7541_v34, 0.0 }
  0x2a   :  { %11234 = vst [vmem:[#allocation15_spill] sm:$0xff] %v7555_v42  ;;  %v7562_v46 = vpop.eup %6511  ;;  %6531 = vpow2.f32 %v6134_v17  ;;  %v7606_v21 = vmul.f32 %v7555_v42, %v540_v35  ;;  %v1151_v35 = vrot.slane %v7524_v13, 6  ;;  %vm697_vm4 = vcmp.eq.f32.partialorder %v7548_v38, inf }
  0x2b   :  { %11235 = vst [vmem:[#allocation16_spill] sm:$0xff] %v7562_v46  ;;  %v6514_v50 = vpop.eup %6513  ;;  %6533 = vpow2.f32 %v6135_v19  ;;  %v7599_v19 = vmul.f32 %v7548_v38, %v539_v32  ;;  %v7609_v23 = vmul.f32 %v7562_v46, %v541_v39  ;;  %v1152_v39 = vrot.slane %v7526_v15, 6 }
  0x2c   :  { %v6516_v54 = vpop.eup %6515  ;;  %v331_v55 = vadd.f32 1.0, %v6514_v50  ;;  %6535 = vpow2.f32 %v6145_v20  ;;  %v686_v20 = vand.u32 2147483648, %v7537_v30  ;;  %vm699_vm5 = vcmp.eq.f32.partialorder %v7548_v38, 0.0 }
  0x2d   :  { %v6518_v59 = vpop.eup %6517  ;;  %v332_v61 = vadd.f32 1.0, %v6516_v54  ;;  %6537 = vrsqrt.f32 %v7537_v30  ;;  %vm704_vm6 = vcmp.eq.f32.partialorder %v7555_v42, inf  ;;  %vm706_vm7 = vcmp.eq.f32.partialorder %v7555_v42, 0.0 }
  0x2e   :  { %v6520_v1 = vpop.eup %6519  ;;  %v333_v3 = vadd.f32 1.0, %v6518_v59  ;;  %6539 = vrcp.f32 %v331_v55  ;;  %vm711_vm8 = vcmp.eq.f32.partialorder %v7562_v46, inf  ;;  %vm713_vm10 = vcmp.eq.f32.partialorder %v7562_v46, 0.0 }
  0x2f   :  { %v6522_v7 = vpop.eup %6521  ;;  %v334_v8 = vadd.f32 1.0, %v6520_v1  ;;  %6541 = vrcp.f32 %v332_v61  ;;  %v7624_v61 = vmul.f32 %v7537_v30, %v1145_v25  ;;  %v7629_v1 = vmul.f32 %v7541_v34, %v1146_v33 }
  0x30   :  { %v7585_v12 = vpop.eup %6523  ;;  %v335_v14 = vadd.f32 1.0, %v6522_v7  ;;  %6543 = vrcp.f32 %v333_v3  ;;  %v7639_v25 = vmul.f32 %v7548_v38, %v1147_v0 }
  0x31   :  { %11236 = vst [vmem:[#allocation17_spill] sm:$0xff] %v7585_v12  ;;  %v7593_v17 = vpop.eup %6525  ;;  %6545 = vrcp.f32 %v334_v8  ;;  %11239 = vst [vmem:[#allocation20_spill] sm:$0xff] %v7624_v61  ;;  %v7634_v8 = vmul.f32 %v7585_v12, %v542_v43  ;;  %vm718_vm9 = vcmp.eq.f32.partialorder %v7585_v12, inf  ;;  %vm720_vm11 = vcmp.eq.f32.partialorder %v7585_v12, 0.0 }
  0x32   :  { %11237 = vst [vmem:[#allocation18_spill] sm:$0xff] %v7593_v17  ;;  %v7603_v22 = vpop.eup %6527  ;;  %6547 = vrcp.f32 %v335_v14  ;;  %11240 = vst [vmem:[#allocation21_spill] sm:$0xff] %v7629_v1  ;;  %v7644_v33 = vmul.f32 %v7593_v17, %v543_v47  ;;  %vm725_vm12 = vcmp.eq.f32.partialorder %v7593_v17, inf  ;;  %vm727_vm13 = vcmp.eq.f32.partialorder %v7593_v17, 0.0 }
  0x33   :  { %11238 = vst [vmem:[#allocation19_spill] sm:$0xff] %v7603_v22  ;;  %v6530_v27 = vpop.eup %6529  ;;  %6549 = vrsqrt.f32 %v7541_v34  ;;  %11241 = vst [vmem:[#allocation22_spill] sm:$0xff] %v7639_v25  ;;  %v7654_v0 = vmul.f32 %v7603_v22, %v544_v51  ;;  %vm732_vm14 = vcmp.eq.f32.partialorder %v7603_v22, inf  ;;  %vm734_vm15 = vcmp.eq.f32.partialorder %v7603_v22, 0.0 }
  0x34   :  { %v6532_v50 = vpop.eup %6531  ;;  %v336_v54 = vadd.f32 1.0, %v6530_v27  ;;  %6551 = vrsqrt.f32 %v7548_v38 }
  0x35   :  { %v6534_v55 = vpop.eup %6533  ;;  %v337_v59 = vadd.f32 1.0, %v6532_v50  ;;  %6553 = vrsqrt.f32 %v7555_v42 }
  0x36   :  { %v6536_v3 = vpop.eup %6535  ;;  %v338_v7 = vadd.f32 1.0, %v6534_v55  ;;  %6555 = vrcp.f32 %v336_v54 }
  0x37   :  { %v6538_v14 = vpop.eup %6537  ;;  %6557 = vrcp.f32 %v337_v59  ;;  %v460_v27 = vadd.f32 1.0, %v6536_v3  ;;  %v7663_v3 = vmul.f32 %v7555_v42, %v1148_v6  ;;  %v7687_v59 = vmul.f32 %v7593_v17, %v1151_v35 }
  0x38   :  { %v7649_v50 = vpop.eup %6539  ;;  %6559 = vrcp.f32 %v338_v7  ;;  %v682_v54 = vmul.f32 %v6538_v14, %v7537_v30  ;;  %v7666_v7 = vmul.f32 %v7562_v46, %v1149_v10 }
  0x39   :  { %v7659_v55 = vpop.eup %6541  ;;  %6561 = vrcp.f32 %v460_v27  ;;  %11243 = vst [vmem:[#allocation24_spill] sm:$0xff] %v7663_v3  ;;  %v649_v51 = vmul.f32 %v7649_v50, %v617_v37  ;;  %v7678_v27 = vmul.f32 %v7585_v12, %v1150_v11  ;;  %11248 = vst [vmem:[#allocation29_spill] sm:$0xff] %v7687_v59  ;;  %v7690_v37 = vmul.f32 %v7603_v22, %v1152_v39 }
  0x3a   :  { %11242 = vst [vmem:[#allocation23_spill] sm:$0xff] %v7659_v55  ;;  %11244 = vst [vmem:[#allocation25_spill] sm:$0xff] %v7666_v7  ;;  %v7668_v43 = vpop.eup %6543  ;;  %v684_v14 = vsel %vm683_vm0, %v7537_v30, %v682_v54  ;;  %6563 = vrsqrt.f32 %v7562_v46  ;;  %v650_v10 = vmul.f32 %v7659_v55, %v618_v41  ;;  %vm811_vm0 = vcmp.eq.f32.partialorder %v7649_v50, inf }
  0x3b   :  { %11245 = vst [vmem:[#allocation26_spill] sm:$0xff] %v7668_v43  ;;  %11246 = vst [vmem:[#allocation27_spill] sm:$0xff] %v7678_v27  ;;  %v7680_v6 = vpop.eup %6545  ;;  %6565 = vrsqrt.f32 %v7585_v12  ;;  %v651_v11 = vmul.f32 %v7668_v43, %v619_v45  ;;  %v7699_v47 = vsel %vm685_vm1, %v686_v20, %v684_v14  ;;  %v7715_v41 = vadd.f32 %v649_v51, %v7590_v16 }
  0x3c   :  { %11247 = vst [vmem:[#allocation28_spill] sm:$0xff] %v7680_v6  ;;  %11249 = vst [vmem:[#allocation30_spill] sm:$0xff] %v7690_v37  ;;  %v7692_v54 = vpop.eup %6547  ;;  %6567 = vrsqrt.f32 %v7593_v17  ;;  %v652_v39 = vmul.f32 %v7680_v6, %v620_v49  ;;  %v7723_v20 = vadd.f32 %v650_v10, %v7596_v18  ;;  %vm818_vm1 = vcmp.eq.f32.partialorder %v7659_v55, inf }
  0x3d   :  { %11250 = vst [vmem:[#allocation31_spill] sm:$0xff] %v7692_v54  ;;  %11251 = vst [vmem:[#allocation32_spill] sm:$0xff] %v7699_v47  ;;  %v6550_v35 = vpop.eup %6549  ;;  %6569 = vrsqrt.f32 %v7603_v22  ;;  %v653_v32 = vmul.f32 %v7692_v54, %v621_v53  ;;  %v7730_v53 = vmul.f32 %v7488_v57, %v7699_v47  ;;  %v7736_v51 = vadd.f32 %v651_v11, %v7599_v19 }
  0x3e   :  { %v6552_v14 = vpop.eup %6551  ;;  %11252 = vst [vmem:[#allocation33_spill] sm:$0xff] %v7715_v41  ;;  %v689_v31 = vmul.f32 %v6550_v35, %v7541_v34  ;;  %6571 = vrsqrt.f32 %v7649_v50  ;;  %11253 = vst [vmem:[#allocation34_spill] sm:$0xff] %v7723_v20  ;;  %v7751_v19 = vadd.f32 %v652_v39, %v7606_v21 }
  0x3f   :  { %v6554_v49 = vpop.eup %6553  ;;  %v696_v45 = vmul.f32 %v6552_v14, %v7548_v38  ;;  %6573 = vrsqrt.f32 %v7659_v55  ;;  %11255 = vst [vmem:[#allocation36_spill] sm:$0xff] %v7736_v51  ;;  %v7769_v21 = vadd.f32 %v653_v32, %v7609_v23  ;;  %v11263_v23 = vand.u32 2147483648, %v7555_v42 }
  0x40   :  { %v7733_v16 = vpop.eup %6555  ;;  %v691_v18 = vsel %vm690_vm2, %v7541_v34, %v689_v31  ;;  %v703_v10 = vmul.f32 %v6554_v49, %v7555_v42  ;;  %6575 = vrsqrt.f32 %v7668_v43  ;;  %11257 = vst [vmem:[#allocation38_spill] sm:$0xff] %v7751_v19  ;;  %vm813_vm2 = vcmp.eq.f32.partialorder %v7649_v50, 0.0 }
  0x41   :  { %11254 = vst [vmem:[#allocation35_spill] sm:$0xff] %v7733_v16  ;;  %v7745_v35 = vpop.eup %6557  ;;  %v654_v14 = vmul.f32 %v7733_v16, %v622_v58  ;;  %v7757_v31 = vsel %vm692_vm3, %v693_v26, %v691_v18  ;;  %v698_v11 = vsel %vm697_vm4, %v7548_v38, %v696_v45  ;;  %11260 = vst [vmem:[#allocation41_spill] sm:$0xff] %v7769_v21  ;;  %vm820_vm3 = vcmp.eq.f32.partialorder %v7659_v55, 0.0 }
  0x42   :  { %11256 = vst [vmem:[#allocation37_spill] sm:$0xff] %v7745_v35  ;;  %11258 = vst [vmem:[#allocation39_spill] sm:$0xff] %v7757_v31  ;;  %v7763_v49 = vpop.eup %6559  ;;  %v655_v58 = vmul.f32 %v7745_v35, %v623_v62  ;;  %v7775_v26 = vsel %vm699_vm5, %v700_v28, %v698_v11  ;;  %v705_v39 = vsel %vm704_vm6, %v7555_v42, %v703_v10  ;;  %v821_v32 = vand.u32 2147483648, %v7659_v55 }
  0x43   :  { %11259 = vst [vmem:[#allocation40_spill] sm:$0xff] %v7763_v49  ;;  %11261 = vst [vmem:[#allocation42_spill] sm:$0xff] %v7775_v26  ;;  %v7782_v45 = vpop.eup %6561  ;;  %v656_v62 = vmul.f32 %v7763_v49, %v624_v4  ;;  %v7791_v28 = vsel %vm706_vm7, %v11263_v23, %v705_v39  ;;  %vm825_vm4 = vcmp.eq.f32.partialorder %v7668_v43, inf  ;;  %v7796_v10 = vadd.f32 %v654_v14, %v7634_v8 }
  0x44   :  { %11262 = vst [vmem:[#allocation43_spill] sm:$0xff] %v7782_v45  ;;  %11264 = vst [vmem:[#allocation44_spill] sm:$0xff] %v7791_v28  ;;  %v6564_v18 = vpop.eup %6563  ;;  %v7800_v11 = vmul.f32 %v7493_v60, %v7757_v31  ;;  %vm827_vm5 = vcmp.eq.f32.partialorder %v7668_v43, 0.0  ;;  %6577 = vrsqrt.f32 %v7680_v6  ;;  %v7805_v39 = vadd.f32 %v655_v58, %v7644_v33 }
  0x45   :  { %11265 = vst [vmem:[#allocation45_spill] sm:$0xff] %v7796_v10  ;;  %v6566_v4 = vpop.eup %6565  ;;  %v710_v23 = vmul.f32 %v6564_v18, %v7562_v46  ;;  %v7810_v45 = vmul.f32 %v7498_v63, %v7775_v26  ;;  %v7814_v8 = vmul.f32 %v7503_v2, %v7791_v28  ;;  %v7817_v10 = vadd.f32 %v656_v62, %v7654_v0 }
  0x46   :  { %11266 = vst [vmem:[#allocation46_spill] sm:$0xff] %v7805_v39  ;;  %v6568_v14 = vpop.eup %6567  ;;  %v717_v21 = vmul.f32 %v6566_v4, %v7585_v12  ;;  %v828_v19 = vand.u32 2147483648, %v7668_v43  ;;  %6579 = vrsqrt.f32 %v7692_v54  ;;  %vm832_vm6 = vcmp.eq.f32.partialorder %v7680_v6, inf }
  0x47   :  { %11267 = vst [vmem:[#allocation47_spill] sm:$0xff] %v7817_v10  ;;  %v6570_v33 = vpop.eup %6569  ;;  %v712_v58 = vsel %vm711_vm8, %v7562_v46, %v710_v23  ;;  %v724_v18 = vmul.f32 %v6568_v14, %v7593_v17  ;;  %vm834_vm7 = vcmp.eq.f32.partialorder %v7680_v6, 0.0  ;;  %v835_v4 = vand.u32 2147483648, %v7680_v6 }
  0x48   :  { %v6572_v39 = vpop.eup %6571  ;;  %v719_v0 = vsel %vm718_vm9, %v7585_v12, %v717_v21  ;;  %v731_v62 = vmul.f32 %v6570_v33, %v7603_v22  ;;  %6581 = vrsqrt.f32 %v7733_v16  ;;  %v11268_v23 = vand.u32 2147483648, %v7562_v46 }
  0x49   :  { %v6574_v10 = vpop.eup %6573  ;;  %v11270_v51 = vand.u32 2147483648, %v7585_v12  ;;  %v726_v21 = vsel %vm725_vm12, %v7593_v17, %v724_v18  ;;  %v810_v33 = vmul.f32 %v6572_v39, %v7649_v50  ;;  %v11272_v2 = vand.u32 2147483648, %v7593_v17 }
  0x4a   :  { %v7838_v14 = vsel %vm713_vm10, %v11268_v23, %v712_v58  ;;  %v6576_v41 = vpop.eup %6575  ;;  %v733_v58 = vsel %vm732_vm14, %v7603_v22, %v731_v62  ;;  %vm839_vm8 = vcmp.eq.f32.partialorder %v7692_v54, inf  ;;  %vm841_vm9 = vcmp.eq.f32.partialorder %v7692_v54, 0.0 }
  0x4b   :  { %11269 = vst [vmem:[#allocation48_spill] sm:$0xff] %v7838_v14  ;;  %v7844_v20 = vsel %vm720_vm11, %v11270_v51, %v719_v0  ;;  %v7854_v63 = vsel %vm727_vm13, %v11272_v2, %v726_v21  ;;  %v817_v51 = vmul.f32 %v6574_v10, %v7659_v55  ;;  %v11274_v0 = vand.u32 2147483648, %v7603_v22 }
  0x4c   :  { %11271 = vst [vmem:[#allocation49_spill] sm:$0xff] %v7844_v20  ;;  %11273 = vst [vmem:[#allocation50_spill] sm:$0xff] %v7854_v63  ;;  %v812_v18 = vsel %vm811_vm0, %v7649_v50, %v810_v33  ;;  %v824_v2 = vmul.f32 %v6576_v41, %v7668_v43  ;;  %v7874_v62 = vmul.f32 %v7508_v5, %v7838_v14  ;;  %v842_v21 = vand.u32 2147483648, %v7692_v54 }
  0x4d   :  { %v7865_v39 = vsel %vm734_vm15, %v11274_v0, %v733_v58  ;;  %v7878_v10 = vmul.f32 %v7516_v9, %v7844_v20  ;;  %v819_v23 = vsel %vm818_vm1, %v7659_v55, %v817_v51  ;;  %v7886_v33 = vmul.f32 %v7524_v13, %v7854_v63 }
  0x4e   :  { %11275 = vst [vmem:[#allocation51_spill] sm:$0xff] %v7865_v39  ;;  %v11276_v41 = vand.u32 2147483648, %v7649_v50  ;;  %v7896_v0 = vsel %vm820_vm3, %v821_v32, %v819_v23  ;;  %v826_v51 = vsel %vm825_vm4, %v7668_v43, %v824_v2  ;;  %v6578_v9 = vpop.eup %6577  ;;  %v7903_v5 = vmul.f32 %v7526_v15, %v7865_v39 }
  0x4f   :  { %11278 = vst [vmem:[#allocation53_spill] sm:$0xff] %v7896_v0  ;;  %v7907_v13 = vsel %vm827_vm5, %v828_v19, %v826_v51  ;;  %vm846_vm10 = vcmp.eq.f32.partialorder %v7733_v16, inf  ;;  %6583 = vrsqrt.f32 %v7745_v35  ;;  %v831_v32 = vmul.f32 %v6578_v9, %v7680_v6 }
  0x50   :  { %v7892_v58 = vsel %vm813_vm2, %v11276_v41, %v812_v18  ;;  %11279 = vst [vmem:[#allocation54_spill] sm:$0xff] %v7907_v13  ;;  %vm848_vm11 = vcmp.eq.f32.partialorder %v7733_v16, 0.0  ;;  %v849_v18 = vand.u32 2147483648, %v7733_v16  ;;  %6585 = vrsqrt.f32 %v7763_v49  ;;  %v6580_v2 = vpop.eup %6579 }
  0x51   :  { %11277 = vst [vmem:[#allocation52_spill] sm:$0xff] %v7892_v58  ;;  %vm853_vm12 = vcmp.eq.f32.partialorder %v7745_v35, inf  ;;  %v856_v23 = vand.u32 2147483648, %v7745_v35  ;;  %v863_v19 = vand.u32 2147483648, %v7763_v49  ;;  %v921_v41 = vmul.f32 %v7892_v58, %v7530_v24 }
  0x52   :  { %v922_v51 = vmul.f32 %v7896_v0, %v7535_v29  ;;  %v833_v9 = vsel %vm832_vm6, %v7680_v6, %v831_v32  ;;  %v838_v15 = vmul.f32 %v6580_v2, %v7692_v54  ;;  %vm855_vm13 = vcmp.eq.f32.partialorder %v7745_v35, 0.0  ;;  %v6582_v39 = vpop.eup %6581 }
  0x53   :  { %vm860_vm14 = vcmp.eq.f32.partialorder %v7763_v49, inf  ;;  %v923_v60 = vmul.f32 %v7907_v13, %v7545_v36  ;;  %v7933_v58 = vsel %vm834_vm7, %v835_v4, %v833_v9  ;;  %vm862_vm15 = vcmp.eq.f32.partialorder %v7763_v49, 0.0 }
  0x54   :  { %11280 = vst [vmem:[#allocation55_spill] sm:$0xff] %v7933_v58  ;;  %v953_v0 = vrot.slane %v921_v41, 1  ;;  %v954_v32 = vrot.slane %v922_v51, 1  ;;  %v840_v63 = vsel %vm839_vm8, %v7692_v54, %v838_v15  ;;  %v845_v20 = vmul.f32 %v6582_v39, %v7733_v16 }
  0x55   :  { %v924_v57 = vmul.f32 %v7933_v58, %v7552_v40  ;;  %v955_v13 = vrot.slane %v923_v60, 1  ;;  %v7945_v4 = vsel %vm841_vm9, %v842_v21, %v840_v63  ;;  %v1019_v28 = vrot.slane %v7810_v45, 1 }
  0x56   :  { %11281 = vst [vmem:[#allocation56_spill] sm:$0xff] %v7945_v4  ;;  %v985_v9 = vmul.f32 %v953_v0, %v921_v41  ;;  %v986_v14 = vmul.f32 %v954_v32, %v922_v51  ;;  %v847_v2 = vsel %vm846_vm10, %v7733_v16, %v845_v20  ;;  %v925_v15 = vmul.f32 %v7945_v4, %v7559_v44 }
  0x57   :  { %v956_v39 = vrot.slane %v924_v57, 1  ;;  %v987_v26 = vmul.f32 %v955_v13, %v923_v60  ;;  %v7955_v58 = vsel %vm848_vm11, %v849_v18, %v847_v2  ;;  %v1020_v63 = vrot.slane %v7814_v8, 1 }
  0x58   :  { %11282 = vst [vmem:[#allocation57_spill] sm:$0xff] %v7955_v58  ;;  %v1021_v21 = vrot.slane %v7874_v62, 1  ;;  %v1022_v31 = vrot.slane %v7878_v10, 1  ;;  %v926_v47 = vmul.f32 %v7955_v58, %v7566_v48  ;;  %v957_v22 = vrot.slane %v925_v15, 1 }
  0x59   :  { %v988_v20 = vmul.f32 %v956_v39, %v924_v57  ;;  %v1023_v17 = vrot.slane %v7886_v33, 1  ;;  %v6584_v4 = vpop.eup %6583  ;;  %v1024_v12 = vrot.slane %v7903_v5, 1  ;;  %v11283_v46 = vrot.slane %v7730_v53, 1 }
  0x5a   :  { %v11284_v2 = vrot.slane %v7800_v11, 1  ;;  %v1051_v38 = vmul.f32 %v1019_v28, %v923_v60  ;;  %v6586_v34 = vpop.eup %6585  ;;  %v852_v30 = vmul.f32 %v6584_v4, %v7745_v35  ;;  %v958_v37 = vrot.slane %v926_v47, 1 }
  0x5b   :  { %v1049_v18 = vmul.f32 %v11283_v46, %v921_v41  ;;  %v989_v59 = vmul.f32 %v957_v22, %v925_v15  ;;  %v1052_v58 = vmul.f32 %v1020_v63, %v924_v57  ;;  %v859_v27 = vmul.f32 %v6586_v34, %v7763_v49 }
  0x5c   :  { %v1050_v42 = vmul.f32 %v11284_v2, %v922_v51  ;;  %v1053_v7 = vmul.f32 %v1021_v21, %v925_v15  ;;  %v1054_v3 = vmul.f32 %v1022_v31, %v926_v47  ;;  %v854_v1 = vsel %vm853_vm12, %v7745_v35, %v852_v30 }
  0x5d   :  { %v1065_v25 = vadd.f32 %v1049_v18, %v985_v9  ;;  %v990_v46 = vmul.f32 %v958_v37, %v926_v47  ;;  %v1067_v61 = vadd.f32 %v1051_v38, %v987_v26  ;;  %v7975_v60 = vsel %vm855_vm13, %v856_v23, %v854_v1 }
  0x5e   :  { %v1066_v41 = vadd.f32 %v1050_v42, %v986_v14  ;;  %v861_v57 = vsel %vm860_vm14, %v7763_v49, %v859_v27  ;;  %v1068_v51 = vadd.f32 %v1052_v58, %v988_v20  ;;  %v1069_v34 = vadd.f32 %v1053_v7, %v989_v59 }
  0x5f   :  { %v7982_v4 = vsel %vm862_vm15, %v863_v19, %v861_v57  ;;  %v927_v30 = vmul.f32 %v7975_v60, %v7571_v52  ;;  %v1070_v47 = vadd.f32 %v1054_v3, %v990_v46  ;;  %v1081_v38 = vmul.f32 %v953_v0, %v7730_v53 }
  0x60   :  { %v928_v42 = vmul.f32 %v7982_v4, %v7575_v56  ;;  %v1082_v1 = vmul.f32 %v954_v32, %v7800_v11  ;;  %v1083_v26 = vmul.f32 %v955_v13, %v7810_v45  ;;  %v1084_v27 = vmul.f32 %v956_v39, %v7814_v8 }
  0x61   :  { %v959_v59 = vrot.slane %v927_v30, 1  ;;  %v1055_v7 = vmul.f32 %v1023_v17, %v927_v30  ;;  %v1085_v14 = vmul.f32 %v957_v22, %v7874_v62  ;;  %v1086_v58 = vmul.f32 %v958_v37, %v7878_v10 }
  0x62   :  { %v960_v23 = vrot.slane %v928_v42, 1  ;;  %v1056_v19 = vmul.f32 %v1024_v12, %v928_v42  ;;  %v1097_v3 = vadd.f32 %v1081_v38, %v1065_v25  ;;  %v1098_v9 = vadd.f32 %v1082_v1, %v1066_v41 }
  0x63   :  { %v991_v0 = vmul.f32 %v959_v59, %v927_v30  ;;  %v1087_v15 = vmul.f32 %v959_v59, %v7886_v33  ;;  %v1099_v20 = vadd.f32 %v1083_v26, %v1067_v61  ;;  %v1100_v18 = vadd.f32 %v1084_v27, %v1068_v51 }
  0x64   :  { %v992_v32 = vmul.f32 %v960_v23, %v928_v42  ;;  %v1088_v13 = vmul.f32 %v960_v23, %v7903_v5  ;;  %v1101_v2 = vadd.f32 %v1085_v14, %v1069_v34  ;;  %v1102_v39 = vadd.f32 %v1086_v58, %v1070_v47  ;;  %v11297_v14 = vld [vmem:[#allocation20_spill] sm:$0xff]  ;;  %v11298_v58 = vld [vmem:[#allocation21_spill] sm:$0xff] }
  0x65   :  { %v1071_v46 = vadd.f32 %v1055_v7, %v991_v0  ;;  %v11285_v22 = vrot.slane %v7730_v53, 1  ;;  %v11286_v37 = vrot.slane %v7800_v11, 1  ;;  %v1115_v41 = vmul.f32 %v1019_v28, %v7810_v45  ;;  %v11304_v0 = vld [vmem:[#allocation25_spill] sm:$0xff] }
  0x66   :  { %v1072_v30 = vadd.f32 %v1056_v19, %v992_v32  ;;  %v1116_v61 = vmul.f32 %v1020_v63, %v7814_v8  ;;  %v1117_v51 = vmul.f32 %v1021_v21, %v7874_v62  ;;  %v1118_v38 = vmul.f32 %v1022_v31, %v7878_v10  ;;  %v11308_v32 = vld [vmem:[#allocation29_spill] sm:$0xff] }
  0x67   :  { %v1113_v57 = vmul.f32 %v11285_v22, %v7730_v53  ;;  %v1114_v25 = vmul.f32 %v11286_v37, %v7800_v11  ;;  %v1103_v34 = vadd.f32 %v1087_v15, %v1071_v46  ;;  %v1119_v47 = vmul.f32 %v1023_v17, %v7886_v33 }
  0x68   :  { %v1120_v42 = vmul.f32 %v1024_v12, %v7903_v5  ;;  %v1104_v53 = vadd.f32 %v1088_v13, %v1072_v30  ;;  %v8012_v11 = vadd.f32 %v1115_v41, %v1099_v20  ;;  %v8014_v45 = vadd.f32 %v1116_v61, %v1100_v18  ;;  %v11306_v20 = vld [vmem:[#allocation27_spill] sm:$0xff] }
  0x69   :  { %v8008_v1 = vadd.f32 %v1113_v57, %v1097_v3  ;;  %v8010_v26 = vadd.f32 %v1114_v25, %v1098_v9  ;;  %v8016_v28 = vadd.f32 %v1117_v51, %v1101_v2  ;;  %v8018_v8 = vadd.f32 %v1118_v38, %v1102_v39  ;;  %v11302_v3 = vld [vmem:[#allocation24_spill] sm:$0xff]  ;;  %v11310_v2 = vld [vmem:[#allocation30_spill] sm:$0xff] }
  0x6a   :  { %11289 = vst [vmem:[#allocation60_spill] sm:$0xff] %v8012_v11  ;;  %11290 = vst [vmem:[#allocation61_spill] sm:$0xff] %v8014_v45  ;;  %v8020_v62 = vadd.f32 %v1119_v47, %v1103_v34  ;;  %v1195_v31 = vrot.slane %v7545_v36, 6  ;;  %v8023_v17 = vadd.f32 %v1120_v42, %v1104_v53  ;;  %v1196_v5 = vrot.slane %v7552_v40, 6  ;;  %v11312_v51 = vld [vmem:[#allocation12_spill] sm:$0xff]  ;;  %v11313_v34 = vld [vmem:[#allocation13_spill] sm:$0xff] }
  0x6b   :  { %11287 = vst [vmem:[#allocation58_spill] sm:$0xff] %v8008_v1  ;;  %11288 = vst [vmem:[#allocation59_spill] sm:$0xff] %v8010_v26  ;;  %v1197_v12 = vrot.slane %v7559_v44, 6  ;;  %v1198_v10 = vrot.slane %v7566_v48, 6  ;;  %v1199_v33 = vrot.slane %v7571_v52, 6  ;;  %v1200_v63 = vrot.slane %v7575_v56, 6 }
  0x6c   :  { %11291 = vst [vmem:[#allocation62_spill] sm:$0xff] %v8016_v28  ;;  %11292 = vst [vmem:[#allocation63_spill] sm:$0xff] %v8018_v8  ;;  %v11295_v21 = vrot.slane %v7530_v24, 6  ;;  %v11296_v59 = vrot.slane %v7535_v29, 6  ;;  %v1227_v7 = vmul.f32 %v7668_v43, %v1195_v31  ;;  %v1228_v40 = vmul.f32 %v7680_v6, %v1196_v5  ;;  %v11300_v29 = vld [vmem:[#allocation22_spill] sm:$0xff]  ;;  %v11315_v31 = vld [vmem:[#allocation15_spill] sm:$0xff] }
  0x6d   :  { %11293 = vst [vmem:[#allocation64_spill] sm:$0xff] %v8020_v62  ;;  %11294 = vst [vmem:[#allocation65_spill] sm:$0xff] %v8023_v17  ;;  %v1229_v44 = vmul.f32 %v7692_v54, %v1197_v12  ;;  %v1230_v48 = vmul.f32 %v7733_v16, %v1198_v10  ;;  %v1231_v52 = vmul.f32 %v7745_v35, %v1199_v33  ;;  %v1273_v46 = vrot.slane %v8008_v1, 6  ;;  %v11314_v42 = vld [vmem:[#allocation14_spill] sm:$0xff]  ;;  %v11316_v12 = vld [vmem:[#allocation16_spill] sm:$0xff] }
  0x6e   :  { %v1225_v27 = vmul.f32 %v7649_v50, %v11295_v21  ;;  %v1226_v36 = vmul.f32 %v7659_v55, %v11296_v59  ;;  %v1232_v56 = vmul.f32 %v7763_v49, %v1200_v63  ;;  %v8049_v19 = vadd.f32 %v1227_v7, %v11300_v29  ;;  %v11317_v33 = vld [vmem:[#allocation17_spill] sm:$0xff]  ;;  %v11318_v21 = vld [vmem:[#allocation18_spill] sm:$0xff]  ;;  %v11319_v59 = vld [vmem:[#allocation19_spill] sm:$0xff] }
  0x6f   :  { %v8052_v9 = vadd.f32 %v1228_v40, %v11302_v3  ;;  %v8055_v15 = vadd.f32 %v1229_v44, %v11304_v0  ;;  %v8058_v18 = vadd.f32 %v1230_v48, %v11306_v20  ;;  %v8061_v13 = vadd.f32 %v1231_v52, %v11308_v32 }
  0x70   :  { %v8043_v24 = vadd.f32 %v1225_v27, %v11297_v14  ;;  %v8046_v23 = vadd.f32 %v1226_v36, %v11298_v58  ;;  %11301 = vst [vmem:[#allocation21_spill] sm:$0xff] %v8049_v19  ;;  %v8064_v39 = vadd.f32 %v1232_v56, %v11310_v2  ;;  %v1274_v22 = vrot.slane %v8010_v26, 6 }
  0x71   :  { %11303 = vst [vmem:[#allocation22_spill] sm:$0xff] %v8052_v9  ;;  %11305 = vst [vmem:[#allocation24_spill] sm:$0xff] %v8055_v15  ;;  %v1275_v57 = vrot.slane %v8012_v11, 6  ;;  %v1276_v37 = vrot.slane %v8014_v45, 6  ;;  %v1277_v25 = vrot.slane %v8016_v28, 6  ;;  %v1278_v41 = vrot.slane %v8018_v8, 6 }
  0x72   :  { %11299 = vst [vmem:[#allocation20_spill] sm:$0xff] %v8046_v23  ;;  %11307 = vst [vmem:[#allocation25_spill] sm:$0xff] %v8058_v18  ;;  %v1279_v30 = vrot.slane %v8020_v62, 6  ;;  %v1280_v61 = vrot.slane %v8023_v17, 6  ;;  %v1305_v38 = vmul.f32 %v11312_v51, %v1273_v46  ;;  %v1306_v47 = vmul.f32 %v11313_v34, %v1274_v22 }
  0x73   :  { %11309 = vst [vmem:[#allocation27_spill] sm:$0xff] %v8061_v13  ;;  %11311 = vst [vmem:[#allocation29_spill] sm:$0xff] %v8064_v39  ;;  %v1307_v53 = vmul.f32 %v11314_v42, %v1275_v57  ;;  %v1308_v5 = vmul.f32 %v11315_v31, %v1276_v37  ;;  %v1309_v10 = vmul.f32 %v11316_v12, %v1277_v25  ;;  %v1321_v7 = vsub.f32 1.0, %v8008_v1 }
  0x74   :  { %v1310_v63 = vmul.f32 %v11317_v33, %v1278_v41  ;;  %v1311_v27 = vmul.f32 %v11318_v21, %v1279_v30  ;;  %v1312_v36 = vmul.f32 %v11319_v59, %v1280_v61  ;;  %v1322_v40 = vsub.f32 1.0, %v8010_v26 }
  0x75   :  { %v1323_v44 = vsub.f32 1.0, %v8012_v11  ;;  %v1324_v48 = vsub.f32 1.0, %v8014_v45  ;;  %v1325_v52 = vsub.f32 1.0, %v8016_v28  ;;  %v1326_v56 = vsub.f32 1.0, %v8018_v8 }
  0x76   :  { %v1327_v14 = vsub.f32 1.0, %v8020_v62  ;;  %v1328_v58 = vsub.f32 1.0, %v8023_v17  ;;  %v1353_v29 = vrot.slane %v1321_v7, 6  ;;  %v1354_v3 = vrot.slane %v1322_v40, 6 }
  0x77   :  { %v1355_v0 = vrot.slane %v1323_v44, 6  ;;  %v1356_v20 = vrot.slane %v1324_v48, 6  ;;  %v1357_v32 = vrot.slane %v1325_v52, 6  ;;  %v1358_v2 = vrot.slane %v1326_v56, 6 }
  0x78   :  { %v1359_v46 = vrot.slane %v1327_v14, 6  ;;  %v1360_v22 = vrot.slane %v1328_v58, 6  ;;  %v1385_v57 = vmul.f32 %v7649_v50, %v1353_v29  ;;  %v1386_v37 = vmul.f32 %v7659_v55, %v1354_v3 }
  0x79   :  { %v1387_v25 = vmul.f32 %v7668_v43, %v1355_v0  ;;  %v1388_v41 = vmul.f32 %v7680_v6, %v1356_v20  ;;  %v1389_v30 = vmul.f32 %v7692_v54, %v1357_v32  ;;  %v1390_v61 = vmul.f32 %v7733_v16, %v1358_v2 }
  0x7a   :  { %v1391_v7 = vmul.f32 %v7745_v35, %v1359_v46  ;;  %v1392_v40 = vmul.f32 %v7763_v49, %v1360_v22  ;;  %v8098_v44 = vadd.f32 %v1385_v57, %v1305_v38  ;;  %v8100_v48 = vadd.f32 %v1386_v37, %v1306_v47  ;;  %v11330_v46 = vld [vmem:[#allocation42_spill] sm:$0xff]  ;;  %v11331_v57 = vld [vmem:[#allocation44_spill] sm:$0xff] }
  0x7b   :  { %v8102_v52 = vadd.f32 %v1387_v25, %v1307_v53  ;;  %v8104_v56 = vadd.f32 %v1388_v41, %v1308_v5  ;;  %v8106_v14 = vadd.f32 %v1389_v30, %v1309_v10  ;;  %v8108_v58 = vadd.f32 %v1390_v61, %v1310_v63  ;;  %v11332_v25 = vld [vmem:[#allocation48_spill] sm:$0xff]  ;;  %v11333_v30 = vld [vmem:[#allocation49_spill] sm:$0xff] }
  0x7c   :  { %11320 = vst [vmem:[#allocation30_spill] sm:$0xff] %v8098_v44  ;;  %11321 = vst [vmem:[#allocation12_spill] sm:$0xff] %v8100_v48  ;;  %v8110_v29 = vadd.f32 %v1391_v7, %v1311_v27  ;;  %v8112_v3 = vadd.f32 %v1392_v40, %v1312_v36  ;;  %v1433_v0 = vrot.slane %v8098_v44, 6  ;;  %v1434_v20 = vrot.slane %v8100_v48, 6  ;;  %v11328_v27 = vld [vmem:[#allocation32_spill] sm:$0xff]  ;;  %v11329_v36 = vld [vmem:[#allocation39_spill] sm:$0xff] }
  0x7d   :  { %11322 = vst [vmem:[#allocation13_spill] sm:$0xff] %v8102_v52  ;;  %11323 = vst [vmem:[#allocation14_spill] sm:$0xff] %v8104_v56  ;;  %v1435_v38 = vrot.slane %v8102_v52, 6  ;;  %v1436_v47 = vrot.slane %v8104_v56, 6  ;;  %v1437_v53 = vrot.slane %v8106_v14, 6  ;;  %v1438_v5 = vrot.slane %v8108_v58, 6 }
  0x7e   :  { %11324 = vst [vmem:[#allocation15_spill] sm:$0xff] %v8106_v14  ;;  %11325 = vst [vmem:[#allocation16_spill] sm:$0xff] %v8108_v58  ;;  %v1439_v10 = vrot.slane %v8110_v29, 6  ;;  %v1440_v63 = vrot.slane %v8112_v3, 6  ;;  %v8123_v32 = vmul.f32 %v1433_v0, %v11328_v27  ;;  %v8126_v2 = vmul.f32 %v1434_v20, %v11329_v36  ;;  %v11334_v7 = vld [vmem:[#allocation50_spill] sm:$0xff]  ;;  %v11335_v0 = vld [vmem:[#allocation51_spill] sm:$0xff] }
  0x7f   :  { %11326 = vst [vmem:[#allocation17_spill] sm:$0xff] %v8110_v29  ;;  %11327 = vst [vmem:[#allocation18_spill] sm:$0xff] %v8112_v3  ;;  %v8129_v22 = vmul.f32 %v1435_v38, %v11330_v46  ;;  %v8132_v37 = vmul.f32 %v1436_v47, %v11331_v57  ;;  %v8135_v41 = vmul.f32 %v1437_v53, %v11332_v25  ;;  %v1481_v20 = vsub.f32 1.0, %v8098_v44  ;;  %v11336_v49 = vld [vmem:[#allocation52_spill] sm:$0xff] }
  0x80   :  { %v8138_v61 = vmul.f32 %v1438_v5, %v11333_v30  ;;  %v8141_v40 = vmul.f32 %v1439_v10, %v11334_v7  ;;  %v8144_v17 = vmul.f32 %v1440_v63, %v11335_v0  ;;  %v1482_v38 = vsub.f32 1.0, %v8100_v48 }
  0x81   :  { %v1483_v62 = vsub.f32 1.0, %v8102_v52  ;;  %v1484_v47 = vsub.f32 1.0, %v8104_v56  ;;  %v1485_v53 = vsub.f32 1.0, %v8106_v14  ;;  %v1486_v8 = vsub.f32 1.0, %v8108_v58  ;;  %v11337_v56 = vld [vmem:[#allocation53_spill] sm:$0xff]  ;;  %v11338_v14 = vld [vmem:[#allocation54_spill] sm:$0xff] }
  0x82   :  { %v1487_v5 = vsub.f32 1.0, %v8110_v29  ;;  %v1488_v10 = vsub.f32 1.0, %v8112_v3  ;;  %v1513_v28 = vrot.slane %v1481_v20, 6  ;;  %v1514_v45 = vrot.slane %v1482_v38, 6  ;;  %v11339_v29 = vld [vmem:[#allocation55_spill] sm:$0xff]  ;;  %v11340_v20 = vld [vmem:[#allocation56_spill] sm:$0xff] }
  0x83   :  { %v1515_v63 = vrot.slane %v1483_v62, 6  ;;  %v1516_v11 = vrot.slane %v1484_v47, 6  ;;  %v1517_v26 = vrot.slane %v1485_v53, 6  ;;  %v1518_v44 = vrot.slane %v1486_v8, 6  ;;  %v11341_v62 = vld [vmem:[#allocation57_spill] sm:$0xff] }
  0x84   :  { %v1519_v1 = vrot.slane %v1487_v5, 6  ;;  %v1520_v48 = vrot.slane %v1488_v10, 6  ;;  %v8155_v52 = vmul.f32 %v1513_v28, %v11336_v49  ;;  %v8158_v35 = vmul.f32 %v1514_v45, %v11337_v56 }
  0x85   :  { %v8161_v58 = vmul.f32 %v1515_v63, %v11338_v14  ;;  %v8164_v16 = vmul.f32 %v1516_v11, %v11339_v29  ;;  %v8167_v38 = vmul.f32 %v1517_v26, %v11340_v20  ;;  %v8170_v47 = vmul.f32 %v1518_v44, %v11341_v62 }
  0x86   :  { %v8173_v8 = vmul.f32 %v1519_v1, %v7975_v60  ;;  %v8176_v28 = vmul.f32 %v1520_v48, %v7982_v4  ;;  %v1577_v45 = vrot.slane %v8043_v24, 6  ;;  %v1578_v53 = vrot.slane %v8046_v23, 6 }
  0x87   :  { %v1579_v5 = vrot.slane %v8049_v19, 6  ;;  %v1580_v11 = vrot.slane %v8052_v9, 6  ;;  %v1581_v26 = vrot.slane %v8055_v15, 6  ;;  %v1582_v10 = vrot.slane %v8058_v18, 6 }
  0x88   :  { %v1583_v44 = vrot.slane %v8061_v13, 6  ;;  %v1584_v1 = vrot.slane %v8064_v39, 6  ;;  %v8187_v63 = vmul.f32 %v1577_v45, %v11328_v27  ;;  %v8190_v48 = vmul.f32 %v1578_v53, %v11329_v36 }
  0x89   :  { %v8193_v3 = vmul.f32 %v1579_v5, %v11330_v46  ;;  %v8196_v54 = vmul.f32 %v1580_v11, %v11331_v57  ;;  %v8199_v6 = vmul.f32 %v1581_v26, %v11332_v25  ;;  %v8202_v43 = vmul.f32 %v1582_v10, %v11333_v30 }
  0x8a   :  { %v8205_v55 = vmul.f32 %v1583_v44, %v11334_v7  ;;  %v8208_v27 = vmul.f32 %v1584_v1, %v11335_v0  ;;  %v1625_v36 = vsub.f32 1.0, %v8043_v24  ;;  %v1626_v46 = vsub.f32 1.0, %v8046_v23 }
  0x8b   :  { %v1627_v45 = vsub.f32 1.0, %v8049_v19  ;;  %v1628_v57 = vsub.f32 1.0, %v8052_v9  ;;  %v1629_v25 = vsub.f32 1.0, %v8055_v15  ;;  %v1630_v53 = vsub.f32 1.0, %v8058_v18 }
  0x8c   :  { %v1631_v30 = vsub.f32 1.0, %v8061_v13  ;;  %v1632_v7 = vsub.f32 1.0, %v8064_v39  ;;  %v1657_v5 = vrot.slane %v1625_v36, 6  ;;  %v1658_v11 = vrot.slane %v1626_v46, 6 }
  0x8d   :  { %v1659_v0 = vrot.slane %v1627_v45, 6  ;;  %v1660_v26 = vrot.slane %v1628_v57, 6  ;;  %v1661_v10 = vrot.slane %v1629_v25, 6  ;;  %v1662_v44 = vrot.slane %v1630_v53, 6 }
  0x8e   :  { %v1663_v1 = vrot.slane %v1631_v30, 6  ;;  %v1664_v23 = vrot.slane %v1632_v7, 6  ;;  %v1689_v19 = vmul.f32 %v1657_v5, %v11336_v49  ;;  %v1690_v9 = vmul.f32 %v1658_v11, %v11337_v56 }
  0x8f   :  { %v1691_v15 = vmul.f32 %v1659_v0, %v11338_v14  ;;  %v1692_v18 = vmul.f32 %v1660_v26, %v11339_v29  ;;  %v1693_v13 = vmul.f32 %v1661_v10, %v11340_v20  ;;  %v1694_v39 = vmul.f32 %v1662_v44, %v11341_v62 }
  0x90   :  { %v1695_v36 = vmul.f32 %v1663_v1, %v7975_v60  ;;  %v1696_v46 = vmul.f32 %v1664_v23, %v7982_v4  ;;  %v1721_v45 = vrot.slane %v1689_v19, 1  ;;  %v1722_v57 = vrot.slane %v1690_v9, 1 }
  0x91   :  { %v1723_v25 = vrot.slane %v1691_v15, 1  ;;  %v1724_v53 = vrot.slane %v1692_v18, 1  ;;  %v1725_v30 = vrot.slane %v1693_v13, 1  ;;  %v1726_v49 = vrot.slane %v1694_v39, 1 }
  0x92   :  { %v1727_v7 = vrot.slane %v1695_v36, 1  ;;  %v1728_v56 = vrot.slane %v1696_v46, 1  ;;  %v1753_v14 = vmul.f32 %v1721_v45, %v8155_v52  ;;  %v1754_v29 = vmul.f32 %v1722_v57, %v8158_v35 }
  0x93   :  { %v1755_v20 = vmul.f32 %v1723_v25, %v8161_v58  ;;  %v1756_v62 = vmul.f32 %v1724_v53, %v8164_v16  ;;  %v1757_v60 = vmul.f32 %v1725_v30, %v8167_v38  ;;  %v1758_v4 = vmul.f32 %v1726_v49, %v8170_v47 }
  0x94   :  { %v1759_v23 = vmul.f32 %v1727_v7, %v8173_v8  ;;  %v1760_v19 = vmul.f32 %v1728_v56, %v8176_v28  ;;  %v1785_v9 = vrot.slane %v8187_v63, 1  ;;  %v1786_v15 = vrot.slane %v8190_v48, 1 }
  0x95   :  { %v1787_v18 = vrot.slane %v8193_v3, 1  ;;  %v1788_v13 = vrot.slane %v8196_v54, 1  ;;  %v1789_v39 = vrot.slane %v8199_v6, 1  ;;  %v1790_v5 = vrot.slane %v8202_v43, 1 }
  0x96   :  { %v1791_v11 = vrot.slane %v8205_v55, 1  ;;  %v1792_v0 = vrot.slane %v8208_v27, 1  ;;  %v1817_v26 = vmul.f32 %v1785_v9, %v8155_v52  ;;  %v1818_v10 = vmul.f32 %v1786_v15, %v8158_v35 }
  0x97   :  { %v1819_v63 = vmul.f32 %v1787_v18, %v8161_v58  ;;  %v1820_v48 = vmul.f32 %v1788_v13, %v8164_v16  ;;  %v1821_v3 = vmul.f32 %v1789_v39, %v8167_v38  ;;  %v1822_v54 = vmul.f32 %v1790_v5, %v8170_v47 }
  0x98   :  { %v1823_v6 = vmul.f32 %v1791_v11, %v8173_v8  ;;  %v1824_v43 = vmul.f32 %v1792_v0, %v8176_v28  ;;  %v1833_v44 = vadd.f32 %v1817_v26, %v1753_v14  ;;  %v1834_v55 = vadd.f32 %v1818_v10, %v1754_v29 }
  0x99   :  { %v1835_v1 = vadd.f32 %v1819_v63, %v1755_v20  ;;  %v1836_v27 = vadd.f32 %v1820_v48, %v1756_v62  ;;  %v1837_v36 = vadd.f32 %v1821_v3, %v1757_v60  ;;  %v1838_v52 = vadd.f32 %v1822_v54, %v1758_v4 }
  0x9a   :  { %v1839_v46 = vadd.f32 %v1823_v6, %v1759_v23  ;;  %v1840_v35 = vadd.f32 %v1824_v43, %v1760_v19  ;;  %v1849_v58 = vmul.f32 %v1721_v45, %v8123_v32  ;;  %v1850_v16 = vmul.f32 %v1722_v57, %v8126_v2 }
  0x9b   :  { %v1851_v38 = vmul.f32 %v1723_v25, %v8129_v22  ;;  %v1852_v47 = vmul.f32 %v1724_v53, %v8132_v37  ;;  %v1853_v8 = vmul.f32 %v1725_v30, %v8135_v41  ;;  %v1854_v28 = vmul.f32 %v1726_v49, %v8138_v61 }
  0x9c   :  { %v1855_v14 = vmul.f32 %v1727_v7, %v8141_v40  ;;  %v1856_v29 = vmul.f32 %v1728_v56, %v8144_v17  ;;  %v1865_v20 = vadd.f32 %v1849_v58, %v1833_v44  ;;  %v1866_v62 = vadd.f32 %v1850_v16, %v1834_v55 }
  0x9d   :  { %v1867_v60 = vadd.f32 %v1851_v38, %v1835_v1  ;;  %v1868_v4 = vadd.f32 %v1852_v47, %v1836_v27  ;;  %v1869_v23 = vadd.f32 %v1853_v8, %v1837_v36  ;;  %v1870_v45 = vadd.f32 %v1854_v28, %v1838_v52  ;;  %v11342_v47 = vld [vmem:[#allocation23_spill] sm:$0xff]  ;;  %v11343_v28 = vld [vmem:[#allocation26_spill] sm:$0xff] }
  0x9e   :  { %v1871_v19 = vadd.f32 %v1855_v14, %v1839_v46  ;;  %v1872_v57 = vadd.f32 %v1856_v29, %v1840_v35  ;;  %v1881_v25 = vmul.f32 %v1785_v9, %v8123_v32  ;;  %v1882_v53 = vmul.f32 %v1786_v15, %v8126_v2  ;;  %v11344_v29 = vld [vmem:[#allocation28_spill] sm:$0xff] }
  0x9f   :  { %v1883_v30 = vmul.f32 %v1787_v18, %v8129_v22  ;;  %v1884_v49 = vmul.f32 %v1788_v13, %v8132_v37  ;;  %v1885_v7 = vmul.f32 %v1789_v39, %v8135_v41  ;;  %v1886_v56 = vmul.f32 %v1790_v5, %v8138_v61 }
  0xa0   :  { %v1887_v26 = vmul.f32 %v1791_v11, %v8141_v40  ;;  %v1888_v10 = vmul.f32 %v1792_v0, %v8144_v17  ;;  %v8266_v63 = vadd.f32 %v1881_v25, %v1865_v20  ;;  %v8268_v48 = vadd.f32 %v1882_v53, %v1866_v62  ;;  %v11345_v62 = vld [vmem:[#allocation31_spill] sm:$0xff] }
  0xa1   :  { %v8270_v3 = vadd.f32 %v1883_v30, %v1867_v60  ;;  %v8272_v32 = vadd.f32 %v1884_v49, %v1868_v4  ;;  %v8274_v2 = vadd.f32 %v1885_v7, %v1869_v23  ;;  %v8276_v22 = vadd.f32 %v1886_v56, %v1870_v45  ;;  %v11346_v4 = vld [vmem:[#allocation35_spill] sm:$0xff]  ;;  %v11347_v45 = vld [vmem:[#allocation37_spill] sm:$0xff] }
  0xa2   :  { %v8278_v37 = vadd.f32 %v1887_v26, %v1871_v19  ;;  %v8280_v41 = vadd.f32 %v1888_v10, %v1872_v57  ;;  %v1929_v61 = vrot.slane %v8266_v63, 5  ;;  %v1930_v17 = vrot.slane %v8268_v48, 5  ;;  %v11348_v57 = vld [vmem:[#allocation40_spill] sm:$0xff]  ;;  %v8331_v7 = vld [vmem:[%s11028_s3 + $0x10] sm:$0xff] }
  0xa3   :  { %v1931_v40 = vrot.slane %v8270_v3, 5  ;;  %v1932_v9 = vrot.slane %v8272_v32, 5  ;;  %v1933_v15 = vrot.slane %v8274_v2, 5  ;;  %v1934_v18 = vrot.slane %v8276_v22, 5  ;;  %v8326_v49 = vld [vmem:[%s11028_s3 + $0x8] sm:$0xff] }
  0xa4   :  { %v1935_v13 = vrot.slane %v8278_v37, 5  ;;  %v1936_v39 = vrot.slane %v8280_v41, 5  ;;  %v1961_v5 = vmul.f32 %v11312_v51, %v1929_v61  ;;  %v1962_v11 = vmul.f32 %v11313_v34, %v1930_v17  ;;  %v8344_v17 = vld [vmem:[%s11028_s3 + $0x18] sm:$0xff] }
  0xa5   :  { %v1963_v0 = vmul.f32 %v11314_v42, %v1931_v40  ;;  %v1964_v54 = vmul.f32 %v11315_v31, %v1932_v9  ;;  %v1965_v6 = vmul.f32 %v11316_v12, %v1933_v15  ;;  %v1966_v43 = vmul.f32 %v11317_v33, %v1934_v18  ;;  %v8349_v40 = vld [vmem:[%s11028_s3 + $0x20] sm:$0xff]  ;;  %v8354_v9 = vld [vmem:[%s11028_s3 + $0x28] sm:$0xff] }
  0xa6   :  { %v1967_v44 = vmul.f32 %v11318_v21, %v1935_v13  ;;  %v1968_v55 = vmul.f32 %v11319_v59, %v1936_v39  ;;  %v1977_v1 = vsub.f32 1.0, %v8266_v63  ;;  %v1978_v27 = vsub.f32 1.0, %v8268_v48  ;;  %v11349_v13 = vld [vmem:[#allocation4_spill] sm:$0xff] }
  0xa7   :  { %v1979_v51 = vsub.f32 1.0, %v8270_v3  ;;  %v1980_v34 = vsub.f32 1.0, %v8272_v32  ;;  %v1981_v42 = vsub.f32 1.0, %v8274_v2  ;;  %v1982_v31 = vsub.f32 1.0, %v8276_v22 }
  0xa8   :  { %v1983_v12 = vsub.f32 1.0, %v8278_v37  ;;  %v1984_v33 = vsub.f32 1.0, %v8280_v41  ;;  %v2009_v36 = vrot.slane %v1977_v1, 5  ;;  %v2010_v21 = vrot.slane %v1978_v27, 5  ;;  %v11353_v1 = vld [vmem:[#allocation8_spill] sm:$0xff] }
  0xa9   :  { %v2011_v52 = vrot.slane %v1979_v51, 5  ;;  %v2012_v59 = vrot.slane %v1980_v34, 5  ;;  %v2013_v46 = vrot.slane %v1981_v42, 5  ;;  %v2014_v35 = vrot.slane %v1982_v31, 5  ;;  %v11354_v51 = vld [vmem:[#allocation9_spill] sm:$0xff]  ;;  %v11355_v42 = vld [vmem:[#allocation10_spill] sm:$0xff] }
  0xaa   :  { %v2015_v58 = vrot.slane %v1983_v12, 5  ;;  %v2016_v16 = vrot.slane %v1984_v33, 5  ;;  %v2041_v38 = vmul.f32 %v7649_v50, %v2009_v36  ;;  %v2042_v8 = vmul.f32 %v11342_v47, %v2010_v21  ;;  %v8321_v50 = vld [vmem:[%s11028_s3] sm:$0xff] }
  0xab   :  { %v2043_v14 = vmul.f32 %v11343_v28, %v2011_v52  ;;  %v2044_v20 = vmul.f32 %v11344_v29, %v2012_v59  ;;  %v2045_v60 = vmul.f32 %v11345_v62, %v2013_v46  ;;  %v2046_v23 = vmul.f32 %v11346_v4, %v2014_v35  ;;  %v11356_v12 = vld [vmem:[#allocation11_spill] sm:$0xff]  ;;  %v11358_v4 = vld [vmem:[#allocation58_spill] sm:$0xff] }
  0xac   :  { %v2047_v19 = vmul.f32 %v11347_v45, %v2015_v58  ;;  %v2048_v25 = vmul.f32 %v11348_v57, %v2016_v16  ;;  %v8314_v53 = vadd.f32 %v2041_v38, %v1961_v5  ;;  %v8316_v30 = vadd.f32 %v2042_v8, %v1962_v11  ;;  %v11350_v5 = vld [vmem:[#allocation5_spill] sm:$0xff] }
  0xad   :  { %v8333_v56 = vadd.f32 %v2043_v14, %v1963_v0  ;;  %v8335_v26 = vadd.f32 %v2044_v20, %v1964_v54  ;;  %v8337_v10 = vadd.f32 %v2045_v60, %v1965_v6  ;;  %v8339_v61 = vadd.f32 %v2046_v23, %v1966_v43  ;;  %v8367_v0 = vld [vmem:[%s11028_s3 + $0x30] sm:$0xff]  ;;  %v8372_v54 = vld [vmem:[%s11028_s3 + $0x38] sm:$0xff] }
  0xae   :  { %v8356_v15 = vadd.f32 %v2047_v19, %v1967_v44  ;;  %v8358_v18 = vadd.f32 %v2048_v25, %v1968_v55  ;;  %v2073_v39 = vmul.f32 %v11349_v13, %v8321_v50  ;;  %v2074_v11 = vmul.f32 %v11350_v5, %v8326_v49  ;;  %v11351_v6 = vld [vmem:[#allocation6_spill] sm:$0xff]  ;;  %v11352_v44 = vld [vmem:[#allocation7_spill] sm:$0xff]  ;;  %v11361_v25 = vld [vmem:[#allocation60_spill] sm:$0xff] }
  0xaf   :  { %v2075_v43 = vmul.f32 %v11351_v6, %v8331_v7  ;;  %v2076_v55 = vmul.f32 %v11352_v44, %v8344_v17  ;;  %v2077_v27 = vmul.f32 %v11353_v1, %v8349_v40  ;;  %v2078_v34 = vmul.f32 %v11354_v51, %v8354_v9  ;;  %v11360_v19 = vld [vmem:[#allocation59_spill] sm:$0xff] }
  0xb0   :  { %v2079_v31 = vmul.f32 %v11355_v42, %v8367_v0  ;;  %v2080_v33 = vmul.f32 %v11356_v12, %v8372_v54  ;;  %v2105_v36 = vcombine.low %v2073_v39, %v2074_v11  ;;  %v7369_v59 = vmov 1966171168   ;;  %v11362_v39 = vld [vmem:[#allocation61_spill] sm:$0xff]  ;;  %v11363_v11 = vld [vmem:[#allocation62_spill] sm:$0xff] }
  0xb1   :  { %v2106_v21 = vcombine.low %v2075_v43, %v2076_v55  ;;  %v2107_v52 = vcombine.low %v2077_v27, %v2078_v34  ;;  %v2110_v46 = vunpack.c.l.s4 %v7369_v59  ;;  %v2112_v35 = vlaneseq  ;;  %v11364_v43 = vld [vmem:[#allocation63_spill] sm:$0xff]  ;;  %v11365_v55 = vld [vmem:[#allocation64_spill] sm:$0xff]  ;;  %v11366_v27 = vld [vmem:[#allocation65_spill] sm:$0xff] }
  0xb2   :  { %v2108_v58 = vcombine.low %v2079_v31, %v2080_v33  ;;  %v2268_v16 = vrot.slane %v8321_v50, 2  ;;  %v2269_v38 = vrot.slane %v8326_v49, 2  ;;  %v2270_v47 = vrot.slane %v8331_v7, 2 }
  0xb3   :  { %v2111_v8 = vunpack.c.0.s8 %v2110_v46  ;;  %v8389_v28 = vshrl.u32 %v2112_v35, 7  ;;  %v2271_v14 = vrot.slane %v8344_v17, 2  ;;  %v2272_v29 = vrot.slane %v8349_v40, 2 }
  0xb4   :  { %v2273_v20 = vrot.slane %v8354_v9, 2  ;;  %v2274_v62 = vrot.slane %v8367_v0, 2  ;;  %v2275_v60 = vrot.slane %v8372_v54, 2  ;;  %v2300_v23 = vmul.f32 %v2268_v16, %v11358_v4 }
  0xb5   :  { %11357 = vst [vmem:[#allocation19_spill] sm:$0xff] %v8389_v28  ;;  %v8398_v45 = vsub.s32 %v2111_v8, %v8389_v28  ;;  %v2301_v57 = vmul.f32 %v2269_v38, %v11360_v19  ;;  %v2302_v13 = vmul.f32 %v2270_v47, %v11361_v25  ;;  %v2303_v5 = vmul.f32 %v2271_v14, %v11362_v39 }
  0xb6   :  { %v2304_v6 = vmul.f32 %v2272_v29, %v11363_v11  ;;  %v2305_v44 = vmul.f32 %v2273_v20, %v11364_v43  ;;  %v2306_v1 = vmul.f32 %v2274_v62, %v11365_v55  ;;  %v2307_v51 = vmul.f32 %v2275_v60, %v11366_v27 }
  0xb7   :  { %11359 = vst [vmem:[#allocation32_spill] sm:$0xff] %v8398_v45  ;;  %v2115_v34 = vrot.slane %v2105_v36, %v8398_v45  ;;  %v2122_v42 = vrot.slane %v2106_v21, %v8398_v45  ;;  %v2129_v31 = vrot.slane %v2107_v52, %v8398_v45  ;;  %v2136_v12 = vrot.slane %v2108_v58, %v8398_v45 }
  0xb8   :  { %v2332_v33 = vcombine.low %v2300_v23, %v2301_v57  ;;  %v2333_v59 = vcombine.low %v2302_v13, %v2303_v5  ;;  %v2334_v46 = vcombine.low %v2304_v6, %v2305_v44  ;;  %v2335_v35 = vcombine.low %v2306_v1, %v2307_v51  ;;  %v11367_v1 = vld [vmem:[#allocation30_spill] sm:$0xff]  ;;  %v11368_v51 = vld [vmem:[#allocation12_spill] sm:$0xff] }
  0xb9   :  { %v2137_v16 = vcombine.low %v2115_v34, %v2122_v42  ;;  %v2138_v38 = vcombine.low %v2129_v31, %v2136_v12  ;;  %v2210_v47 = vcombine.high %v2115_v34, %v2122_v42  ;;  %v2211_v8 = vcombine.high %v2129_v31, %v2136_v12  ;;  %v11369_v31 = vld [vmem:[#allocation13_spill] sm:$0xff] }
  0xba   :  { %v2342_v14 = vrot.slane %v2332_v33, %v8398_v45  ;;  %v2349_v29 = vrot.slane %v2333_v59, %v8398_v45  ;;  %v2356_v36 = vrot.slane %v2334_v46, %v8398_v45  ;;  %v2363_v21 = vrot.slane %v2335_v35, %v8398_v45  ;;  %v11370_v33 = vld [vmem:[#allocation14_spill] sm:$0xff]  ;;  %v11371_v46 = vld [vmem:[#allocation15_spill] sm:$0xff] }
  0xbb   :  { %v2145_v52 = vrot.slane %v2137_v16, %v8398_v45  ;;  %v2152_v58 = vrot.slane %v2138_v38, %v8398_v45  ;;  %v2218_v20 = vrot.slane %v2210_v47, %v8398_v45  ;;  %v2225_v62 = vrot.slane %v2211_v8, %v8398_v45  ;;  %v11372_v16 = vld [vmem:[#allocation16_spill] sm:$0xff]  ;;  %v11373_v47 = vld [vmem:[#allocation17_spill] sm:$0xff] }
  0xbc   :  { %v2364_v60 = vcombine.low %v2342_v14, %v2349_v29  ;;  %v2365_v4 = vcombine.low %v2356_v36, %v2363_v21  ;;  %v2438_v23 = vrot.slane %v8321_v50, 1  ;;  %v2439_v19 = vrot.slane %v8326_v49, 1  ;;  %v11374_v14 = vld [vmem:[#allocation18_spill] sm:$0xff] }
  0xbd   :  { %v2153_v57 = vcombine.low %v2145_v52, %v2152_v58  ;;  %v2226_v25 = vcombine.low %v2218_v20, %v2225_v62  ;;  %v2440_v13 = vrot.slane %v8331_v7, 1  ;;  %v2441_v39 = vrot.slane %v8344_v17, 1  ;;  %v11375_v58 = vld [vmem:[#allocation20_spill] sm:$0xff]  ;;  %v11376_v62 = vld [vmem:[#allocation21_spill] sm:$0xff] }
  0xbe   :  { %v2372_v5 = vrot.slane %v2364_v60, %v8398_v45  ;;  %v2379_v11 = vrot.slane %v2365_v4, %v8398_v45  ;;  %v2442_v6 = vrot.slane %v8349_v40, 1  ;;  %v2443_v43 = vrot.slane %v8354_v9, 1 }
  0xbf   :  { %2205 = vst [vmem:[#allocation2] ss:$8 sm:$0xf] %v2153_v57  ;;  %2247 = vst [vmem:[#allocation2 + $0x1] ss:$8 sm:$0xf] %v2226_v25  ;;  %v2470_v27 = vmul.f32 %v2438_v23, %v11367_v1  ;;  %v2471_v34 = vmul.f32 %v2439_v19, %v11368_v51  ;;  %v2472_v12 = vmul.f32 %v2440_v13, %v11369_v31 }
  0xc0   :  { %v2444_v44 = vrot.slane %v8367_v0, 1  ;;  %v2445_v55 = vrot.slane %v8372_v54, 1  ;;  %2206 = vst [vmem:[#allocation2] ss:$8 sm:$0xf0] %v2153_v57  ;;  %v2380_v42 = vcombine.low %v2372_v5, %v2379_v11  ;;  %v2473_v59 = vmul.f32 %v2441_v39, %v11370_v33  ;;  %v11377_v5 = vld [vmem:[#allocation22_spill] sm:$0xff] }
  0xc1   :  { %2248 = vst [vmem:[#allocation2 + $0x1] ss:$8 sm:$0xf0] %v2226_v25  ;;  %v2474_v35 = vmul.f32 %v2442_v6, %v11371_v46  ;;  %v2475_v38 = vmul.f32 %v2443_v43, %v11372_v16  ;;  %v2502_v36 = vcombine.low %v2470_v27, %v2471_v34  ;;  %v2608_v52 = vmul.f32 %v2438_v23, %v8043_v24  ;;  %v11378_v51 = vld [vmem:[#allocation24_spill] sm:$0xff]  ;;  %v11379_v27 = vld [vmem:[#allocation25_spill] sm:$0xff] }
  0xc2   :  { %v2476_v8 = vmul.f32 %v2444_v44, %v11373_v47  ;;  %v2477_v29 = vmul.f32 %v2445_v55, %v11374_v14  ;;  %2433 = vst [vmem:[#allocation2 + $0x2] ss:$8 sm:$0xf] %v2380_v42  ;;  %v2503_v21 = vcombine.low %v2472_v12, %v2473_v59  ;;  %v2609_v20 = vmul.f32 %v2439_v19, %v11375_v58  ;;  %v11380_v12 = vld [vmem:[#allocation27_spill] sm:$0xff]  ;;  %v11381_v46 = vld [vmem:[#allocation29_spill] sm:$0xff] }
  0xc3   :  { %v2610_v60 = vmul.f32 %v2440_v13, %v11376_v62  ;;  %2434 = vst [vmem:[#allocation2 + $0x2] ss:$8 sm:$0xf0] %v2380_v42  ;;  %v2504_v4 = vcombine.low %v2474_v35, %v2475_v38  ;;  %v2512_v25 = vrot.slane %v2502_v36, %v8398_v45  ;;  %v2611_v11 = vmul.f32 %v2441_v39, %v11377_v5 }
  0xc4   :  { %v2505_v57 = vcombine.low %v2476_v8, %v2477_v29  ;;  %v2519_v1 = vrot.slane %v2503_v21, %v8398_v45  ;;  %v2612_v31 = vmul.f32 %v2442_v6, %v11378_v51  ;;  %v2613_v34 = vmul.f32 %v2443_v43, %v11379_v27  ;;  %v11382_v27 = vld [vmem:[#allocation33_spill] sm:$0xff] }
  0xc5   :  { %v2614_v33 = vmul.f32 %v2444_v44, %v11380_v12  ;;  %v2526_v24 = vrot.slane %v2504_v4, %v8398_v45  ;;  %v2615_v42 = vmul.f32 %v2445_v55, %v11381_v46  ;;  %v2640_v35 = vcombine.low %v2608_v52, %v2609_v20 }
  0xc6   :  { %v2533_v59 = vrot.slane %v2505_v57, %v8398_v45  ;;  %v2534_v16 = vcombine.low %v2512_v25, %v2519_v1  ;;  %v2641_v38 = vcombine.low %v2610_v60, %v2611_v11  ;;  %v2642_v47 = vcombine.low %v2612_v31, %v2613_v34  ;;  %v11385_v34 = vld [vmem:[#allocation38_spill] sm:$0xff] }
  0xc7   :  { %v2746_v8 = vmul.f32 %v2438_v23, %v8266_v63  ;;  %v2643_v29 = vcombine.low %v2614_v33, %v2615_v42  ;;  %v2650_v36 = vrot.slane %v2640_v35, %v8398_v45  ;;  %v2747_v21 = vmul.f32 %v2439_v19, %v8268_v48  ;;  %v11387_v42 = vld [vmem:[#allocation45_spill] sm:$0xff] }
  0xc8   :  { %v2535_v14 = vcombine.low %v2526_v24, %v2533_v59  ;;  %v2542_v58 = vrot.slane %v2534_v16, %v8398_v45  ;;  %v2657_v62 = vrot.slane %v2641_v38, %v8398_v45  ;;  %v2664_v4 = vrot.slane %v2642_v47, %v8398_v45  ;;  %v11386_v59 = vld [vmem:[#allocation41_spill] sm:$0xff]  ;;  %v11388_v38 = vld [vmem:[#allocation46_spill] sm:$0xff] }
  0xc9   :  { %v2748_v57 = vmul.f32 %v2440_v13, %v8270_v3  ;;  %v2671_v20 = vrot.slane %v2643_v29, %v8398_v45  ;;  %v2749_v63 = vmul.f32 %v2441_v39, %v8272_v32  ;;  %v2750_v23 = vmul.f32 %v2442_v6, %v8274_v2 }
  0xca   :  { %v2549_v52 = vrot.slane %v2535_v14, %v8398_v45  ;;  %v2672_v60 = vcombine.high %v2650_v36, %v2657_v62  ;;  %v2751_v25 = vmul.f32 %v2443_v43, %v8276_v22  ;;  %v2752_v48 = vmul.f32 %v2444_v44, %v8278_v37  ;;  %v11384_v44 = vld [vmem:[#allocation36_spill] sm:$0xff] }
  0xcb   :  { %v2753_v19 = vmul.f32 %v2445_v55, %v8280_v41  ;;  %v2673_v11 = vcombine.high %v2664_v4, %v2671_v20  ;;  %v2778_v1 = vcombine.high %v2746_v8, %v2747_v21  ;;  %v2779_v51 = vcombine.high %v2748_v57, %v2749_v63  ;;  %v11383_v41 = vld [vmem:[#allocation34_spill] sm:$0xff]  ;;  %v11389_v8 = vld [vmem:[#allocation47_spill] sm:$0xff] }
  0xcc   :  { %v2550_v5 = vcombine.high %v2542_v58, %v2549_v52  ;;  %v2680_v3 = vrot.slane %v2672_v60, %v8398_v45  ;;  %v2780_v13 = vcombine.high %v2750_v23, %v2751_v25  ;;  %v2884_v32 = vmul.f32 %v11382_v27, %v8321_v50 }
  0xcd   :  { %v2781_v31 = vcombine.high %v2752_v48, %v2753_v19  ;;  %v2687_v2 = vrot.slane %v2673_v11, %v8398_v45  ;;  %v2788_v22 = vrot.slane %v2778_v1, %v8398_v45  ;;  %v2795_v37 = vrot.slane %v2779_v51, %v8398_v45  ;;  %v395_v51 = vld [vmem:[%s11027_s4] sm:$0xff] }
  0xce   :  { %2603 = vst [vmem:[#allocation2 + $0x3] ss:$8 sm:$0xf] %v2550_v5  ;;  %v2885_v39 = vmul.f32 %v11383_v41, %v8326_v49  ;;  %2604 = vst [vmem:[#allocation2 + $0x3] ss:$8 sm:$0xf0] %v2550_v5  ;;  %v2802_v6 = vrot.slane %v2780_v13, %v8398_v45  ;;  %v2886_v55 = vmul.f32 %v11384_v44, %v8331_v7 }
  0xcf   :  { %v2809_v43 = vrot.slane %v2781_v31, %v8398_v45  ;;  %v2887_v12 = vmul.f32 %v11385_v34, %v8344_v17  ;;  %v2688_v33 = vcombine.high %v2680_v3, %v2687_v2  ;;  %v2810_v24 = vcombine.low %v2788_v22, %v2795_v37  ;;  %v11390_v13 = vld [vmem:[#allocation43_spill] sm:$0xff]  ;;  %v401_v34 = vld [vmem:[%s11027_s4 + $0x30] sm:$0xff] }
  0xd0   :  { %v2888_v46 = vmul.f32 %v11386_v59, %v8349_v40  ;;  %v2889_v35 = vmul.f32 %v11387_v42, %v8354_v9  ;;  %v2890_v47 = vmul.f32 %v11388_v38, %v8367_v0  ;;  %v2891_v14 = vmul.f32 %v11389_v8, %v8372_v54  ;;  %v51_v59 = vld [vmem:[%s11024_s0 + $0x40] sm:$0xff] }
  0xd1   :  { %v2811_v16 = vcombine.low %v2802_v6, %v2809_v43  ;;  %v2916_v29 = vcombine.high %v2884_v32, %v2885_v39  ;;  %2741 = vst [vmem:[#allocation2 + $0x4] ss:$8 sm:$0xf] %v2688_v33  ;;  %v2818_v36 = vrot.slane %v2810_v24, %v8398_v45  ;;  %v2917_v21 = vcombine.high %v2886_v55, %v2887_v12  ;;  %v402_v6 = vld [vmem:[%s11027_s4 + $0x38] sm:$0xff]  ;;  %v399_v55 = vld [vmem:[%s11027_s4 + $0x20] sm:$0xff] }
  0xd2   :  { %v2918_v58 = vcombine.high %v2888_v46, %v2889_v35  ;;  %v3022_v62 = vmul.f32 %v8314_v53, %v8321_v50  ;;  %2742 = vst [vmem:[#allocation2 + $0x4] ss:$8 sm:$0xf0] %v2688_v33  ;;  %v2919_v57 = vcombine.high %v2890_v47, %v2891_v14  ;;  %v3023_v20 = vmul.f32 %v8316_v30, %v8326_v49  ;;  %v398_v30 = vld [vmem:[%s11027_s4 + $0x18] sm:$0xff]  ;;  %v53_v14 = vld [vmem:[%s11024_s0 + $0x50] sm:$0xff] }
  0xd3   :  { %v2825_v4 = vrot.slane %v2811_v16, %v8398_v45  ;;  %v2926_v52 = vrot.slane %v2916_v29, %v8398_v45  ;;  %v2933_v63 = vrot.slane %v2917_v21, %v8398_v45  ;;  %v3024_v60 = vmul.f32 %v8333_v56, %v8331_v7  ;;  %v52_v16 = vld [vmem:[%s11024_s0 + $0x48] sm:$0xff] }
  0xd4   :  { %v2940_v23 = vrot.slane %v2918_v58, %v8398_v45  ;;  %v3025_v25 = vmul.f32 %v8335_v26, %v8344_v17  ;;  %v2947_v48 = vrot.slane %v2919_v57, %v8398_v45  ;;  %v3026_v19 = vmul.f32 %v8337_v10, %v8349_v40  ;;  %v55_v58 = vld [vmem:[%s11024_s0 + $0x60] sm:$0xff] }
  0xd5   :  { %v2826_v53 = vcombine.low %v2818_v36, %v2825_v4  ;;  %v3027_v5 = vmul.f32 %v8339_v61, %v8354_v9  ;;  %v2948_v11 = vcombine.low %v2926_v52, %v2933_v63  ;;  %v3028_v56 = vmul.f32 %v8356_v15, %v8367_v0  ;;  %v397_v15 = vld [vmem:[%s11027_s4 + $0x10] sm:$0xff]  ;;  %v54_v36 = vld [vmem:[%s11024_s0 + $0x58] sm:$0xff]  ;;  %v56_v63 = vld [vmem:[%s11024_s0 + $0x68] sm:$0xff] }
  0xd6   :  { %v3029_v26 = vmul.f32 %v8358_v18, %v8372_v54  ;;  %v3054_v1 = vcombine.high %v3022_v62, %v3023_v20  ;;  %v2949_v10 = vcombine.low %v2940_v23, %v2947_v48  ;;  %v3055_v3 = vcombine.high %v3024_v60, %v3025_v25 }
  0xd7   :  { %2879 = vst [vmem:[#allocation2 + $0x5] ss:$8 sm:$0xf] %v2826_v53  ;;  %v3056_v61 = vcombine.high %v3026_v19, %v3027_v5  ;;  %v8515_v31 = vmul.f32 %v11390_v13, %v8326_v49  ;;  %2880 = vst [vmem:[#allocation2 + $0x5] ss:$8 sm:$0xf0] %v2826_v53  ;;  %v2956_v18 = vrot.slane %v2948_v11, %v8398_v45 }
  0xd8   :  { %v3057_v27 = vcombine.high %v3028_v56, %v3029_v26  ;;  %v3064_v32 = vrot.slane %v3054_v1, %v8398_v45  ;;  %v6147_v2 = vmul.f32 -1.442695, %v398_v30  ;;  %v2963_v22 = vrot.slane %v2949_v10, %v8398_v45  ;;  %v400_v49 = vld [vmem:[%s11027_s4 + $0x28] sm:$0xff]  ;;  %v57_v11 = vld [vmem:[%s11024_s0 + $0x70] sm:$0xff] }
  0xd9   :  { %v3071_v37 = vrot.slane %v3055_v3, %v8398_v45  ;;  %v3078_v41 = vrot.slane %v3056_v61, %v8398_v45  ;;  %v6144_v39 = vmul.f32 -1.442695, %v395_v51  ;;  %v6146_v44 = vmul.f32 -1.442695, %v397_v15  ;;  %v58_v51 = vld [vmem:[%s11024_s0 + $0x78] sm:$0xff] }
  0xda   :  { %v3085_v43 = vrot.slane %v3057_v27, %v8398_v45  ;;  %6587 = vpow2.f32 %v6147_v2  ;;  %v2964_v12 = vcombine.high %v2956_v18, %v2963_v22  ;;  %v11119_v24 = vmov 0.0  }
  0xdb   :  { %v3086_v33 = vcombine.high %v3064_v32, %v3071_v37  ;;  %6589 = vpow2.f32 %v6144_v39  ;;  %3369 = vmatprep.mubr.f32.mxu0 %v11119_v24  ;;  %3482 = vmatprep.mubr.f32.mxu1 %v11119_v24  ;;  %v6149_v42 = vmul.f32 -1.442695, %v400_v49  ;;  %v6151_v35 = vmul.f32 -1.442695, %v402_v6  ;;  %v163_v6 = vld [vmem:[%s11025_s1 + $0x40] sm:$0xff] }
  0xdc   :  { %v3087_v46 = vcombine.high %v3078_v41, %v3085_v43  ;;  %6591 = vpow2.f32 %v6146_v44  ;;  %3017 = vst [vmem:[#allocation2 + $0x6] ss:$8 sm:$0xf] %v2964_v12  ;;  %3018 = vst [vmem:[#allocation2 + $0x6] ss:$8 sm:$0xf0] %v2964_v12 }
  0xdd   :  { %v3094_v38 = vrot.slane %v3086_v33, %v8398_v45  ;;  %v6148_v47 = vmul.f32 -1.442695, %v399_v55  ;;  %v6150_v8 = vmul.f32 -1.442695, %v401_v34  ;;  %6593 = vpow2.f32 %v6149_v42  ;;  %v164_v33 = vld [vmem:[%s11025_s1 + $0x48] sm:$0xff] }
  0xde   :  { %v3101_v29 = vrot.slane %v3087_v46, %v8398_v45  ;;  %v6104_v21 = vmul.f32 -1.442695, %v51_v59  ;;  %6595 = vpow2.f32 %v6151_v35  ;;  %v6105_v62 = vmul.f32 -1.442695, %v52_v16  ;;  %v165_v35 = vld [vmem:[%s11025_s1 + $0x50] sm:$0xff] }
  0xdf   :  { %6597 = vpow2.f32 %v6148_v47  ;;  %v6106_v57 = vmul.f32 -1.442695, %v53_v14  ;;  %v6107_v52 = vmul.f32 -1.442695, %v54_v36  ;;  %v6108_v20 = vmul.f32 -1.442695, %v55_v58 }
  0xe0   :  { %v3102_v4 = vcombine.high %v3094_v38, %v3101_v29  ;;  %6599 = vpow2.f32 %v6150_v8  ;;  %v6109_v19 = vmul.f32 -1.442695, %v56_v63  ;;  %v6110_v18 = vmul.f32 -1.442695, %v57_v11  ;;  %v166_v14 = vld [vmem:[%s11025_s1 + $0x58] sm:$0xff] }
  0xe1   :  { %6601 = vpow2.f32 %v6104_v21  ;;  %v6111_v2 = vmul.f32 -1.442695, %v58_v51  ;;  %v6120_v16 = vmul.f32 -1.442695, %v163_v6  ;;  %v167_v21 = vld [vmem:[%s11025_s1 + $0x60] sm:$0xff]  ;;  %vm3280_vm0 = vcmask 130048  }
  0xe2   :  { %3155 = vst [vmem:[#allocation2 + $0x7] ss:$8 sm:$0xf] %v3102_v4  ;;  %3156 = vst [vmem:[#allocation2 + $0x7] ss:$8 sm:$0xf0] %v3102_v4  ;;  %6603 = vpow2.f32 %v6105_v62 }
  0xe3   :  { %6605 = vpow2.f32 %v6106_v57  ;;  %v6121_v58 = vmul.f32 -1.442695, %v164_v33 }
  0xe4   :  { %v6588_v23 = vpop.eup %6587  ;;  %6607 = vpow2.f32 %v6107_v52  ;;  %v6122_v52 = vmul.f32 -1.442695, %v165_v35  ;;  %v278_v35 = vld [vmem:[%s11026_s2 + $0x58] sm:$0xff] }
  0xe5   :  { %v6590_v60 = vpop.eup %6589  ;;  %v462_v25 = vadd.f32 1.0, %v6588_v23  ;;  %6609 = vpow2.f32 %v6108_v20 }
  0xe6   :  { %v6592_v53 = vpop.eup %6591  ;;  %v459_v48 = vadd.f32 1.0, %v6590_v60 }
  0xe7   :  { %6611 = vrcp.f32 %v462_v25  ;;  %v461_v5 = vadd.f32 1.0, %v6592_v53  ;;  %v6594_v30 = vpop.eup %6593  ;;  %v8589_v53 = vld [vmem:[%s11029_s6] sm:$0xff] }
  0xe8   :  { %6613 = vrcp.f32 %v459_v48  ;;  %v6596_v56 = vpop.eup %6595  ;;  %v464_v1 = vadd.f32 1.0, %v6594_v30 }
  0xe9   :  { %v3201_v26 = vld [vmem:[#allocation2 + $0x8] sm:$0xff]  ;;  %6615 = vrcp.f32 %v461_v5  ;;  %v6598_v10 = vpop.eup %6597  ;;  %v466_v61 = vadd.f32 1.0, %v6596_v56  ;;  %v3203_v34 = vld [vmem:[#allocation2 + $0x18] sm:$0xff]  ;;  %v3200_v42 = vld [vmem:[#allocation2] sm:$0xff] }
  0xea   :  { %v6354_v3 = vpack.c.bf16 %v8515_v31, %v3201_v26  ;;  %6617 = vpow2.f32 %v6109_v19  ;;  %v6600_v13 = vpop.eup %6599  ;;  %v463_v15 = vadd.f32 1.0, %v6598_v10  ;;  %v3202_v8 = vld [vmem:[#allocation2 + $0x10] sm:$0xff]  ;;  %v3205_v57 = vld [vmem:[#allocation2 + $0x28] sm:$0xff]  ;;  %v3207_v60 = vld [vmem:[#allocation2 + $0x38] sm:$0xff] }
  0xeb   :  { %6619 = vrcp.f32 %v464_v1  ;;  %v6602_v27 = vpop.eup %6601  ;;  %v465_v32 = vadd.f32 1.0, %v6600_v13  ;;  %v3204_v19 = vld [vmem:[#allocation2 + $0x20] sm:$0xff]  ;;  %v168_v5 = vld [vmem:[%s11025_s1 + $0x68] sm:$0xff]  ;;  %v3206_v26 = vld [vmem:[#allocation2 + $0x30] sm:$0xff] }
  0xec   :  { %6355 = vmatprep.subr.bf16.mxu0 %v6354_v3  ;;  %6621 = vrcp.f32 %v466_v61  ;;  %v6604_v22 = vpop.eup %6603  ;;  %v115_v37 = vadd.f32 1.0, %v6602_v27  ;;  %v169_v1 = vld [vmem:[%s11025_s1 + $0x70] sm:$0xff]  ;;  %v170_v3 = vld [vmem:[%s11025_s1 + $0x78] sm:$0xff] }
  0xed   :  { %6623 = vrcp.f32 %v463_v15  ;;  %v6606_v41 = vpop.eup %6605  ;;  %v116_v39 = vadd.f32 1.0, %v6604_v22  ;;  %v6125_v15 = vmul.f32 -1.442695, %v168_v5  ;;  %v6126_v22 = vmul.f32 -1.442695, %v169_v1 }
  0xee   :  { %6625 = vrcp.f32 %v465_v32  ;;  %v6608_v49 = vpop.eup %6607  ;;  %v117_v31 = vadd.f32 1.0, %v6606_v41  ;;  %v8615_v32 = vld [vmem:[%s11029_s6 + $0x8] sm:$0xff] }
  0xef   :  { %6627 = vpow2.f32 %v6110_v18  ;;  %v6610_v43 = vpop.eup %6609  ;;  %v118_v44 = vadd.f32 1.0, %v6608_v49  ;;  %v275_v18 = vld [vmem:[%s11026_s2 + $0x40] sm:$0xff] }
  0xf0   :  { %6629 = vpow2.f32 %v6111_v2  ;;  %v119_v12 = vadd.f32 1.0, %v6610_v43  ;;  %v6136_v6 = vmul.f32 -1.442695, %v275_v18 }
  0xf1   :  { %v6612_v55 = vpop.eup %6611  ;;  %6631 = vrcp.f32 %v115_v37  ;;  %v276_v37 = vld [vmem:[%s11026_s2 + $0x48] sm:$0xff] }
  0xf2   :  { %v6614_v59 = vpop.eup %6613  ;;  %v3163_v46 = vmul.f32 %v6612_v55, %v8344_v17  ;;  %6633 = vrcp.f32 %v116_v39  ;;  %v6127_v39 = vmul.f32 -1.442695, %v170_v3 }
  0xf3   :  { %v6616_v38 = vpop.eup %6615  ;;  %v3160_v47 = vmul.f32 %v6614_v59, %v8321_v50  ;;  %6635 = vrcp.f32 %v117_v31  ;;  %v277_v31 = vld [vmem:[%s11026_s2 + $0x50] sm:$0xff] }
  0xf4   :  { %v6618_v29 = vpop.eup %6617  ;;  %v6358_v36 = vpack.c.bf16 %v3163_v46, %v3203_v34  ;;  %v3162_v17 = vmul.f32 %v6616_v38, %v8331_v7  ;;  %6637 = vrcp.f32 %v118_v44  ;;  %v6123_v7 = vmul.f32 -1.442695, %v166_v14  ;;  %v8641_v34 = vld [vmem:[%s11029_s6 + $0x10] sm:$0xff]  ;;  %v280_v14 = vld [vmem:[%s11026_s2 + $0x68] sm:$0xff] }
  0xf5   :  { %v6620_v62 = vpop.eup %6619  ;;  %v6356_v4 = vpack.c.bf16 %v3160_v47, %v3200_v42  ;;  %v120_v50 = vadd.f32 1.0, %v6618_v29  ;;  %6639 = vrcp.f32 %v119_v12  ;;  %v6137_v44 = vmul.f32 -1.442695, %v276_v37  ;;  %v8660_v47 = vld [vmem:[%s11029_s6 + $0x18] sm:$0xff]  ;;  %v281_v29 = vld [vmem:[%s11026_s2 + $0x70] sm:$0xff] }
  0xf6   :  { %v6622_v20 = vpop.eup %6621  ;;  %6359 = vmatprep.subr.bf16.mxu1 %v6358_v36  ;;  %v6360_v63 = vpack.c.bf16 %v3162_v17, %v3202_v8  ;;  %v3165_v23 = vmul.f32 %v6620_v62, %v8354_v9  ;;  %6641 = vpow2.f32 %v6120_v16  ;;  %v6124_v9 = vmul.f32 -1.442695, %v167_v21  ;;  %v279_v16 = vld [vmem:[%s11026_s2 + $0x60] sm:$0xff]  ;;  %v282_v21 = vld [vmem:[%s11026_s2 + $0x78] sm:$0xff] }
  0xf7   :  { %v6624_v25 = vpop.eup %6623  ;;  %6357 = vmatpush1.bf16.msra.mxu0 %v6356_v4  ;;  %v3167_v48 = vmul.f32 %v6622_v20, %v8372_v54  ;;  %6643 = vrcp.f32 %v120_v50  ;;  %v6138_v33 = vmul.f32 -1.442695, %v277_v31  ;;  %v6140_v50 = vmul.f32 -1.442695, %v279_v16 }
  0xf8   :  { %v6626_v30 = vpop.eup %6625  ;;  %6361 = vmatpush1.bf16.msra.mxu1 %v6360_v63  ;;  %v6362_v11 = vpack.c.bf16 %v3165_v23, %v3205_v57  ;;  %v3164_v56 = vmul.f32 %v6624_v25, %v8349_v40  ;;  %6645 = vpow2.f32 %v6121_v58  ;;  %v404_v58 = vld [vmem:[%s11027_s4 + $0x48] sm:$0xff]  ;;  %v6139_v57 = vmul.f32 -1.442695, %v278_v35 }
  0xf9   :  { %v6628_v51 = vpop.eup %6627  ;;  %v6366_v54 = vpack.c.bf16 %v3167_v48, %v3207_v60  ;;  %v3166_v10 = vmul.f32 %v6626_v30, %v8367_v0  ;;  %6647 = vpow2.f32 %v6122_v52  ;;  %v6141_v63 = vmul.f32 -1.442695, %v280_v14 }
  0xfa   :  { %v6630_v61 = vpop.eup %6629  ;;  %6162 = vmatmul.mubr.msk.f32.vlgmr.msra.gmra.mrb[0].mxu0 %vm3280_vm0, %v8589_v53  ;;  %6363 = vmatprep.subr.bf16.mxu0 %v6362_v11  ;;  %v6364_v40 = vpack.c.bf16 %v3164_v56, %v3204_v19  ;;  %v121_v13 = vadd.f32 1.0, %v6628_v51  ;;  %6649 = vpow2.f32 %v6123_v7  ;;  %v6142_v23 = vmul.f32 -1.442695, %v281_v29  ;;  %v8687_v7 = vld [vmem:[%s11029_s6 + $0x20] sm:$0xff] }
  0xfb   :  { %v8608_v27 = vpop.eup %6631  ;;  %6170 = vmatmul.mubr.msk.f32.vlgmr.msra.gmra.mrb[0].mxu1 %vm3280_vm0, %v8589_v53  ;;  %6367 = vmatprep.subr.bf16.mxu1 %v6366_v54  ;;  %v6368_v0 = vpack.c.bf16 %v3166_v10, %v3206_v26  ;;  %v122_v2 = vadd.f32 1.0, %v6630_v61  ;;  %6651 = vpow2.f32 %v6124_v9  ;;  %v6143_v25 = vmul.f32 -1.442695, %v282_v21 }
  0xfc   :  { %11391 = vst [vmem:[#allocation39_spill] sm:$0xff] %v8608_v27  ;;  %v8620_v41 = vpop.eup %6633  ;;  %6365 = vmatpush1.bf16.msra.mxu0 %v6364_v40  ;;  %3375 = vmatprep.mubr.f32.mxu0 %v11119_v24  ;;  %6653 = vrcp.f32 %v121_v13  ;;  %v8689_v48 = vmul.f32 -1.442695, %v404_v58  ;;  %v545_v19 = vrot.slane %v8608_v27, 2  ;;  %v8695_v30 = vsub.f32 1.0, %v8608_v27  ;;  %v8714_v13 = vld [vmem:[%s11029_s6 + $0x28] sm:$0xff] }
  0xfd   :  { %11392 = vst [vmem:[#allocation42_spill] sm:$0xff] %v8620_v41  ;;  %v8623_v49 = vpop.eup %6635  ;;  %6369 = vmatpush1.bf16.msra.mxu1 %v6368_v0  ;;  %3488 = vmatprep.mubr.f32.mxu1 %v11119_v24  ;;  %6655 = vrcp.f32 %v122_v2  ;;  %v546_v9 = vrot.slane %v8620_v41, 2  ;;  %v1153_v11 = vrot.slane %v8608_v27, 6  ;;  %v8699_v1 = vsub.f32 1.0, %v8620_v41 }
  0xfe   :  { %11393 = vst [vmem:[#allocation44_spill] sm:$0xff] %v8623_v49  ;;  %v8629_v43 = vpop.eup %6637  ;;  %6163 = vmatmul.mubr.msk.f32.gmra.mrb[2].mxu0 %vm3280_vm0, %v8615_v32  ;;  %6657 = vpow2.f32 %v6125_v15  ;;  %v1154_v51 = vrot.slane %v8620_v41, 6  ;;  %v547_v3 = vrot.slane %v8623_v49, 2  ;;  %v8706_v61 = vsub.f32 1.0, %v8623_v49 }
  0xff   :  { %11394 = vst [vmem:[#allocation48_spill] sm:$0xff] %v8629_v43  ;;  %v8633_v55 = vpop.eup %6639  ;;  %6171 = vmatmul.mubr.msk.f32.gmra.mrb[2].mxu1 %vm3280_vm0, %v8615_v32  ;;  %3381 = vmatprep.mubr.f32.mxu0 %v11119_v24  ;;  %6659 = vpow2.f32 %v6126_v22  ;;  %v548_v18 = vrot.slane %v8629_v43, 2  ;;  %v625_v0 = vrot.slane %v8695_v30, 2  ;;  %v8721_v37 = vsub.f32 1.0, %v8629_v43 }
 0x100   :  { %11395 = vst [vmem:[#allocation49_spill] sm:$0xff] %v8633_v55  ;;  %v6642_v12 = vpop.eup %6641  ;;  %3494 = vmatprep.mubr.f32.mxu1 %v11119_v24  ;;  %6661 = vpow2.f32 %v6127_v39  ;;  %v549_v22 = vrot.slane %v8633_v55, 2  ;;  %v626_v39 = vrot.slane %v8699_v1, 2  ;;  %v1155_v35 = vrot.slane %v8623_v49, 6 }
 0x101   :  { %v8644_v59 = vpop.eup %6643  ;;  %v227_v46 = vadd.f32 1.0, %v6642_v12  ;;  %6663 = vpow2.f32 %v6136_v6  ;;  %v627_v12 = vrot.slane %v8706_v61, 2  ;;  %v1156_v21 = vrot.slane %v8629_v43, 6 }
 0x102   :  { %11396 = vst [vmem:[#allocation50_spill] sm:$0xff] %v8644_v59  ;;  %v6646_v42 = vpop.eup %6645  ;;  %6164 = vmatmul.mubr.msk.f32.gmra.mrb[4].mxu0 %vm3280_vm0, %v8641_v34  ;;  %6665 = vpow2.f32 %v6137_v44  ;;  %v8727_v44 = vsub.f32 1.0, %v8633_v55  ;;  %v550_v14 = vrot.slane %v8644_v59, 2  ;;  %v8746_v29 = vsub.f32 1.0, %v8644_v59 }
 0x103   :  { %v6648_v38 = vpop.eup %6647  ;;  %6172 = vmatmul.mubr.msk.f32.gmra.mrb[4].mxu1 %vm3280_vm0, %v8641_v34  ;;  %3387 = vmatprep.mubr.f32.mxu0 %v11119_v24  ;;  %v228_v8 = vadd.f32 1.0, %v6646_v42  ;;  %6667 = vrcp.f32 %v227_v46  ;;  %v628_v42 = vrot.slane %v8721_v37, 2 }
 0x104   :  { %v6650_v36 = vpop.eup %6649  ;;  %3500 = vmatprep.mubr.f32.mxu1 %v11119_v24  ;;  %v229_v17 = vadd.f32 1.0, %v6648_v38  ;;  %6669 = vpow2.f32 %v6138_v33  ;;  %11400 = vst [vmem:[#allocation54_spill] sm:$0xff] %v8727_v44  ;;  %v8742_v38 = vld [vmem:[%s11029_s6 + $0x30] sm:$0xff]  ;;  %11402 = vst [vmem:[#allocation56_spill] sm:$0xff] %v8746_v29 }
 0x105   :  { %v6652_v62 = vpop.eup %6651  ;;  %v230_v4 = vadd.f32 1.0, %v6650_v36  ;;  %6671 = vrcp.f32 %v228_v8 }
 0x106   :  { %v8675_v52 = vpop.eup %6653  ;;  %6165 = vmatmul.mubr.msk.f32.gmra.mrb[6].mxu0 %vm3280_vm0, %v8660_v47  ;;  %v231_v20 = vadd.f32 1.0, %v6652_v62  ;;  %6673 = vrcp.f32 %v229_v17  ;;  %v629_v17 = vrot.slane %v8727_v44, 2 }
 0x107   :  { %11397 = vst [vmem:[#allocation51_spill] sm:$0xff] %v8675_v52  ;;  %v8679_v60 = vpop.eup %6655  ;;  %6173 = vmatmul.mubr.msk.f32.gmra.mrb[6].mxu1 %vm3280_vm0, %v8660_v47  ;;  %3393 = vmatprep.mubr.f32.mxu0 %v11119_v24  ;;  %6675 = vrcp.f32 %v230_v4  ;;  %v630_v4 = vrot.slane %v8746_v29, 2 }
 0x108   :  { %11398 = vst [vmem:[#allocation52_spill] sm:$0xff] %v8679_v60  ;;  %v6658_v5 = vpop.eup %6657  ;;  %3506 = vmatprep.mubr.f32.mxu1 %v11119_v24  ;;  %6677 = vrcp.f32 %v231_v20 }
 0x109   :  { %v6660_v56 = vpop.eup %6659  ;;  %v232_v26 = vadd.f32 1.0, %v6658_v5  ;;  %6679 = vpow2.f32 %v6139_v57 }
 0x10a   :  { %v6662_v54 = vpop.eup %6661  ;;  %6166 = vmatmul.mubr.msk.f32.gmra.mrb[8].mxu0 %vm3280_vm0, %v8687_v7  ;;  %v233_v10 = vadd.f32 1.0, %v6660_v56  ;;  %6681 = vpow2.f32 %v6140_v50  ;;  %v8772_v56 = vld [vmem:[%s11029_s6 + $0x38] sm:$0xff] }
 0x10b   :  { %v6664_v40 = vpop.eup %6663  ;;  %6174 = vmatmul.mubr.msk.f32.gmra.mrb[8].mxu1 %vm3280_vm0, %v8687_v7  ;;  %3399 = vmatprep.mubr.f32.mxu0 %v11119_v24  ;;  %v234_v15 = vadd.f32 1.0, %v6662_v54  ;;  %6683 = vrcp.f32 %v232_v26  ;;  %v551_v26 = vrot.slane %v8675_v52, 2  ;;  %v8776_v54 = vsub.f32 1.0, %v8675_v52 }
 0x10c   :  { %v6666_v2 = vpop.eup %6665  ;;  %3512 = vmatprep.mubr.f32.mxu1 %v11119_v24  ;;  %6685 = vrcp.f32 %v233_v10  ;;  %v339_v6 = vadd.f32 1.0, %v6664_v40 }
 0x10d   :  { %v8724_v31 = vpop.eup %6667  ;;  %6687 = vrcp.f32 %v234_v15  ;;  %v340_v46 = vadd.f32 1.0, %v6666_v2  ;;  %v552_v2 = vrot.slane %v8679_v60, 2 }
 0x10e   :  { %11399 = vst [vmem:[#allocation53_spill] sm:$0xff] %v8724_v31  ;;  %v6670_v33 = vpop.eup %6669  ;;  %6167 = vmatmul.mubr.msk.f32.gmra.mrb[10].mxu0 %vm3280_vm0, %v8714_v13  ;;  %6689 = vpow2.f32 %v6141_v63  ;;  %vm739_vm1 = vcmp.eq.f32.partialorder %v8724_v31, inf  ;;  %v742_v63 = vand.u32 2147483648, %v8724_v31  ;;  %vm741_vm2 = vcmp.eq.f32.partialorder %v8724_v31, 0.0 }
 0x10f   :  { %v8734_v16 = vpop.eup %6671  ;;  %6175 = vmatmul.mubr.msk.f32.gmra.mrb[10].mxu1 %vm3280_vm0, %v8714_v13  ;;  %3405 = vmatprep.mubr.f32.mxu0 %v11119_v24  ;;  %6691 = vpow2.f32 %v6142_v23  ;;  %v341_v8 = vadd.f32 1.0, %v6670_v33 }
 0x110   :  { %11401 = vst [vmem:[#allocation55_spill] sm:$0xff] %v8734_v16  ;;  %v8748_v36 = vpop.eup %6673  ;;  %3518 = vmatprep.mubr.f32.mxu1 %v11119_v24  ;;  %6693 = vpow2.f32 %v6143_v25  ;;  %v578_v25 = vmul.f32 %v8734_v16, %v546_v9  ;;  %vm746_vm3 = vcmp.eq.f32.partialorder %v8734_v16, inf  ;;  %vm748_vm4 = vcmp.eq.f32.partialorder %v8734_v16, 0.0 }
 0x111   :  { %11403 = vst [vmem:[#allocation57_spill] sm:$0xff] %v8748_v36  ;;  %v8754_v62 = vpop.eup %6675  ;;  %6695 = vrcp.f32 %v339_v6  ;;  %v8783_v6 = vsub.f32 1.0, %v8679_v60  ;;  %vm753_vm5 = vcmp.eq.f32.partialorder %v8748_v36, inf  ;;  %vm755_vm6 = vcmp.eq.f32.partialorder %v8748_v36, 0.0 }
 0x112   :  { %11404 = vst [vmem:[#allocation23_spill] sm:$0xff] %v8754_v62  ;;  %v8759_v20 = vpop.eup %6677  ;;  %6168 = vmatmul.mubr.msk.f32.gmra.mrb[12].mxu0 %vm3280_vm0, %v8742_v38  ;;  %6697 = vrcp.f32 %v340_v46  ;;  %vm760_vm7 = vcmp.eq.f32.partialorder %v8754_v62, inf  ;;  %vm762_vm8 = vcmp.eq.f32.partialorder %v8754_v62, 0.0 }
 0x113   :  { %v6680_v5 = vpop.eup %6679  ;;  %6176 = vmatmul.mubr.msk.f32.gmra.mrb[12].mxu1 %vm3280_vm0, %v8742_v38  ;;  %3411 = vmatprep.mubr.f32.mxu0 %v11119_v24  ;;  %6699 = vrcp.f32 %v341_v8  ;;  %vm767_vm9 = vcmp.eq.f32.partialorder %v8759_v20, inf  ;;  %vm769_vm10 = vcmp.eq.f32.partialorder %v8759_v20, 0.0 }
 0x114   :  { %v6682_v40 = vpop.eup %6681  ;;  %3524 = vmatprep.mubr.f32.mxu1 %v11119_v24  ;;  %v342_v15 = vadd.f32 1.0, %v6680_v5  ;;  %6701 = vpow2.f32 %v8689_v48 }
 0x115   :  { %v8785_v33 = vpop.eup %6683  ;;  %v343_v46 = vadd.f32 1.0, %v6682_v40  ;;  %6703 = vrsqrt.f32 %v8724_v31  ;;  %v8805_v40 = vmul.f32 %v8724_v31, %v545_v19 }
 0x116   :  { %v8790_v23 = vpop.eup %6685  ;;  %6169 = vmatmul.mubr.msk.f32.gmra.mrb[14].mxu0 %vm3280_vm0, %v8772_v56  ;;  %6705 = vrcp.f32 %v342_v15  ;;  %v8824_v15 = vmul.f32 %v8748_v36, %v547_v3  ;;  %vm774_vm11 = vcmp.eq.f32.partialorder %v8785_v33, inf  ;;  %vm776_vm12 = vcmp.eq.f32.partialorder %v8785_v33, 0.0 }
 0x117   :  { %v8797_v50 = vpop.eup %6687  ;;  %6177 = vmatmul.mubr.msk.f32.gmra.mrb[14].mxu1 %vm3280_vm0, %v8772_v56  ;;  %3595 = vmatprep.mubr.f32.mxu0 %v11119_v24  ;;  %6707 = vrcp.f32 %v343_v46  ;;  %v8816_v46 = vmul.f32 %v8724_v31, %v1153_v11  ;;  %v8832_v11 = vmul.f32 %v8754_v62, %v548_v18  ;;  %v8845_v18 = vmul.f32 %v8759_v20, %v549_v22 }
 0x118   :  { %v6690_v5 = vpop.eup %6689  ;;  %3708 = vmatprep.mubr.f32.mxu1 %v11119_v24  ;;  %6709 = vrsqrt.f32 %v8734_v16  ;;  %vm781_vm13 = vcmp.eq.f32.partialorder %v8790_v23, inf  ;;  %vm783_vm14 = vcmp.eq.f32.partialorder %v8790_v23, 0.0 }
 0x119   :  { %11405 = vst [vmem:[#allocation26_spill] sm:$0xff] %v8816_v46  ;;  %v6692_v19 = vpop.eup %6691  ;;  %v344_v10 = vadd.f32 1.0, %v6690_v5  ;;  %6711 = vrsqrt.f32 %v8748_v36 }
 0x11a   :  { %v6694_v57 = vpop.eup %6693  ;;  %6178 = vmatmul.mubr.msk.f32.vlgmr.msra.gmra.mrb[16].mxu0 %vm3280_vm0, %v8589_v53  ;;  %v345_v58 = vadd.f32 1.0, %v6692_v19  ;;  %6713 = vrsqrt.f32 %v8754_v62 }
 0x11b   :  { %v8838_v3 = vpop.eup %6695  ;;  %6186 = vmatmul.mubr.msk.f32.vlgmr.msra.gmra.mrb[16].mxu1 %vm3280_vm0, %v8589_v53  ;;  %v346_v5 = vadd.f32 1.0, %v6694_v57  ;;  %6715 = vrcp.f32 %v344_v10  ;;  %3601 = vmatprep.mubr.f32.mxu0 %v11119_v24  ;;  %v8856_v53 = vmul.f32 %v8785_v33, %v550_v14  ;;  %v8878_v57 = vmul.f32 %v8797_v50, %v552_v2 }
 0x11c   :  { %v8851_v48 = vpop.eup %6697  ;;  %6717 = vrcp.f32 %v345_v58  ;;  %3714 = vmatprep.mubr.f32.mxu1 %v11119_v24  ;;  %v8868_v58 = vmul.f32 %v8790_v23, %v551_v26  ;;  %v657_v14 = vmul.f32 %v8838_v3, %v625_v0  ;;  %v8922_v2 = vmul.f32 %v8754_v62, %v1156_v21 }
 0x11d   :  { %11406 = vst [vmem:[#allocation28_spill] sm:$0xff] %v8851_v48  ;;  %v8863_v10 = vpop.eup %6699  ;;  %6719 = vrcp.f32 %v346_v5  ;;  %v658_v5 = vmul.f32 %v8851_v48, %v626_v39  ;;  %vm867_vm15 = vcmp.eq.f32.partialorder %v8838_v3, inf }
 0x11e   :  { %11407 = vst [vmem:[#allocation31_spill] sm:$0xff] %v8863_v10  ;;  %v6702_v19 = vpop.eup %6701  ;;  %6721 = vrsqrt.f32 %v8759_v20  ;;  %6179 = vmatmul.mubr.msk.f32.gmra.mrb[18].mxu0 %vm3280_vm0, %v8615_v32  ;;  %v659_v22 = vmul.f32 %v8863_v10, %v627_v12  ;;  %v8903_v12 = vmul.f32 %v8734_v16, %v1154_v51  ;;  %11413 = vst [vmem:[#allocation6_spill] sm:$0xff] %v8922_v2 }
 0x11f   :  { %v6704_v0 = vpop.eup %6703  ;;  %v468_v8 = vadd.f32 1.0, %v6702_v19  ;;  %6723 = vrsqrt.f32 %v8785_v33  ;;  %6187 = vmatmul.mubr.msk.f32.gmra.mrb[18].mxu1 %vm3280_vm0, %v8615_v32  ;;  %3607 = vmatprep.mubr.f32.mxu0 %v11119_v24  ;;  %v8908_v19 = vmul.f32 %v8748_v36, %v1155_v35  ;;  %v8924_v9 = vadd.f32 %v658_v5, %v578_v25 }
 0x120   :  { %v8895_v39 = vpop.eup %6705  ;;  %v738_v26 = vmul.f32 %v6704_v0, %v8724_v31  ;;  %6725 = vrsqrt.f32 %v8790_v23  ;;  %11409 = vst [vmem:[#allocation37_spill] sm:$0xff] %v8903_v12  ;;  %3720 = vmatprep.mubr.f32.mxu1 %v11119_v24  ;;  %v8914_v0 = vadd.f32 %v657_v14, %v8805_v40  ;;  %v8939_v14 = vadd.f32 %v659_v22, %v8824_v15 }
 0x121   :  { %11408 = vst [vmem:[#allocation35_spill] sm:$0xff] %v8895_v39  ;;  %11410 = vst [vmem:[#allocation40_spill] sm:$0xff] %v8908_v19  ;;  %v8911_v32 = vpop.eup %6707  ;;  %6727 = vrcp.f32 %v468_v8  ;;  %v660_v25 = vmul.f32 %v8895_v39, %v628_v42 }
 0x122   :  { %11411 = vst [vmem:[#allocation4_spill] sm:$0xff] %v8911_v32  ;;  %11412 = vst [vmem:[#allocation5_spill] sm:$0xff] %v8914_v0  ;;  %v6710_v35 = vpop.eup %6709  ;;  %v740_v8 = vsel %vm739_vm1, %v8724_v31, %v738_v26  ;;  %6729 = vrsqrt.f32 %v8797_v50  ;;  %6180 = vmatmul.mubr.msk.f32.gmra.mrb[20].mxu0 %vm3280_vm0, %v8641_v34  ;;  %v661_v40 = vmul.f32 %v8911_v32, %v629_v17  ;;  %vm790_vm1 = vcmp.eq.f32.partialorder %v8797_v50, 0.0 }
 0x123   :  { %11414 = vst [vmem:[#allocation7_spill] sm:$0xff] %v8924_v9  ;;  %v6712_v21 = vpop.eup %6711  ;;  %11415 = vst [vmem:[#allocation8_spill] sm:$0xff] %v8939_v14  ;;  %v745_v5 = vmul.f32 %v6710_v35, %v8734_v16  ;;  %6731 = vrsqrt.f32 %v8838_v3  ;;  %6188 = vmatmul.mubr.msk.f32.gmra.mrb[20].mxu1 %vm3280_vm0, %v8641_v34  ;;  %3613 = vmatprep.mubr.f32.mxu0 %v11119_v24  ;;  %v8961_v34 = vsel %vm741_vm2, %v742_v63, %v740_v8 }
 0x124   :  { %v6714_v26 = vpop.eup %6713  ;;  %v752_v42 = vmul.f32 %v6712_v21, %v8748_v36  ;;  %6733 = vrsqrt.f32 %v8851_v48  ;;  %3726 = vmatprep.mubr.f32.mxu1 %v11119_v24  ;;  %11417 = vst [vmem:[#allocation10_spill] sm:$0xff] %v8961_v34  ;;  %v11419_v63 = vand.u32 2147483648, %v8734_v16  ;;  %vm874_vm2 = vcmp.eq.f32.partialorder %v8851_v48, inf }
 0x125   :  { %v8955_v22 = vpop.eup %6715  ;;  %v747_v17 = vsel %vm746_vm3, %v8734_v16, %v745_v5  ;;  %v759_v35 = vmul.f32 %v6714_v26, %v8754_v62  ;;  %6735 = vrsqrt.f32 %v8863_v10  ;;  %vm869_vm3 = vcmp.eq.f32.partialorder %v8838_v3, 0.0 }
 0x126   :  { %11416 = vst [vmem:[#allocation9_spill] sm:$0xff] %v8955_v22  ;;  %v8970_v21 = vpop.eup %6717  ;;  %v662_v15 = vmul.f32 %v8955_v22, %v630_v4  ;;  %v8979_v8 = vsel %vm748_vm4, %v11419_v63, %v747_v17  ;;  %v754_v5 = vsel %vm753_vm5, %v8748_v36, %v752_v42  ;;  %6737 = vrsqrt.f32 %v8895_v39  ;;  %6181 = vmatmul.mubr.msk.f32.gmra.mrb[22].mxu0 %vm3280_vm0, %v8660_v47 }
 0x127   :  { %11418 = vst [vmem:[#allocation11_spill] sm:$0xff] %v8970_v21  ;;  %11420 = vst [vmem:[#allocation58_spill] sm:$0xff] %v8979_v8  ;;  %v8988_v26 = vpop.eup %6719  ;;  %v11422_v4 = vrot.slane %v8776_v54, 2  ;;  %v8994_v17 = vadd.f32 %v660_v25, %v8832_v11  ;;  %v11424_v63 = vand.u32 2147483648, %v8748_v36  ;;  %v761_v24 = vsel %vm760_vm7, %v8754_v62, %v759_v35  ;;  %6189 = vmatmul.mubr.msk.f32.gmra.mrb[22].mxu1 %vm3280_vm0, %v8660_v47 }
 0x128   :  { %11421 = vst [vmem:[#allocation59_spill] sm:$0xff] %v8988_v26  ;;  %vm876_vm4 = vcmp.eq.f32.partialorder %v8851_v48, 0.0  ;;  %vm881_vm5 = vcmp.eq.f32.partialorder %v8863_v10, inf  ;;  %v6722_v11 = vpop.eup %6721  ;;  %v11426_v25 = vrot.slane %v8783_v6, 2  ;;  %v9024_v28 = vmul.f32 %v8608_v27, %v8961_v34 }
 0x129   :  { %v663_v51 = vmul.f32 %v8970_v21, %v11422_v4  ;;  %11423 = vst [vmem:[#allocation60_spill] sm:$0xff] %v8994_v17  ;;  %v9000_v42 = vsel %vm755_vm6, %v11424_v63, %v754_v5  ;;  %v9014_v5 = vadd.f32 %v661_v40, %v8845_v18  ;;  %v11428_v63 = vand.u32 2147483648, %v8754_v62 }
 0x12a   :  { %11425 = vst [vmem:[#allocation61_spill] sm:$0xff] %v9000_v42  ;;  %v664_v4 = vmul.f32 %v8988_v26, %v11426_v25  ;;  %vm883_vm6 = vcmp.eq.f32.partialorder %v8863_v10, 0.0  ;;  %vm888_vm7 = vcmp.eq.f32.partialorder %v8895_v39, inf  ;;  %v11430_v47 = vmov 0.0   ;;  %v6724_v25 = vpop.eup %6723 }
 0x12b   :  { %11427 = vst [vmem:[#allocation62_spill] sm:$0xff] %v9014_v5  ;;  %v9020_v35 = vsel %vm762_vm8, %v11428_v63, %v761_v24  ;;  %3619 = vmatprep.mubr.f32.mxu0 %v11430_v47  ;;  %v9030_v18 = vadd.f32 %v662_v15, %v8856_v53  ;;  %v766_v40 = vmul.f32 %v6722_v11, %v8759_v20  ;;  %vm890_vm8 = vcmp.eq.f32.partialorder %v8895_v39, 0.0  ;;  %v6726_v5 = vpop.eup %6725 }
 0x12c   :  { %11429 = vst [vmem:[#allocation63_spill] sm:$0xff] %v9020_v35  ;;  %v9035_v24 = vmul.f32 %v8620_v41, %v8979_v8  ;;  %v9039_v63 = vmul.f32 %v8623_v49, %v9000_v42  ;;  %3732 = vmatprep.mubr.f32.mxu1 %v11430_v47  ;;  %v9044_v17 = vadd.f32 %v663_v51, %v8868_v58  ;;  %6739 = vrsqrt.f32 %v8911_v32  ;;  %v9054_v11 = vpop.eup %6727 }
 0x12d   :  { %11431 = vst [vmem:[#allocation64_spill] sm:$0xff] %v9030_v18  ;;  %v773_v53 = vmul.f32 %v6724_v25, %v8785_v33  ;;  %v9049_v15 = vmul.f32 %v8629_v43, %v9020_v35  ;;  %6182 = vmatmul.mubr.msk.f32.gmra.mrb[24].mxu0 %vm3280_vm0, %v8687_v7  ;;  %11433 = vst [vmem:[#allocation30_spill] sm:$0xff] %v9054_v11  ;;  %v9057_v18 = vadd.f32 %v664_v4, %v8878_v57 }
 0x12e   :  { %11432 = vst [vmem:[#allocation65_spill] sm:$0xff] %v9044_v17  ;;  %v768_v58 = vsel %vm767_vm9, %v8759_v20, %v766_v40  ;;  %v780_v51 = vmul.f32 %v6726_v5, %v8790_v23  ;;  %v891_v25 = vand.u32 2147483648, %v8895_v39  ;;  %6190 = vmatmul.mubr.msk.f32.gmra.mrb[24].mxu1 %vm3280_vm0, %v8687_v7  ;;  %3625 = vmatprep.mubr.f32.mxu0 %v11430_v47  ;;  %v6730_v17 = vpop.eup %6729  ;;  %v11435_v14 = vand.u32 2147483648, %v8759_v20 }
 0x12f   :  { %11434 = vst [vmem:[#allocation12_spill] sm:$0xff] %v9057_v18  ;;  %v775_v4 = vsel %vm774_vm11, %v8785_v33, %v773_v53  ;;  %vm895_vm9 = vcmp.eq.f32.partialorder %v8911_v32, inf  ;;  %6741 = vrsqrt.f32 %v8955_v22  ;;  %3738 = vmatprep.mubr.f32.mxu1 %v11430_v47  ;;  %v6732_v7 = vpop.eup %6731  ;;  %v11437_v5 = vand.u32 2147483648, %v8785_v33 }
 0x130   :  { %v9071_v57 = vsel %vm769_vm10, %v11435_v14, %v768_v58  ;;  %v782_v14 = vsel %vm781_vm13, %v8790_v23, %v780_v51  ;;  %v787_v58 = vmul.f32 %v6730_v17, %v8797_v50  ;;  %vm897_vm10 = vcmp.eq.f32.partialorder %v8911_v32, 0.0  ;;  %v6734_v11 = vpop.eup %6733 }
 0x131   :  { %11436 = vst [vmem:[#allocation13_spill] sm:$0xff] %v9071_v57  ;;  %v9083_v40 = vsel %vm776_vm12, %v11437_v5, %v775_v4  ;;  %v898_v53 = vand.u32 2147483648, %v8911_v32  ;;  %v11439_v18 = vand.u32 2147483648, %v8790_v23  ;;  %v9099_v4 = vmul.f32 %v8633_v55, %v9071_v57  ;;  %6183 = vmatmul.mubr.msk.f32.gmra.mrb[26].mxu0 %vm3280_vm0, %v8714_v13  ;;  %v6736_v17 = vpop.eup %6735 }
 0x132   :  { %11438 = vst [vmem:[#allocation14_spill] sm:$0xff] %v9083_v40  ;;  %v866_v5 = vmul.f32 %v6732_v7, %v8838_v3  ;;  %vm902_vm11 = vcmp.eq.f32.partialorder %v8955_v22, inf  ;;  %vm11441_vm12 = vcmp.eq.f32.partialorder %v8797_v50, inf  ;;  %vm904_vm13 = vcmp.eq.f32.partialorder %v8955_v22, 0.0  ;;  %6191 = vmatmul.mubr.msk.f32.gmra.mrb[26].mxu1 %vm3280_vm0, %v8714_v13  ;;  %3631 = vmatprep.mubr.f32.mxu0 %v11430_v47  ;;  %v6738_v7 = vpop.eup %6737 }
 0x133   :  { %v9095_v9 = vsel %vm783_vm14, %v11439_v18, %v782_v14  ;;  %v789_v51 = vsel %vm11441_vm12, %v8797_v50, %v787_v58  ;;  %v9110_v18 = vmul.f32 %v8644_v59, %v9083_v40  ;;  %v873_v14 = vmul.f32 %v6734_v11, %v8851_v48  ;;  %3744 = vmatprep.mubr.f32.mxu1 %v11430_v47 }
 0x134   :  { %11440 = vst [vmem:[#allocation15_spill] sm:$0xff] %v9095_v9  ;;  %v11442_v0 = vand.u32 2147483648, %v8797_v50  ;;  %v868_v58 = vsel %vm867_vm15, %v8838_v3, %v866_v5  ;;  %v880_v11 = vmul.f32 %v6736_v17, %v8863_v10  ;;  %6743 = vrsqrt.f32 %v8970_v21 }
 0x135   :  { %v9131_v13 = vmul.f32 %v8675_v52, %v9095_v9  ;;  %v875_v43 = vsel %vm874_vm2, %v8851_v48, %v873_v14  ;;  %v11444_v17 = vand.u32 2147483648, %v8838_v3  ;;  %v11446_v41 = vand.u32 2147483648, %v8851_v48  ;;  %6184 = vmatmul.mubr.msk.f32.gmra.mrb[28].mxu0 %vm3280_vm0, %v8742_v38 }
 0x136   :  { %v9121_v45 = vsel %vm790_vm1, %v11442_v0, %v789_v51  ;;  %v887_v0 = vmul.f32 %v6738_v7, %v8895_v39  ;;  %v905_v51 = vand.u32 2147483648, %v8955_v22  ;;  %v882_v14 = vsel %vm881_vm5, %v8863_v10, %v880_v11  ;;  %6192 = vmatmul.mubr.msk.f32.gmra.mrb[28].mxu1 %vm3280_vm0, %v8742_v38  ;;  %3637 = vmatprep.mubr.f32.mxu0 %v11430_v47 }
 0x137   :  { %11443 = vst [vmem:[#allocation16_spill] sm:$0xff] %v9121_v45  ;;  %v9140_v5 = vmul.f32 %v8679_v60, %v9121_v45  ;;  %v9146_v49 = vsel %vm869_vm3, %v11444_v17, %v868_v58  ;;  %v9152_v27 = vsel %vm876_vm4, %v11446_v41, %v875_v43  ;;  %v11448_v7 = vand.u32 2147483648, %v8863_v10  ;;  %v6740_v41 = vpop.eup %6739  ;;  %3750 = vmatprep.mubr.f32.mxu1 %v11430_v47 }
 0x138   :  { %11445 = vst [vmem:[#allocation17_spill] sm:$0xff] %v9146_v49  ;;  %11447 = vst [vmem:[#allocation18_spill] sm:$0xff] %v9152_v27  ;;  %v889_v58 = vsel %vm888_vm7, %v8895_v39, %v887_v0  ;;  %vm909_vm14 = vcmp.eq.f32.partialorder %v8970_v21, inf  ;;  %6745 = vrsqrt.f32 %v8988_v26  ;;  %vm911_vm15 = vcmp.eq.f32.partialorder %v8970_v21, 0.0 }
 0x139   :  { %v9163_v45 = vsel %vm883_vm6, %v11448_v7, %v882_v14  ;;  %v9175_v43 = vsel %vm890_vm8, %v891_v25, %v889_v58  ;;  %v912_v11 = vand.u32 2147483648, %v8970_v21  ;;  %v919_v0 = vand.u32 2147483648, %v8988_v26  ;;  %v6742_v7 = vpop.eup %6741  ;;  %6185 = vmatmul.mubr.msk.f32.gmra.mrb[30].mxu0 %vm3280_vm0, %v8772_v56 }
 0x13a   :  { %11449 = vst [vmem:[#allocation20_spill] sm:$0xff] %v9163_v45  ;;  %11450 = vst [vmem:[#allocation21_spill] sm:$0xff] %v9175_v43  ;;  %v894_v17 = vmul.f32 %v6740_v41, %v8911_v32  ;;  %vm916_vm1 = vcmp.eq.f32.partialorder %v8988_v26, inf  ;;  %v929_v38 = vmul.f32 %v9146_v49, %v8695_v30  ;;  %v930_v14 = vmul.f32 %v9152_v27, %v8699_v1 }
 0x13b   :  { %v9189_v25 = vmul.f32 %v9163_v45, %v8706_v61  ;;  %vm918_vm2 = vcmp.eq.f32.partialorder %v8988_v26, 0.0  ;;  %v932_v58 = vmul.f32 %v9175_v43, %v8721_v37  ;;  %v901_v27 = vmul.f32 %v6742_v7, %v8955_v22  ;;  %6193 = vmatmul.mubr.msk.f32.gmra.mrb[30].mxu1 %vm3280_vm0, %v8772_v56  ;;  %3821 = vmatprep.mubr.f32.mxu0 %v11430_v47 }
 0x13c   :  { %v896_v45 = vsel %vm895_vm9, %v8911_v32, %v894_v17  ;;  %v961_v49 = vrot.slane %v929_v38, 1  ;;  %v962_v57 = vrot.slane %v930_v14, 1  ;;  %3934 = vmatprep.mubr.f32.mxu1 %v11430_v47  ;;  %v1029_v43 = vrot.slane %v9099_v4, 1 }
 0x13d   :  { %v9208_v9 = vsel %vm897_vm10, %v898_v53, %v896_v45  ;;  %v963_v40 = vrot.slane %v9189_v25, 1  ;;  %v964_v41 = vrot.slane %v932_v58, 1  ;;  %v903_v17 = vsel %vm902_vm11, %v8955_v22, %v901_v27 }
 0x13e   :  { %11451 = vst [vmem:[#allocation22_spill] sm:$0xff] %v9208_v9  ;;  %v933_v56 = vmul.f32 %v9208_v9, %v8727_v44  ;;  %v993_v7 = vmul.f32 %v961_v49, %v929_v38  ;;  %v994_v35 = vmul.f32 %v962_v57, %v930_v14  ;;  %v6744_v42 = vpop.eup %6743  ;;  %v9220_v45 = vsel %vm904_vm13, %v905_v51, %v903_v17 }
 0x13f   :  { %11452 = vst [vmem:[#allocation24_spill] sm:$0xff] %v9220_v45  ;;  %v995_v53 = vmul.f32 %v963_v40, %v9189_v25  ;;  %v996_v8 = vmul.f32 %v964_v41, %v932_v58  ;;  %v908_v47 = vmul.f32 %v6744_v42, %v8970_v21  ;;  %v934_v27 = vmul.f32 %v9220_v45, %v8746_v29 }
 0x140   :  { %v965_v34 = vrot.slane %v933_v56, 1  ;;  %v1030_v9 = vrot.slane %v9110_v18, 1  ;;  %v1031_v62 = vrot.slane %v9131_v13, 1  ;;  %v1032_v36 = vrot.slane %v9140_v5, 1 }
 0x141   :  { %v11453_v51 = vrot.slane %v9024_v28, 1  ;;  %v11454_v16 = vrot.slane %v9035_v24, 1  ;;  %v910_v42 = vsel %vm909_vm14, %v8970_v21, %v908_v47  ;;  %v966_v19 = vrot.slane %v934_v27, 1 }
 0x142   :  { %v6746_v2 = vpop.eup %6745  ;;  %v997_v45 = vmul.f32 %v965_v34, %v933_v56  ;;  %v11455_v12 = vrot.slane %v9039_v63, 1  ;;  %v9242_v22 = vsel %vm911_vm15, %v912_v11, %v910_v42  ;;  %v1062_v32 = vmul.f32 %v1030_v9, %v934_v27 }
 0x143   :  { %v1057_v17 = vmul.f32 %v11453_v51, %v929_v38  ;;  %v1058_v31 = vmul.f32 %v11454_v16, %v930_v14  ;;  %11456 = vst [vmem:[#allocation25_spill] sm:$0xff] %v9242_v22  ;;  %v915_v38 = vmul.f32 %v6746_v2, %v8988_v26  ;;  %v11457_v51 = vrot.slane %v9049_v15, 1 }
 0x144   :  { %v1059_v46 = vmul.f32 %v11455_v12, %v9189_v25  ;;  %v1061_v14 = vmul.f32 %v1029_v43, %v933_v56  ;;  %v935_v29 = vmul.f32 %v9242_v22, %v8776_v54  ;;  %v998_v47 = vmul.f32 %v966_v19, %v934_v27 }
 0x145   :  { %v1060_v16 = vmul.f32 %v11457_v51, %v932_v58  ;;  %v1073_v44 = vadd.f32 %v1057_v17, %v993_v7  ;;  %v917_v12 = vsel %vm916_vm1, %v8988_v26, %v915_v38  ;;  %v1074_v25 = vadd.f32 %v1058_v31, %v994_v35 }
 0x146   :  { %v1075_v21 = vadd.f32 %v1059_v46, %v995_v53  ;;  %v9254_v2 = vsel %vm918_vm2, %v919_v0, %v917_v12  ;;  %v967_v42 = vrot.slane %v935_v29, 1  ;;  %v1063_v58 = vmul.f32 %v1031_v62, %v935_v29 }
 0x147   :  { %v1076_v11 = vadd.f32 %v1060_v16, %v996_v8  ;;  %11458 = vst [vmem:[#allocation27_spill] sm:$0xff] %v9254_v2  ;;  %v1077_v56 = vadd.f32 %v1061_v14, %v997_v45  ;;  %v936_v51 = vmul.f32 %v9254_v2, %v8783_v6  ;;  %v1078_v22 = vadd.f32 %v1062_v32, %v998_v47 }
 0x148   :  { %v1089_v7 = vmul.f32 %v961_v49, %v9024_v28  ;;  %v1090_v27 = vmul.f32 %v962_v57, %v9035_v24  ;;  %v999_v17 = vmul.f32 %v967_v42, %v935_v29  ;;  %v1091_v31 = vmul.f32 %v963_v40, %v9039_v63 }
 0x149   :  { %v1092_v46 = vmul.f32 %v964_v41, %v9049_v15  ;;  %v1093_v8 = vmul.f32 %v965_v34, %v9099_v4  ;;  %v968_v35 = vrot.slane %v936_v51, 1  ;;  %v1064_v0 = vmul.f32 %v1032_v36, %v936_v51 }
 0x14a   :  { %v1094_v53 = vmul.f32 %v966_v19, %v9110_v18  ;;  %v1095_v45 = vmul.f32 %v967_v42, %v9131_v13  ;;  %v1079_v38 = vadd.f32 %v1063_v58, %v999_v17  ;;  %v1105_v16 = vadd.f32 %v1089_v7, %v1073_v44 }
 0x14b   :  { %v1106_v32 = vadd.f32 %v1090_v27, %v1074_v25  ;;  %v1107_v14 = vadd.f32 %v1091_v31, %v1075_v21  ;;  %v1000_v49 = vmul.f32 %v968_v35, %v936_v51  ;;  %v1096_v57 = vmul.f32 %v968_v35, %v9140_v5 }
 0x14c   :  { %v1108_v29 = vadd.f32 %v1092_v46, %v1076_v11  ;;  %v1109_v47 = vadd.f32 %v1093_v8, %v1077_v56  ;;  %v1110_v40 = vadd.f32 %v1094_v53, %v1078_v22  ;;  %v1111_v12 = vadd.f32 %v1095_v45, %v1079_v38 }
 0x14d   :  { %v11459_v34 = vrot.slane %v9024_v28, 1  ;;  %v11460_v19 = vrot.slane %v9035_v24, 1  ;;  %v1080_v42 = vadd.f32 %v1064_v0, %v1000_v49  ;;  %v11461_v44 = vrot.slane %v9039_v63, 1  ;;  %v11481_v49 = vld [vmem:[#allocation4_spill] sm:$0xff] }
 0x14e   :  { %v11462_v25 = vrot.slane %v9049_v15, 1  ;;  %v1125_v22 = vmul.f32 %v1029_v43, %v9099_v4  ;;  %v1126_v58 = vmul.f32 %v1030_v9, %v9110_v18  ;;  %v1127_v56 = vmul.f32 %v1031_v62, %v9131_v13 }
 0x14f   :  { %v1121_v41 = vmul.f32 %v11459_v34, %v9024_v28  ;;  %v1122_v2 = vmul.f32 %v11460_v19, %v9035_v24  ;;  %v1123_v21 = vmul.f32 %v11461_v44, %v9039_v63  ;;  %v1128_v28 = vmul.f32 %v1032_v36, %v9140_v5  ;;  %v11488_v19 = vld [vmem:[#allocation26_spill] sm:$0xff] }
 0x150   :  { %v1124_v11 = vmul.f32 %v11462_v25, %v9049_v15  ;;  %v1112_v24 = vadd.f32 %v1096_v57, %v1080_v42  ;;  %v9290_v17 = vadd.f32 %v1125_v22, %v1109_v47  ;;  %v9292_v15 = vadd.f32 %v1126_v58, %v1110_v40  ;;  %v11484_v47 = vld [vmem:[#allocation9_spill] sm:$0xff] }
 0x151   :  { %v9282_v51 = vadd.f32 %v1121_v41, %v1105_v16  ;;  %v9284_v7 = vadd.f32 %v1122_v2, %v1106_v32  ;;  %v9286_v27 = vadd.f32 %v1123_v21, %v1107_v14  ;;  %v9294_v4 = vadd.f32 %v1127_v56, %v1111_v12  ;;  %v11479_v32 = vld [vmem:[#allocation54_spill] sm:$0xff]  ;;  %v11486_v12 = vld [vmem:[#allocation11_spill] sm:$0xff]  ;;  %v11489_v42 = vld [vmem:[#allocation37_spill] sm:$0xff] }
 0x152   :  { %v9288_v63 = vadd.f32 %v1124_v11, %v1108_v29  ;;  %11467 = vst [vmem:[#allocation38_spill] sm:$0xff] %v9290_v17  ;;  %11468 = vst [vmem:[#allocation41_spill] sm:$0xff] %v9292_v15  ;;  %v11470_v9 = vrot.slane %v8633_v55, 6  ;;  %v9299_v36 = vadd.f32 %v1128_v28, %v1112_v24  ;;  %v11472_v18 = vrot.slane %v8644_v59, 6  ;;  %v11482_v29 = vld [vmem:[#allocation56_spill] sm:$0xff]  ;;  %v11493_v11 = vld [vmem:[#allocation6_spill] sm:$0xff] }
 0x153   :  { %11463 = vst [vmem:[#allocation29_spill] sm:$0xff] %v9282_v51  ;;  %11464 = vst [vmem:[#allocation33_spill] sm:$0xff] %v9284_v7  ;;  %v11473_v5 = vrot.slane %v8675_v52, 6  ;;  %v11474_v2 = vrot.slane %v8679_v60, 6  ;;  %v11475_v46 = vrot.slane %v8695_v30, 6  ;;  %v11476_v35 = vrot.slane %v8699_v1, 6 }
 0x154   :  { %11465 = vst [vmem:[#allocation34_spill] sm:$0xff] %v9286_v27  ;;  %11466 = vst [vmem:[#allocation36_spill] sm:$0xff] %v9288_v63  ;;  %v1189_v62 = vmul.f32 %v8759_v20, %v11470_v9  ;;  %v1190_v13 = vmul.f32 %v8785_v33, %v11472_v18  ;;  %v11477_v53 = vrot.slane %v8706_v61, 6  ;;  %v11478_v38 = vrot.slane %v8721_v37, 6  ;;  %v11491_v21 = vld [vmem:[#allocation40_spill] sm:$0xff]  ;;  %v11519_v59 = vld [vmem:[#allocation17_spill] sm:$0xff] }
 0x155   :  { %11469 = vst [vmem:[#allocation45_spill] sm:$0xff] %v9294_v4  ;;  %11471 = vst [vmem:[#allocation46_spill] sm:$0xff] %v9299_v36  ;;  %v1191_v43 = vmul.f32 %v8790_v23, %v11473_v5  ;;  %v1192_v31 = vmul.f32 %v8797_v50, %v11474_v2  ;;  %v1233_v8 = vmul.f32 %v8838_v3, %v11475_v46  ;;  %v11480_v14 = vrot.slane %v11479_v32, 6 }
 0x156   :  { %v1234_v0 = vmul.f32 %v8851_v48, %v11476_v35  ;;  %v1235_v45 = vmul.f32 %v8863_v10, %v11477_v53  ;;  %v1236_v16 = vmul.f32 %v8895_v39, %v11478_v38  ;;  %v11483_v30 = vrot.slane %v11482_v29, 6  ;;  %v11501_v35 = vld [vmem:[#allocation57_spill] sm:$0xff]  ;;  %v11502_v53 = vld [vmem:[#allocation23_spill] sm:$0xff] }
 0x157   :  { %v1237_v57 = vmul.f32 %v11481_v49, %v11480_v14  ;;  %v11485_v1 = vrot.slane %v8776_v54, 6  ;;  %v11487_v61 = vrot.slane %v8783_v6, 6  ;;  %v9335_v37 = vadd.f32 %v1233_v8, %v11488_v19 }
 0x158   :  { %v1238_v40 = vmul.f32 %v11484_v47, %v11483_v30  ;;  %v9338_v44 = vadd.f32 %v1234_v0, %v11489_v42  ;;  %v9341_v25 = vadd.f32 %v1235_v45, %v11491_v21  ;;  %v9344_v22 = vadd.f32 %v1236_v16, %v11493_v11 }
 0x159   :  { %v1239_v34 = vmul.f32 %v11486_v12, %v11485_v1  ;;  %v1240_v41 = vmul.f32 %v8988_v26, %v11487_v61  ;;  %v9346_v58 = vadd.f32 %v1237_v57, %v1189_v62  ;;  %v1281_v28 = vrot.slane %v9282_v51, 6 }
 0x15a   :  { %11490 = vst [vmem:[#allocation47_spill] sm:$0xff] %v9338_v44  ;;  %11492 = vst [vmem:[#allocation43_spill] sm:$0xff] %v9341_v25  ;;  %v9348_v54 = vadd.f32 %v1238_v40, %v1190_v13  ;;  %v1282_v24 = vrot.slane %v9284_v7, 6  ;;  %v1283_v9 = vrot.slane %v9286_v27, 6  ;;  %v1284_v18 = vrot.slane %v9288_v63, 6 }
 0x15b   :  { %11494 = vst [vmem:[#allocation54_spill] sm:$0xff] %v9344_v22  ;;  %11495 = vst [vmem:[#allocation56_spill] sm:$0xff] %v9346_v58  ;;  %v9350_v56 = vadd.f32 %v1239_v34, %v1191_v43  ;;  %v9352_v6 = vadd.f32 %v1240_v41, %v1192_v31  ;;  %v1285_v5 = vrot.slane %v9290_v17, 6  ;;  %v1286_v2 = vrot.slane %v9292_v15, 6  ;;  %v11499_v43 = vld [vmem:[#allocation53_spill] sm:$0xff]  ;;  %v11500_v31 = vld [vmem:[#allocation55_spill] sm:$0xff] }
 0x15c   :  { %11496 = vst [vmem:[#allocation26_spill] sm:$0xff] %v9348_v54  ;;  %v1287_v62 = vrot.slane %v9294_v4, 6  ;;  %v1288_v13 = vrot.slane %v9299_v36, 6  ;;  %v1313_v46 = vmul.f32 %v11499_v43, %v1281_v28  ;;  %v1314_v8 = vmul.f32 %v11500_v31, %v1282_v24 }
 0x15d   :  { %11497 = vst [vmem:[#allocation37_spill] sm:$0xff] %v9350_v56  ;;  %11498 = vst [vmem:[#allocation40_spill] sm:$0xff] %v9352_v6  ;;  %v1315_v0 = vmul.f32 %v11501_v35, %v1283_v9  ;;  %v1316_v45 = vmul.f32 %v11502_v53, %v1284_v18  ;;  %v1317_v38 = vmul.f32 %v8759_v20, %v1285_v5  ;;  %v1329_v57 = vsub.f32 1.0, %v9282_v51 }
 0x15e   :  { %v1318_v16 = vmul.f32 %v8785_v33, %v1286_v2  ;;  %v1319_v32 = vmul.f32 %v8790_v23, %v1287_v62  ;;  %v1320_v14 = vmul.f32 %v8797_v50, %v1288_v13  ;;  %v1330_v29 = vsub.f32 1.0, %v9284_v7 }
 0x15f   :  { %v1331_v30 = vsub.f32 1.0, %v9286_v27  ;;  %v1332_v40 = vsub.f32 1.0, %v9288_v63  ;;  %v1333_v1 = vsub.f32 1.0, %v9290_v17  ;;  %v1334_v34 = vsub.f32 1.0, %v9292_v15 }
 0x160   :  { %v1335_v61 = vsub.f32 1.0, %v9294_v4  ;;  %v1336_v41 = vsub.f32 1.0, %v9299_v36  ;;  %v1361_v19 = vrot.slane %v1329_v57, 6  ;;  %v1362_v42 = vrot.slane %v1330_v29, 6 }
 0x161   :  { %v1363_v21 = vrot.slane %v1331_v30, 6  ;;  %v1364_v11 = vrot.slane %v1332_v40, 6  ;;  %v1365_v28 = vrot.slane %v1333_v1, 6  ;;  %v1366_v24 = vrot.slane %v1334_v34, 6 }
 0x162   :  { %v1367_v9 = vrot.slane %v1335_v61, 6  ;;  %v1368_v18 = vrot.slane %v1336_v41, 6  ;;  %v1393_v5 = vmul.f32 %v8838_v3, %v1361_v19  ;;  %v1394_v2 = vmul.f32 %v8851_v48, %v1362_v42 }
 0x163   :  { %v1395_v62 = vmul.f32 %v8863_v10, %v1363_v21  ;;  %v1396_v13 = vmul.f32 %v8895_v39, %v1364_v11  ;;  %v1397_v4 = vmul.f32 %v11481_v49, %v1365_v28  ;;  %v1398_v36 = vmul.f32 %v11484_v47, %v1366_v24  ;;  %v11513_v28 = vld [vmem:[#allocation61_spill] sm:$0xff] }
 0x164   :  { %v1399_v57 = vmul.f32 %v11486_v12, %v1367_v9  ;;  %v1400_v29 = vmul.f32 %v8988_v26, %v1368_v18  ;;  %v9386_v30 = vadd.f32 %v1393_v5, %v1313_v46  ;;  %v9388_v40 = vadd.f32 %v1394_v2, %v1314_v8  ;;  %v11514_v9 = vld [vmem:[#allocation63_spill] sm:$0xff]  ;;  %v11515_v5 = vld [vmem:[#allocation13_spill] sm:$0xff] }
 0x165   :  { %v9390_v1 = vadd.f32 %v1395_v62, %v1315_v0  ;;  %v9392_v34 = vadd.f32 %v1396_v13, %v1316_v45  ;;  %v9394_v61 = vadd.f32 %v1397_v4, %v1317_v38  ;;  %v9396_v41 = vadd.f32 %v1398_v36, %v1318_v16  ;;  %v11511_v38 = vld [vmem:[#allocation10_spill] sm:$0xff] }
 0x166   :  { %11503 = vst [vmem:[#allocation6_spill] sm:$0xff] %v9386_v30  ;;  %11504 = vst [vmem:[#allocation53_spill] sm:$0xff] %v9388_v40  ;;  %v9398_v19 = vadd.f32 %v1399_v57, %v1319_v32  ;;  %v9400_v42 = vadd.f32 %v1400_v29, %v1320_v14  ;;  %v1441_v21 = vrot.slane %v9386_v30, 6  ;;  %v1442_v11 = vrot.slane %v9388_v40, 6  ;;  %v11512_v32 = vld [vmem:[#allocation58_spill] sm:$0xff]  ;;  %v11517_v57 = vld [vmem:[#allocation15_spill] sm:$0xff] }
 0x167   :  { %11505 = vst [vmem:[#allocation55_spill] sm:$0xff] %v9390_v1  ;;  %11506 = vst [vmem:[#allocation57_spill] sm:$0xff] %v9392_v34  ;;  %v1443_v46 = vrot.slane %v9390_v1, 6  ;;  %v1444_v8 = vrot.slane %v9392_v34, 6  ;;  %v1445_v0 = vrot.slane %v9394_v61, 6  ;;  %v1446_v45 = vrot.slane %v9396_v41, 6 }
 0x168   :  { %11507 = vst [vmem:[#allocation23_spill] sm:$0xff] %v9394_v61  ;;  %11508 = vst [vmem:[#allocation66_spill] sm:$0xff] %v9396_v41  ;;  %v1447_v4 = vrot.slane %v9398_v19, 6  ;;  %v1448_v36 = vrot.slane %v9400_v42, 6  ;;  %v9411_v16 = vmul.f32 %v1441_v21, %v11511_v38  ;;  %v9414_v14 = vmul.f32 %v1442_v11, %v11512_v32  ;;  %v11516_v62 = vld [vmem:[#allocation14_spill] sm:$0xff]  ;;  %v11518_v21 = vld [vmem:[#allocation16_spill] sm:$0xff] }
 0x169   :  { %11509 = vst [vmem:[#allocation67_spill] sm:$0xff] %v9398_v19  ;;  %11510 = vst [vmem:[#allocation68_spill] sm:$0xff] %v9400_v42  ;;  %v9417_v24 = vmul.f32 %v1443_v46, %v11513_v28  ;;  %v9420_v18 = vmul.f32 %v1444_v8, %v11514_v9  ;;  %v9423_v2 = vmul.f32 %v1445_v0, %v11515_v5  ;;  %v1489_v11 = vsub.f32 1.0, %v9386_v30 }
 0x16a   :  { %v9426_v13 = vmul.f32 %v1446_v45, %v11516_v62  ;;  %v9429_v29 = vmul.f32 %v1447_v4, %v11517_v57  ;;  %v9432_v15 = vmul.f32 %v1448_v36, %v11518_v21  ;;  %v1490_v46 = vsub.f32 1.0, %v9388_v40 }
 0x16b   :  { %v1491_v17 = vsub.f32 1.0, %v9390_v1  ;;  %v1492_v8 = vsub.f32 1.0, %v9392_v34  ;;  %v1493_v0 = vsub.f32 1.0, %v9394_v61  ;;  %v1494_v63 = vsub.f32 1.0, %v9396_v41  ;;  %v11520_v34 = vld [vmem:[#allocation18_spill] sm:$0xff]  ;;  %v11521_v61 = vld [vmem:[#allocation20_spill] sm:$0xff] }
 0x16c   :  { %v1495_v45 = vsub.f32 1.0, %v9398_v19  ;;  %v1496_v4 = vsub.f32 1.0, %v9400_v42  ;;  %v1521_v27 = vrot.slane %v1489_v11, 6  ;;  %v1522_v7 = vrot.slane %v1490_v46, 6  ;;  %v11522_v19 = vld [vmem:[#allocation21_spill] sm:$0xff]  ;;  %v11523_v11 = vld [vmem:[#allocation22_spill] sm:$0xff] }
 0x16d   :  { %v1523_v36 = vrot.slane %v1491_v17, 6  ;;  %v1524_v51 = vrot.slane %v1492_v8, 6  ;;  %v1525_v60 = vrot.slane %v1493_v0, 6  ;;  %v1526_v30 = vrot.slane %v1494_v63, 6  ;;  %v11524_v17 = vld [vmem:[#allocation24_spill] sm:$0xff]  ;;  %v11525_v63 = vld [vmem:[#allocation25_spill] sm:$0xff] }
 0x16e   :  { %v1527_v52 = vrot.slane %v1495_v45, 6  ;;  %v1528_v40 = vrot.slane %v1496_v4, 6  ;;  %v9443_v1 = vmul.f32 %v1521_v27, %v11519_v59  ;;  %v9446_v55 = vmul.f32 %v1522_v7, %v11520_v34  ;;  %v11526_v27 = vld [vmem:[#allocation27_spill] sm:$0xff] }
 0x16f   :  { %v9449_v41 = vmul.f32 %v1523_v36, %v11521_v61  ;;  %v9452_v26 = vmul.f32 %v1524_v51, %v11522_v19  ;;  %v9455_v46 = vmul.f32 %v1525_v60, %v11523_v11  ;;  %v9458_v8 = vmul.f32 %v1526_v30, %v11524_v17 }
 0x170   :  { %v9461_v0 = vmul.f32 %v1527_v52, %v11525_v63  ;;  %v9464_v45 = vmul.f32 %v1528_v40, %v11526_v27  ;;  %v1585_v7 = vrot.slane %v9335_v37, 6  ;;  %v1586_v4 = vrot.slane %v9338_v44, 6 }
 0x171   :  { %v1587_v36 = vrot.slane %v9341_v25, 6  ;;  %v1588_v51 = vrot.slane %v9344_v22, 6  ;;  %v1589_v60 = vrot.slane %v9346_v58, 6  ;;  %v1590_v42 = vrot.slane %v9348_v54, 6 }
 0x172   :  { %v1591_v30 = vrot.slane %v9350_v56, 6  ;;  %v1592_v52 = vrot.slane %v9352_v6, 6  ;;  %v9475_v12 = vmul.f32 %v1585_v7, %v11511_v38  ;;  %v9478_v40 = vmul.f32 %v1586_v4, %v11512_v32 }
 0x173   :  { %v9481_v47 = vmul.f32 %v1587_v36, %v11513_v28  ;;  %v9484_v49 = vmul.f32 %v1588_v51, %v11514_v9  ;;  %v9487_v39 = vmul.f32 %v1589_v60, %v11515_v5  ;;  %v9490_v10 = vmul.f32 %v1590_v42, %v11516_v62 }
 0x174   :  { %v9493_v48 = vmul.f32 %v1591_v30, %v11517_v57  ;;  %v9496_v38 = vmul.f32 %v1592_v52, %v11518_v21  ;;  %v1633_v32 = vsub.f32 1.0, %v9335_v37  ;;  %v1634_v28 = vsub.f32 1.0, %v9338_v44 }
 0x175   :  { %v1635_v7 = vsub.f32 1.0, %v9341_v25  ;;  %v1636_v9 = vsub.f32 1.0, %v9344_v22  ;;  %v1637_v5 = vsub.f32 1.0, %v9346_v58  ;;  %v1638_v4 = vsub.f32 1.0, %v9348_v54 }
 0x176   :  { %v1639_v42 = vsub.f32 1.0, %v9350_v56  ;;  %v1640_v62 = vsub.f32 1.0, %v9352_v6  ;;  %v1665_v57 = vrot.slane %v1633_v32, 6  ;;  %v1666_v36 = vrot.slane %v1634_v28, 6 }
 0x177   :  { %v1667_v21 = vrot.slane %v1635_v7, 6  ;;  %v1668_v51 = vrot.slane %v1636_v9, 6  ;;  %v1669_v60 = vrot.slane %v1637_v5, 6  ;;  %v1670_v30 = vrot.slane %v1638_v4, 6 }
 0x178   :  { %v1671_v52 = vrot.slane %v1639_v42, 6  ;;  %v1672_v44 = vrot.slane %v1640_v62, 6  ;;  %v1697_v25 = vmul.f32 %v1665_v57, %v11519_v59  ;;  %v1698_v22 = vmul.f32 %v1666_v36, %v11520_v34 }
 0x179   :  { %v1699_v58 = vmul.f32 %v1667_v21, %v11521_v61  ;;  %v1700_v54 = vmul.f32 %v1668_v51, %v11522_v19  ;;  %v1701_v56 = vmul.f32 %v1669_v60, %v11523_v11  ;;  %v1702_v6 = vmul.f32 %v1670_v30, %v11524_v17 }
 0x17a   :  { %v1703_v32 = vmul.f32 %v1671_v52, %v11525_v63  ;;  %v1704_v28 = vmul.f32 %v1672_v44, %v11526_v27  ;;  %v1729_v7 = vrot.slane %v1697_v25, 1  ;;  %v1730_v9 = vrot.slane %v1698_v22, 1 }
 0x17b   :  { %v1731_v5 = vrot.slane %v1699_v58, 1  ;;  %v1732_v4 = vrot.slane %v1700_v54, 1  ;;  %v1733_v42 = vrot.slane %v1701_v56, 1  ;;  %v1734_v59 = vrot.slane %v1702_v6, 1 }
 0x17c   :  { %v1735_v62 = vrot.slane %v1703_v32, 1  ;;  %v1736_v34 = vrot.slane %v1704_v28, 1  ;;  %v1761_v61 = vmul.f32 %v1729_v7, %v9443_v1  ;;  %v1762_v19 = vmul.f32 %v1730_v9, %v9446_v55 }
 0x17d   :  { %v1763_v11 = vmul.f32 %v1731_v5, %v9449_v41  ;;  %v1764_v17 = vmul.f32 %v1732_v4, %v9452_v26  ;;  %v1765_v63 = vmul.f32 %v1733_v42, %v9455_v46  ;;  %v1766_v44 = vmul.f32 %v1734_v59, %v9458_v8 }
 0x17e   :  { %v1767_v25 = vmul.f32 %v1735_v62, %v9461_v0  ;;  %v1768_v22 = vmul.f32 %v1736_v34, %v9464_v45  ;;  %v1793_v58 = vrot.slane %v9475_v12, 1  ;;  %v1794_v54 = vrot.slane %v9478_v40, 1 }
 0x17f   :  { %v1795_v56 = vrot.slane %v9481_v47, 1  ;;  %v1796_v6 = vrot.slane %v9484_v49, 1  ;;  %v1797_v27 = vrot.slane %v9487_v39, 1  ;;  %v1798_v57 = vrot.slane %v9490_v10, 1 }
 0x180   :  { %v1799_v36 = vrot.slane %v9493_v48, 1  ;;  %v1800_v21 = vrot.slane %v9496_v38, 1  ;;  %v1825_v51 = vmul.f32 %v1793_v58, %v9443_v1  ;;  %v1826_v60 = vmul.f32 %v1794_v54, %v9446_v55 }
 0x181   :  { %v1827_v12 = vmul.f32 %v1795_v56, %v9449_v41  ;;  %v1828_v40 = vmul.f32 %v1796_v6, %v9452_v26  ;;  %v1829_v47 = vmul.f32 %v1797_v27, %v9455_v46  ;;  %v1830_v49 = vmul.f32 %v1798_v57, %v9458_v8 }
 0x182   :  { %v1831_v39 = vmul.f32 %v1799_v36, %v9461_v0  ;;  %v1832_v10 = vmul.f32 %v1800_v21, %v9464_v45  ;;  %v1841_v30 = vadd.f32 %v1825_v51, %v1761_v61  ;;  %v1842_v48 = vadd.f32 %v1826_v60, %v1762_v19 }
 0x183   :  { %v1843_v52 = vadd.f32 %v1827_v12, %v1763_v11  ;;  %v1844_v38 = vadd.f32 %v1828_v40, %v1764_v17  ;;  %v1845_v32 = vadd.f32 %v1829_v47, %v1765_v63  ;;  %v1846_v1 = vadd.f32 %v1830_v49, %v1766_v44 }
 0x184   :  { %v1847_v28 = vadd.f32 %v1831_v39, %v1767_v25  ;;  %v1848_v55 = vadd.f32 %v1832_v10, %v1768_v22  ;;  %v1857_v41 = vmul.f32 %v1729_v7, %v9411_v16  ;;  %v1858_v26 = vmul.f32 %v1730_v9, %v9414_v14 }
 0x185   :  { %v1859_v46 = vmul.f32 %v1731_v5, %v9417_v24  ;;  %v1860_v8 = vmul.f32 %v1732_v4, %v9420_v18  ;;  %v1861_v0 = vmul.f32 %v1733_v42, %v9423_v2  ;;  %v1862_v45 = vmul.f32 %v1734_v59, %v9426_v13 }
 0x186   :  { %v1863_v61 = vmul.f32 %v1735_v62, %v9429_v29  ;;  %v1864_v19 = vmul.f32 %v1736_v34, %v9432_v15  ;;  %v1873_v11 = vadd.f32 %v1857_v41, %v1841_v30  ;;  %v1874_v17 = vadd.f32 %v1858_v26, %v1842_v48 }
 0x187   :  { %v1875_v63 = vadd.f32 %v1859_v46, %v1843_v52  ;;  %v1876_v44 = vadd.f32 %v1860_v8, %v1844_v38  ;;  %v1877_v25 = vadd.f32 %v1861_v0, %v1845_v32  ;;  %v1878_v7 = vadd.f32 %v1862_v45, %v1846_v1  ;;  %v11527_v8 = vld [vmem:[#allocation28_spill] sm:$0xff]  ;;  %v11528_v45 = vld [vmem:[#allocation31_spill] sm:$0xff] }
 0x188   :  { %v1879_v22 = vadd.f32 %v1863_v61, %v1847_v28  ;;  %v1880_v9 = vadd.f32 %v1864_v19, %v1848_v55  ;;  %v1889_v5 = vmul.f32 %v1793_v58, %v9411_v16  ;;  %v1890_v4 = vmul.f32 %v1794_v54, %v9414_v14  ;;  %v11529_v19 = vld [vmem:[#allocation35_spill] sm:$0xff] }
 0x189   :  { %v1891_v42 = vmul.f32 %v1795_v56, %v9417_v24  ;;  %v1892_v59 = vmul.f32 %v1796_v6, %v9420_v18  ;;  %v1893_v62 = vmul.f32 %v1797_v27, %v9423_v2  ;;  %v1894_v34 = vmul.f32 %v1798_v57, %v9426_v13 }
 0x18a   :  { %v1895_v51 = vmul.f32 %v1799_v36, %v9429_v29  ;;  %v1896_v60 = vmul.f32 %v1800_v21, %v9432_v15  ;;  %v9554_v12 = vadd.f32 %v1889_v5, %v1873_v11  ;;  %v9556_v40 = vadd.f32 %v1890_v4, %v1874_v17  ;;  %v11530_v17 = vld [vmem:[#allocation4_spill] sm:$0xff] }
 0x18b   :  { %v9558_v47 = vadd.f32 %v1891_v42, %v1875_v63  ;;  %v9560_v16 = vadd.f32 %v1892_v59, %v1876_v44  ;;  %v9562_v14 = vadd.f32 %v1893_v62, %v1877_v25  ;;  %v9564_v24 = vadd.f32 %v1894_v34, %v1878_v7  ;;  %v11531_v44 = vld [vmem:[#allocation9_spill] sm:$0xff]  ;;  %v11532_v7 = vld [vmem:[#allocation11_spill] sm:$0xff] }
 0x18c   :  { %v9566_v18 = vadd.f32 %v1895_v51, %v1879_v22  ;;  %v9568_v2 = vadd.f32 %v1896_v60, %v1880_v9  ;;  %v1937_v13 = vrot.slane %v9554_v12, 5  ;;  %v1938_v15 = vrot.slane %v9556_v40, 5  ;;  %v11533_v9 = vld [vmem:[#allocation59_spill] sm:$0xff]  ;;  %v9623_v51 = vld [vmem:[%s11028_s3 + $0x50] sm:$0xff] }
 0x18d   :  { %v1939_v29 = vrot.slane %v9558_v47, 5  ;;  %v1940_v58 = vrot.slane %v9560_v16, 5  ;;  %v1941_v54 = vrot.slane %v9562_v14, 5  ;;  %v1942_v56 = vrot.slane %v9564_v24, 5  ;;  %v9605_v4 = vld [vmem:[%s11028_s3 + $0x40] sm:$0xff]  ;;  %v9628_v60 = vld [vmem:[%s11028_s3 + $0x58] sm:$0xff] }
 0x18e   :  { %v1943_v6 = vrot.slane %v9566_v18, 5  ;;  %v1944_v27 = vrot.slane %v9568_v2, 5  ;;  %v1969_v57 = vmul.f32 %v11499_v43, %v1937_v13  ;;  %v1970_v36 = vmul.f32 %v11500_v31, %v1938_v15  ;;  %v9633_v13 = vld [vmem:[%s11028_s3 + $0x60] sm:$0xff] }
 0x18f   :  { %v1971_v21 = vmul.f32 %v11501_v35, %v1939_v29  ;;  %v1972_v49 = vmul.f32 %v11502_v53, %v1940_v58  ;;  %v1973_v39 = vmul.f32 %v8759_v20, %v1941_v54  ;;  %v1974_v10 = vmul.f32 %v8785_v33, %v1942_v56  ;;  %v9646_v56 = vld [vmem:[%s11028_s3 + $0x68] sm:$0xff] }
 0x190   :  { %v1975_v30 = vmul.f32 %v8790_v23, %v1943_v6  ;;  %v1976_v48 = vmul.f32 %v8797_v50, %v1944_v27  ;;  %v1985_v52 = vsub.f32 1.0, %v9554_v12  ;;  %v1986_v38 = vsub.f32 1.0, %v9556_v40  ;;  %v9651_v6 = vld [vmem:[%s11028_s3 + $0x70] sm:$0xff]  ;;  %v9656_v27 = vld [vmem:[%s11028_s3 + $0x78] sm:$0xff] }
 0x191   :  { %v1987_v43 = vsub.f32 1.0, %v9558_v47  ;;  %v1988_v31 = vsub.f32 1.0, %v9560_v16  ;;  %v1989_v35 = vsub.f32 1.0, %v9562_v14  ;;  %v1990_v53 = vsub.f32 1.0, %v9564_v24 }
 0x192   :  { %v1991_v20 = vsub.f32 1.0, %v9566_v18  ;;  %v1992_v33 = vsub.f32 1.0, %v9568_v2  ;;  %v2017_v32 = vrot.slane %v1985_v52, 5  ;;  %v2018_v23 = vrot.slane %v1986_v38, 5  ;;  %v11538_v52 = vld [vmem:[#allocation49_spill] sm:$0xff] }
 0x193   :  { %v2019_v1 = vrot.slane %v1987_v43, 5  ;;  %v2020_v50 = vrot.slane %v1988_v31, 5  ;;  %v2021_v28 = vrot.slane %v1989_v35, 5  ;;  %v2022_v55 = vrot.slane %v1990_v53, 5  ;;  %v11539_v43 = vld [vmem:[#allocation50_spill] sm:$0xff]  ;;  %v11540_v35 = vld [vmem:[#allocation51_spill] sm:$0xff] }
 0x194   :  { %v2023_v41 = vrot.slane %v1991_v20, 5  ;;  %v2024_v26 = vrot.slane %v1992_v33, 5  ;;  %v2049_v46 = vmul.f32 %v8838_v3, %v2017_v32  ;;  %v2050_v0 = vmul.f32 %v11527_v8, %v2018_v23  ;;  %v9610_v3 = vld [vmem:[%s11028_s3 + $0x48] sm:$0xff] }
 0x195   :  { %v2051_v61 = vmul.f32 %v11528_v45, %v2019_v1  ;;  %v2052_v11 = vmul.f32 %v11529_v19, %v2020_v50  ;;  %v2053_v63 = vmul.f32 %v11530_v17, %v2021_v28  ;;  %v2054_v25 = vmul.f32 %v11531_v44, %v2022_v55  ;;  %v11541_v20 = vld [vmem:[#allocation52_spill] sm:$0xff] }
 0x196   :  { %v2055_v22 = vmul.f32 %v11532_v7, %v2023_v41  ;;  %v2056_v5 = vmul.f32 %v11533_v9, %v2024_v26  ;;  %v9612_v42 = vadd.f32 %v2049_v46, %v1969_v57  ;;  %v9614_v59 = vadd.f32 %v2050_v0, %v1970_v36  ;;  %v11534_v57 = vld [vmem:[#allocation39_spill] sm:$0xff]  ;;  %v11542_v46 = vld [vmem:[#allocation32_spill] sm:$0xff]  ;;  %v11543_v7 = vld [vmem:[#allocation29_spill] sm:$0xff] }
 0x197   :  { %v9616_v62 = vadd.f32 %v2051_v61, %v1971_v21  ;;  %v9618_v34 = vadd.f32 %v2052_v11, %v1972_v49  ;;  %v9635_v15 = vadd.f32 %v2053_v63, %v1973_v39  ;;  %v9637_v29 = vadd.f32 %v2054_v25, %v1974_v10  ;;  %v11535_v21 = vld [vmem:[#allocation42_spill] sm:$0xff]  ;;  %v11536_v39 = vld [vmem:[#allocation44_spill] sm:$0xff]  ;;  %v11544_v9 = vld [vmem:[#allocation33_spill] sm:$0xff] }
 0x198   :  { %v9639_v58 = vadd.f32 %v2055_v22, %v1975_v30  ;;  %v9641_v54 = vadd.f32 %v2056_v5, %v1976_v48  ;;  %v2081_v36 = vmul.f32 %v11534_v57, %v9605_v4  ;;  %v2082_v49 = vmul.f32 %v11535_v21, %v9610_v3  ;;  %v11537_v30 = vld [vmem:[#allocation48_spill] sm:$0xff]  ;;  %v11545_v21 = vld [vmem:[#allocation34_spill] sm:$0xff] }
 0x199   :  { %v2083_v10 = vmul.f32 %v11536_v39, %v9623_v51  ;;  %v2084_v48 = vmul.f32 %v11537_v30, %v9628_v60  ;;  %v2085_v38 = vmul.f32 %v11538_v52, %v9633_v13  ;;  %v2086_v31 = vmul.f32 %v11539_v43, %v9646_v56  ;;  %v11546_v39 = vld [vmem:[#allocation36_spill] sm:$0xff]  ;;  %v11547_v52 = vld [vmem:[#allocation38_spill] sm:$0xff]  ;;  %v11548_v43 = vld [vmem:[#allocation41_spill] sm:$0xff] }
 0x19a   :  { %v2087_v53 = vmul.f32 %v11540_v35, %v9651_v6  ;;  %v2088_v33 = vmul.f32 %v11541_v20, %v9656_v27  ;;  %v2154_v32 = vcombine.low %v2081_v36, %v2082_v49  ;;  %v2276_v1 = vrot.slane %v9605_v4, 2  ;;  %v11549_v20 = vld [vmem:[#allocation45_spill] sm:$0xff] }
 0x19b   :  { %v2155_v23 = vcombine.low %v2083_v10, %v2084_v48  ;;  %v2277_v50 = vrot.slane %v9610_v3, 2  ;;  %v2156_v28 = vcombine.low %v2085_v38, %v2086_v31  ;;  %v2278_v41 = vrot.slane %v9623_v51, 2 }
 0x19c   :  { %v2157_v55 = vcombine.low %v2087_v53, %v2088_v33  ;;  %v2279_v26 = vrot.slane %v9628_v60, 2  ;;  %v2164_v8 = vrot.slane %v2154_v32, %v11542_v46  ;;  %v2280_v45 = vrot.slane %v9633_v13, 2  ;;  %v11550_v32 = vld [vmem:[#allocation46_spill] sm:$0xff] }
 0x19d   :  { %v2171_v0 = vrot.slane %v2155_v23, %v11542_v46  ;;  %v2281_v61 = vrot.slane %v9646_v56, 2  ;;  %v2178_v19 = vrot.slane %v2156_v28, %v11542_v46  ;;  %v2282_v17 = vrot.slane %v9651_v6, 2 }
 0x19e   :  { %v2185_v11 = vrot.slane %v2157_v55, %v11542_v46  ;;  %v2283_v63 = vrot.slane %v9656_v27, 2  ;;  %v2308_v22 = vmul.f32 %v2276_v1, %v11543_v7  ;;  %v2309_v5 = vmul.f32 %v2277_v50, %v11544_v9 }
 0x19f   :  { %v2186_v44 = vcombine.low %v2164_v8, %v2171_v0  ;;  %v2227_v25 = vcombine.high %v2164_v8, %v2171_v0  ;;  %v2310_v49 = vmul.f32 %v2278_v41, %v11545_v21  ;;  %v2311_v10 = vmul.f32 %v2279_v26, %v11546_v39  ;;  %v11552_v21 = vld [vmem:[#allocation53_spill] sm:$0xff]  ;;  %v11553_v39 = vld [vmem:[#allocation55_spill] sm:$0xff] }
 0x1a0   :  { %v2187_v57 = vcombine.low %v2178_v19, %v2185_v11  ;;  %v2228_v36 = vcombine.high %v2178_v19, %v2185_v11  ;;  %v2312_v38 = vmul.f32 %v2280_v45, %v11547_v52  ;;  %v2313_v31 = vmul.f32 %v2281_v61, %v11548_v43 }
 0x1a1   :  { %v2194_v30 = vrot.slane %v2186_v44, %v11542_v46  ;;  %v2235_v48 = vrot.slane %v2227_v25, %v11542_v46  ;;  %v2314_v33 = vmul.f32 %v2282_v17, %v11549_v20  ;;  %v2315_v23 = vmul.f32 %v2283_v63, %v11550_v32  ;;  %v11558_v32 = vld [vmem:[#allocation68_spill] sm:$0xff] }
 0x1a2   :  { %v2201_v35 = vrot.slane %v2187_v57, %v11542_v46  ;;  %v2242_v53 = vrot.slane %v2228_v36, %v11542_v46  ;;  %v2381_v1 = vcombine.low %v2308_v22, %v2309_v5  ;;  %v2382_v50 = vcombine.low %v2310_v49, %v2311_v10  ;;  %v11551_v5 = vld [vmem:[#allocation6_spill] sm:$0xff] }
 0x1a3   :  { %v2383_v28 = vcombine.low %v2312_v38, %v2313_v31  ;;  %v2446_v55 = vrot.slane %v9605_v4, 1  ;;  %v2384_v8 = vcombine.low %v2314_v33, %v2315_v23  ;;  %v2447_v0 = vrot.slane %v9610_v3, 1  ;;  %v11555_v38 = vld [vmem:[#allocation23_spill] sm:$0xff]  ;;  %v11556_v31 = vld [vmem:[#allocation66_spill] sm:$0xff] }
 0x1a4   :  { %v2202_v41 = vcombine.low %v2194_v30, %v2201_v35  ;;  %v2243_v26 = vcombine.low %v2235_v48, %v2242_v53  ;;  %v2391_v45 = vrot.slane %v2381_v1, %v11542_v46  ;;  %v2398_v61 = vrot.slane %v2382_v50, %v11542_v46  ;;  %v11554_v30 = vld [vmem:[#allocation57_spill] sm:$0xff]  ;;  %v11557_v53 = vld [vmem:[#allocation67_spill] sm:$0xff] }
 0x1a5   :  { %v2405_v19 = vrot.slane %v2383_v28, %v11542_v46  ;;  %v2448_v11 = vrot.slane %v9623_v51, 1  ;;  %v2412_v17 = vrot.slane %v2384_v8, %v11542_v46  ;;  %v2449_v63 = vrot.slane %v9628_v60, 1 }
 0x1a6   :  { %2208 = vst [vmem:[#allocation2 + $0x40] ss:$8 sm:$0xf] %v2202_v41  ;;  %2250 = vst [vmem:[#allocation2 + $0x41] ss:$8 sm:$0xf] %v2243_v26  ;;  %v2413_v7 = vcombine.low %v2391_v45, %v2398_v61  ;;  %v2478_v57 = vmul.f32 %v2446_v55, %v11551_v5  ;;  %v2479_v49 = vmul.f32 %v2447_v0, %v11552_v21 }
 0x1a7   :  { %v2450_v44 = vrot.slane %v9633_v13, 1  ;;  %v2451_v25 = vrot.slane %v9646_v56, 1  ;;  %2209 = vst [vmem:[#allocation2 + $0x40] ss:$8 sm:$0xf0] %v2202_v41  ;;  %v2452_v22 = vrot.slane %v9651_v6, 1  ;;  %v2414_v36 = vcombine.low %v2405_v19, %v2412_v17 }
 0x1a8   :  { %2251 = vst [vmem:[#allocation2 + $0x41] ss:$8 sm:$0xf0] %v2243_v26  ;;  %v2453_v9 = vrot.slane %v9656_v27, 1  ;;  %v2480_v10 = vmul.f32 %v2448_v11, %v11553_v39  ;;  %v2481_v48 = vmul.f32 %v2449_v63, %v11554_v30  ;;  %v2421_v52 = vrot.slane %v2413_v7, %v11542_v46  ;;  %v11559_v26 = vld [vmem:[#allocation47_spill] sm:$0xff]  ;;  %v11562_v30 = vld [vmem:[#allocation56_spill] sm:$0xff] }
 0x1a9   :  { %v2482_v43 = vmul.f32 %v2450_v44, %v11555_v38  ;;  %v2483_v35 = vmul.f32 %v2451_v25, %v11556_v31  ;;  %v2484_v20 = vmul.f32 %v2452_v22, %v11557_v53  ;;  %v2428_v33 = vrot.slane %v2414_v36, %v11542_v46  ;;  %v11560_v45 = vld [vmem:[#allocation43_spill] sm:$0xff]  ;;  %v11561_v36 = vld [vmem:[#allocation54_spill] sm:$0xff]  ;;  %v11564_v38 = vld [vmem:[#allocation37_spill] sm:$0xff] }
 0x1aa   :  { %v2485_v23 = vmul.f32 %v2453_v9, %v11558_v32  ;;  %v2551_v1 = vcombine.low %v2478_v57, %v2479_v49  ;;  %v2552_v50 = vcombine.low %v2480_v10, %v2481_v48  ;;  %v2616_v41 = vmul.f32 %v2446_v55, %v9335_v37  ;;  %v11563_v49 = vld [vmem:[#allocation26_spill] sm:$0xff] }
 0x1ab   :  { %v2553_v28 = vcombine.low %v2482_v43, %v2483_v35  ;;  %v2617_v8 = vmul.f32 %v2447_v0, %v11559_v26  ;;  %v2618_v61 = vmul.f32 %v2448_v11, %v11560_v45  ;;  %v2429_v19 = vcombine.low %v2421_v52, %v2428_v33  ;;  %v11565_v52 = vld [vmem:[#allocation40_spill] sm:$0xff] }
 0x1ac   :  { %v2554_v17 = vcombine.low %v2484_v20, %v2485_v23  ;;  %v2561_v7 = vrot.slane %v2551_v1, %v11542_v46  ;;  %v2568_v5 = vrot.slane %v2552_v50, %v11542_v46  ;;  %v2619_v39 = vmul.f32 %v2449_v63, %v11561_v36 }
 0x1ad   :  { %v2575_v21 = vrot.slane %v2553_v28, %v11542_v46  ;;  %v2620_v57 = vmul.f32 %v2450_v44, %v11562_v30  ;;  %v2621_v10 = vmul.f32 %v2451_v25, %v11563_v49  ;;  %2436 = vst [vmem:[#allocation2 + $0x42] ss:$8 sm:$0xf] %v2429_v19  ;;  %v2622_v43 = vmul.f32 %v2452_v22, %v11564_v38  ;;  %v11566_v30 = vld [vmem:[#allocation5_spill] sm:$0xff] }
 0x1ae   :  { %v2582_v37 = vrot.slane %v2554_v17, %v11542_v46  ;;  %v2583_v48 = vcombine.low %v2561_v7, %v2568_v5  ;;  %v2623_v31 = vmul.f32 %v2453_v9, %v11565_v52  ;;  %2437 = vst [vmem:[#allocation2 + $0x42] ss:$8 sm:$0xf0] %v2429_v19  ;;  %v2689_v35 = vcombine.low %v2616_v41, %v2617_v8 }
 0x1af   :  { %v2690_v53 = vcombine.low %v2618_v61, %v2619_v39  ;;  %v2691_v20 = vcombine.low %v2620_v57, %v2621_v10  ;;  %v2754_v33 = vmul.f32 %v2446_v55, %v9554_v12  ;;  %v2755_v50 = vmul.f32 %v2447_v0, %v9556_v40  ;;  %v11569_v57 = vld [vmem:[#allocation60_spill] sm:$0xff] }
 0x1b0   :  { %v2584_v32 = vcombine.low %v2575_v21, %v2582_v37  ;;  %v2591_v23 = vrot.slane %v2583_v48, %v11542_v46  ;;  %v2692_v1 = vcombine.low %v2622_v43, %v2623_v31  ;;  %v2699_v28 = vrot.slane %v2689_v35, %v11542_v46  ;;  %v11570_v48 = vld [vmem:[#allocation62_spill] sm:$0xff]  ;;  %v11571_v43 = vld [vmem:[#allocation64_spill] sm:$0xff]  ;;  %v11572_v35 = vld [vmem:[#allocation65_spill] sm:$0xff] }
 0x1b1   :  { %v2706_v26 = vrot.slane %v2690_v53, %v11542_v46  ;;  %v2713_v45 = vrot.slane %v2691_v20, %v11542_v46  ;;  %v2756_v17 = vmul.f32 %v2448_v11, %v9558_v47  ;;  %v2757_v12 = vmul.f32 %v2449_v63, %v9560_v16  ;;  %v11573_v20 = vld [vmem:[#allocation12_spill] sm:$0xff] }
 0x1b2   :  { %v2598_v41 = vrot.slane %v2584_v32, %v11542_v46  ;;  %v2720_v8 = vrot.slane %v2692_v1, %v11542_v46  ;;  %v2758_v55 = vmul.f32 %v2450_v44, %v9562_v14  ;;  %v2759_v19 = vmul.f32 %v2451_v25, %v9564_v24 }
 0x1b3   :  { %v2721_v61 = vcombine.high %v2699_v28, %v2706_v26  ;;  %v2760_v40 = vmul.f32 %v2452_v22, %v9566_v18  ;;  %v2761_v0 = vmul.f32 %v2453_v9, %v9568_v2  ;;  %v2827_v21 = vcombine.high %v2754_v33, %v2755_v50  ;;  %v11567_v2 = vld [vmem:[#allocation7_spill] sm:$0xff]  ;;  %v11568_v22 = vld [vmem:[#allocation8_spill] sm:$0xff] }
 0x1b4   :  { %v2599_v7 = vcombine.high %v2591_v23, %v2598_v41  ;;  %v2722_v5 = vcombine.high %v2713_v45, %v2720_v8  ;;  %v2828_v36 = vcombine.high %v2756_v17, %v2757_v12  ;;  %v2829_v11 = vcombine.high %v2758_v55, %v2759_v19 }
 0x1b5   :  { %v2729_v47 = vrot.slane %v2721_v61, %v11542_v46  ;;  %v2830_v39 = vcombine.high %v2760_v40, %v2761_v0  ;;  %v2892_v16 = vmul.f32 %v11566_v30, %v9605_v4  ;;  %v2837_v24 = vrot.slane %v2827_v21, %v11542_v46  ;;  %v403_v21 = vld [vmem:[%s11027_s4 + $0x40] sm:$0xff] }
 0x1b6   :  { %2606 = vst [vmem:[#allocation2 + $0x43] ss:$8 sm:$0xf] %v2599_v7  ;;  %v2736_v14 = vrot.slane %v2722_v5, %v11542_v46  ;;  %v2844_v18 = vrot.slane %v2828_v36, %v11542_v46  ;;  %v2893_v63 = vmul.f32 %v11567_v2, %v9610_v3  ;;  %2607 = vst [vmem:[#allocation2 + $0x43] ss:$8 sm:$0xf0] %v2599_v7 }
 0x1b7   :  { %v2851_v44 = vrot.slane %v2829_v11, %v11542_v46  ;;  %v2858_v25 = vrot.slane %v2830_v39, %v11542_v46  ;;  %v2894_v9 = vmul.f32 %v11568_v22, %v9623_v51  ;;  %v2895_v49 = vmul.f32 %v11569_v57, %v9628_v60 }
 0x1b8   :  { %v2737_v10 = vcombine.high %v2729_v47, %v2736_v14  ;;  %v2859_v37 = vcombine.low %v2837_v24, %v2844_v18  ;;  %v2896_v38 = vmul.f32 %v11570_v48, %v9633_v13  ;;  %v2897_v52 = vmul.f32 %v11571_v43, %v9646_v56  ;;  %v11574_v47 = vld [vmem:[#allocation30_spill] sm:$0xff] }
 0x1b9   :  { %v2860_v31 = vcombine.low %v2851_v44, %v2858_v25  ;;  %v2898_v53 = vmul.f32 %v11572_v35, %v9651_v6  ;;  %v2899_v33 = vmul.f32 %v11573_v20, %v9656_v27  ;;  %v2965_v32 = vcombine.high %v2892_v16, %v2893_v63  ;;  %v407_v44 = vld [vmem:[%s11027_s4 + $0x60] sm:$0xff]  ;;  %v409_v25 = vld [vmem:[%s11027_s4 + $0x70] sm:$0xff] }
 0x1ba   :  { %2744 = vst [vmem:[#allocation2 + $0x44] ss:$8 sm:$0xf] %v2737_v10  ;;  %v2867_v23 = vrot.slane %v2859_v37, %v11542_v46  ;;  %v2966_v1 = vcombine.high %v2894_v9, %v2895_v49  ;;  %v2967_v50 = vcombine.high %v2896_v38, %v2897_v52  ;;  %v3030_v28 = vmul.f32 %v9612_v42, %v9605_v4  ;;  %v3236_v52 = vld [vmem:[%s11030_s7 + $0x20] sm:$0xff] }
 0x1bb   :  { %2745 = vst [vmem:[#allocation2 + $0x44] ss:$8 sm:$0xf0] %v2737_v10  ;;  %v2874_v26 = vrot.slane %v2860_v31, %v11542_v46  ;;  %v2968_v45 = vcombine.high %v2898_v53, %v2899_v33  ;;  %v2975_v17 = vrot.slane %v2965_v32, %v11542_v46  ;;  %v3031_v41 = vmul.f32 %v9614_v59, %v9610_v3  ;;  %v406_v59 = vld [vmem:[%s11027_s4 + $0x58] sm:$0xff]  ;;  %v3238_v31 = vld [vmem:[%s11030_s7 + $0x30] sm:$0xff] }
 0x1bc   :  { %v2982_v8 = vrot.slane %v2966_v1, %v11542_v46  ;;  %v2989_v12 = vrot.slane %v2967_v50, %v11542_v46  ;;  %v3032_v55 = vmul.f32 %v9616_v62, %v9623_v51  ;;  %v3033_v61 = vmul.f32 %v9618_v34, %v9628_v60  ;;  %v3239_v1 = vld [vmem:[%s11030_s7 + $0x38] sm:$0xff] }
 0x1bd   :  { %v2875_v42 = vcombine.low %v2867_v23, %v2874_v26  ;;  %v2996_v19 = vrot.slane %v2968_v45, %v11542_v46  ;;  %v3034_v40 = vmul.f32 %v9635_v15, %v9633_v13  ;;  %v3035_v0 = vmul.f32 %v9637_v29, %v9646_v56  ;;  %v3237_v23 = vld [vmem:[%s11030_s7 + $0x28] sm:$0xff] }
 0x1be   :  { %v2997_v7 = vcombine.low %v2975_v17, %v2982_v8  ;;  %v3036_v62 = vmul.f32 %v9639_v58, %v9651_v6  ;;  %v3037_v34 = vmul.f32 %v9641_v54, %v9656_v27  ;;  %v3103_v5 = vcombine.high %v3030_v28, %v3031_v41  ;;  %v405_v58 = vld [vmem:[%s11027_s4 + $0x50] sm:$0xff]  ;;  %v408_v54 = vld [vmem:[%s11027_s4 + $0x68] sm:$0xff]  ;;  %v3232_v28 = vld [vmem:[%s11030_s7] sm:$0xff] }
 0x1bf   :  { %2882 = vst [vmem:[#allocation2 + $0x45] ss:$8 sm:$0xf] %v2875_v42  ;;  %v2998_v15 = vcombine.low %v2989_v12, %v2996_v19  ;;  %v3104_v36 = vcombine.high %v3032_v55, %v3033_v61  ;;  %v3105_v29 = vcombine.high %v3034_v40, %v3035_v0  ;;  %v9798_v11 = vmul.f32 %v11574_v47, %v9610_v3  ;;  %v410_v3 = vld [vmem:[%s11027_s4 + $0x78] sm:$0xff]  ;;  %v3233_v26 = vld [vmem:[%s11030_s7 + $0x8] sm:$0xff]  ;;  %v3234_v19 = vld [vmem:[%s11030_s7 + $0x10] sm:$0xff] }
 0x1c0   :  { %2883 = vst [vmem:[#allocation2 + $0x45] ss:$8 sm:$0xf0] %v2875_v42  ;;  %v3005_v39 = vrot.slane %v2997_v7, %v11542_v46  ;;  %v3106_v30 = vcombine.high %v3036_v62, %v3037_v34  ;;  %v3113_v16 = vrot.slane %v3103_v5, %v11542_v46  ;;  %v6155_v14 = vmul.f32 -1.442695, %v406_v59  ;;  %v3235_v40 = vld [vmem:[%s11030_s7 + $0x18] sm:$0xff] }
 0x1c1   :  { %v3012_v24 = vrot.slane %v2998_v15, %v11542_v46  ;;  %v3120_v18 = vrot.slane %v3104_v36, %v11542_v46  ;;  %v3127_v2 = vrot.slane %v3105_v29, %v11542_v46  ;;  %v6152_v63 = vmul.f32 -1.442695, %v403_v21  ;;  %v4869_v15 = vld [vmem:[%s11032_s9] sm:$0xff]  ;;  %v4870_v36 = vld [vmem:[%s11032_s9 + $0x8] sm:$0xff] }
 0x1c2   :  { %v3134_v22 = vrot.slane %v3106_v30, %v11542_v46  ;;  %6747 = vpow2.f32 %v6155_v14  ;;  %v6154_v9 = vmul.f32 -1.442695, %v405_v58  ;;  %v6157_v57 = vmul.f32 -1.442695, %v408_v54  ;;  %v5696_v47 = vld [vmem:[%s11033_s10] sm:$0xff] }
 0x1c3   :  { %v3013_v49 = vcombine.high %v3005_v39, %v3012_v24  ;;  %v3135_v10 = vcombine.high %v3113_v16, %v3120_v18  ;;  %6749 = vpow2.f32 %v6152_v63  ;;  %v6159_v37 = vmul.f32 -1.442695, %v410_v3 }
 0x1c4   :  { %v3136_v48 = vcombine.high %v3127_v2, %v3134_v22  ;;  %6751 = vpow2.f32 %v6154_v9  ;;  %v6156_v38 = vmul.f32 -1.442695, %v407_v44  ;;  %v6158_v43 = vmul.f32 -1.442695, %v409_v25 }
 0x1c5   :  { %3020 = vst [vmem:[#allocation2 + $0x46] ss:$8 sm:$0xf] %v3013_v49  ;;  %v3143_v35 = vrot.slane %v3135_v10, %v11542_v46  ;;  %3021 = vst [vmem:[#allocation2 + $0x46] ss:$8 sm:$0xf0] %v3013_v49  ;;  %6753 = vpow2.f32 %v6157_v57  ;;  %v17_v53 = vstv %s11031_s11 }
 0x1c6   :  { %v3150_v20 = vrot.slane %v3136_v48, %v11542_v46  ;;  %6755 = vpow2.f32 %v6159_v37  ;;  %v7371_v33 = vmov 0   ;;  %18 = vst [vmem:[#allocation3] sm:$0x1] %v17_v53 }
 0x1c7   :  { %6453 = vset.pattern.permute.xlu0 %v7371_v33  ;;  %6454 = vset.pattern.permute.xlu1 %v7371_v33  ;;  %6757 = vpow2.f32 %v6156_v38 }
 0x1c8   :  { %3262 = vperm.xlu0 %6453, %v3236_v52   ;;  %3272 = vperm.xlu1 %6454, %v3238_v31   ;;  %v3151_v32 = vcombine.high %v3143_v35, %v3150_v20  ;;  %6759 = vpow2.f32 %v6158_v43 }
 0x1ca   :  { %3158 = vst [vmem:[#allocation2 + $0x47] ss:$8 sm:$0xf] %v3151_v32  ;;  %3159 = vst [vmem:[#allocation2 + $0x47] ss:$8 sm:$0xf0] %v3151_v32 }
 0x1cc   :  { %3267 = vperm.xlu0 %6453, %v3237_v23   ;;  %3277 = vperm.xlu1 %6454, %v3239_v1   ;;  %v6748_v50 = vpop.eup %6747 }
 0x1cd   :  { %v6750_v45 = vpop.eup %6749  ;;  %v470_v17 = vadd.f32 1.0, %v6748_v50  ;;  %v9857_v29 = vpop.f32.mrb[0].mxu0  ;;  %v5852_v49 = vld [vmem:[#allocation3] sm:$0x1] }
 0x1ce   :  { %v6752_v41 = vpop.eup %6751  ;;  %v467_v8 = vadd.f32 1.0, %v6750_v45  ;;  %v9865_v58 = vpop.f32.mrb[0].mxu1 }
 0x1cf   :  { %v6754_v12 = vpop.eup %6753  ;;  %6761 = vrcp.f32 %v470_v17  ;;  %v469_v55 = vadd.f32 1.0, %v6752_v41  ;;  %v9867_v54 = vpop.f32.mrb[1].mxu0  ;;  %v11575_v17 = vmov 0.0  }
 0x1d0   :  { %3242 = vperm.xlu0 %6453, %v3232_v28   ;;  %3247 = vperm.xlu1 %6454, %v3233_v26   ;;  %v6756_v61 = vpop.eup %6755  ;;  %6763 = vrcp.f32 %v467_v8  ;;  %v472_v42 = vadd.f32 1.0, %v6754_v12  ;;  %v9869_v16 = vpop.f32.mrb[1].mxu1 }
 0x1d1   :  { %v6758_v0 = vpop.eup %6757  ;;  %v3209_v59 = vld [vmem:[#allocation2 + $0x48] sm:$0xff]  ;;  %6765 = vrcp.f32 %v469_v55  ;;  %v474_v7 = vadd.f32 1.0, %v6756_v61  ;;  %v3211_v30 = vld [vmem:[#allocation2 + $0x58] sm:$0xff]  ;;  %v3208_v24 = vld [vmem:[#allocation2 + $0x40] sm:$0xff]  ;;  %v9873_v44 = vpop.f32.mrb[2].mxu0 }
 0x1d2   :  { %v6760_v62 = vpop.eup %6759  ;;  %v6370_v34 = vpack.c.bf16 %v9798_v11, %v3209_v59  ;;  %6767 = vrcp.f32 %v472_v42  ;;  %v471_v5 = vadd.f32 1.0, %v6758_v0  ;;  %v5697_v11 = vld [vmem:[%s11033_s10 + $0x8] sm:$0xff]  ;;  %v3210_v63 = vld [vmem:[#allocation2 + $0x50] sm:$0xff]  ;;  %v9876_v10 = vpop.f32.mrb[2].mxu1  ;;  %v3212_v53 = vld [vmem:[#allocation2 + $0x60] sm:$0xff] }
 0x1d3   :  { %6769 = vrcp.f32 %v474_v7  ;;  %v473_v21 = vadd.f32 1.0, %v6760_v62  ;;  %v3213_v57 = vld [vmem:[#allocation2 + $0x68] sm:$0xff]  ;;  %v9878_v37 = vpop.f32.mrb[3].mxu0  ;;  %v9881_v43 = vpop.f32.mrb[3].mxu1  ;;  %v3214_v32 = vld [vmem:[#allocation2 + $0x70] sm:$0xff]  ;;  %v9948_v7 = vld [vmem:[%s11029_s6 + $0x18] sm:$0xff] }
 0x1d4   :  { %3252 = vperm.xlu0 %6453, %v3234_v19   ;;  %3257 = vperm.xlu1 %6454, %v3235_v40   ;;  %6771 = vrcp.f32 %v471_v5  ;;  %v9916_v55 = vld [vmem:[%s11029_s6 + $0x8] sm:$0xff]  ;;  %v9935_v0 = vld [vmem:[%s11029_s6 + $0x10] sm:$0xff]  ;;  %v9959_v62 = vld [vmem:[%s11029_s6 + $0x20] sm:$0xff] }
 0x1d5   :  { %6371 = vmatprep.subr.bf16.mxu0 %v6370_v34  ;;  %6773 = vrcp.f32 %v473_v21  ;;  %v9885_v23 = vpop.f32.mrb[4].mxu0 }
 0x1d6   :  { %v9888_v50 = vpop.f32.mrb[4].mxu1  ;;  %v9890_v28 = vpop.f32.mrb[5].mxu0 }
 0x1d7   :  { %v9892_v26 = vpop.f32.mrb[5].mxu1 }
 0x1d8   :  { %4873 = vperm.xlu0 %6453, %v4869_v15   ;;  %4878 = vperm.xlu1 %6454, %v4870_v36   ;;  %v7364_v36 = vld [vmem:[%s11029_s6 + $0x28] sm:$0xff] }
 0x1d9   :  { %v6762_v39 = vpop.eup %6761 }
 0x1da   :  { %v6764_v14 = vpop.eup %6763  ;;  %v3171_v3 = vmul.f32 %v6762_v39, %v9628_v60  ;;  %v9906_v41 = vpop.f32.mrb[6].mxu1 }
 0x1db   :  { %v6766_v18 = vpop.eup %6765  ;;  %v3168_v2 = vmul.f32 %v6764_v14, %v9605_v4  ;;  %v3215_v4 = vld [vmem:[#allocation2 + $0x78] sm:$0xff]  ;;  %v9911_v12 = vpop.f32.mrb[7].mxu1  ;;  %v7365_v14 = vld [vmem:[%s11029_s6 + $0x30] sm:$0xff] }
 0x1dc   :  { %5700 = vperm.xlu0 %6453, %v5696_v47   ;;  %5705 = vperm.xlu1 %6454, %v5697_v11   ;;  %v6768_v25 = vpop.eup %6767  ;;  %v6374_v22 = vpack.c.bf16 %v3171_v3, %v3211_v30  ;;  %v3170_v9 = vmul.f32 %v6766_v18, %v9623_v51 }
 0x1dd   :  { %v6770_v60 = vpop.eup %6769  ;;  %v6372_v48 = vpack.c.bf16 %v3168_v2, %v3208_v24  ;;  %v3173_v38 = vmul.f32 %v6768_v25, %v9646_v56  ;;  %v7366_v25 = vld [vmem:[%s11029_s6 + $0x38] sm:$0xff] }
 0x1de   :  { %v6772_v52 = vpop.eup %6771  ;;  %6375 = vmatprep.subr.bf16.mxu1 %v6374_v22  ;;  %v6376_v31 = vpack.c.bf16 %v3170_v9, %v3210_v63  ;;  %v3175_v35 = vmul.f32 %v6770_v60, %v9656_v27  ;;  %v9926_v42 = vpop.f32.mrb[8].mxu1 }
 0x1df   :  { %v6774_v51 = vpop.eup %6773  ;;  %6373 = vmatpush1.bf16.msra.mxu0 %v6372_v48  ;;  %v6378_v20 = vpack.c.bf16 %v3173_v38, %v3213_v57  ;;  %v3172_v33 = vmul.f32 %v6772_v52, %v9633_v13  ;;  %v9897_v13 = vld [vmem:[%s11029_s6] sm:$0xff]  ;;  %v9930_v40 = vpop.f32.mrb[9].mxu1 }
 0x1e0   :  { %5855 = vperm.xlu0 %6453, %v5852_v49   ;;  %6377 = vmatpush1.bf16.msra.mxu1 %v6376_v31  ;;  %v6382_v56 = vpack.c.bf16 %v3175_v35, %v3215_v4  ;;  %v3174_v1 = vmul.f32 %v6774_v51, %v9651_v6  ;;  %v9903_v6 = vpop.f32.mrb[6].mxu0 }
 0x1e1   :  { %6379 = vmatprep.subr.bf16.mxu0 %v6378_v20  ;;  %v6380_v27 = vpack.c.bf16 %v3172_v33, %v3212_v53  ;;  %v9908_v8 = vpop.f32.mrb[7].mxu0 }
 0x1e2   :  { %6194 = vmatmul.mubr.msk.f32.vlgmr.msra.gmra.mrb[32].mxu0 %vm3280_vm0, %v9897_v13  ;;  %6383 = vmatprep.subr.bf16.mxu1 %v6382_v56  ;;  %v6384_v45 = vpack.c.bf16 %v3174_v1, %v3214_v32  ;;  %v9923_v61 = vpop.f32.mrb[8].mxu0  ;;  %v9963_v34 = vpop.f32.mrb[10].mxu1 }
 0x1e3   :  { %6202 = vmatmul.mubr.msk.f32.vlgmr.msra.gmra.mrb[32].mxu1 %vm3280_vm0, %v9897_v13  ;;  %6381 = vmatpush1.bf16.msra.mxu0 %v6380_v27  ;;  %v9928_v19 = vpop.f32.mrb[9].mxu0  ;;  %v9971_v21 = vpop.f32.mrb[11].mxu1 }
 0x1e4   :  { %6385 = vmatpush1.bf16.msra.mxu1 %v6384_v45  ;;  %3827 = vmatprep.mubr.f32.mxu0 %v11575_v17  ;;  %v9942_v59 = vpop.f32.mrb[10].mxu0 }
 0x1e5   :  { %3940 = vmatprep.mubr.f32.mxu1 %v11575_v17  ;;  %v9968_v5 = vpop.f32.mrb[11].mxu0 }
 0x1e6   :  { %6195 = vmatmul.mubr.msk.f32.gmra.mrb[34].mxu0 %vm3280_vm0, %v9916_v55  ;;  %v9973_v15 = vpop.f32.mrb[12].mxu0  ;;  %v9979_v47 = vpop.f32.mrb[12].mxu1 }
 0x1e7   :  { %6203 = vmatmul.mubr.msk.f32.gmra.mrb[34].mxu1 %vm3280_vm0, %v9916_v55  ;;  %3833 = vmatprep.mubr.f32.mxu0 %v11575_v17  ;;  %v9983_v11 = vpop.f32.mrb[13].mxu0  ;;  %v9986_v39 = vpop.f32.mrb[13].mxu1 }
 0x1e8   :  { %3946 = vmatprep.mubr.f32.mxu1 %v11575_v17 }
 0x1e9   :  { %v9988_v30 = vpop.f32.mrb[14].mxu0 }
 0x1ea   :  { %6196 = vmatmul.mubr.msk.f32.gmra.mrb[36].mxu0 %vm3280_vm0, %v9935_v0  ;;  %v9994_v3 = vpop.f32.mrb[14].mxu1  ;;  %v9998_v24 = vpop.f32.mrb[15].mxu0 }
 0x1eb   :  { %6204 = vmatmul.mubr.msk.f32.gmra.mrb[36].mxu1 %vm3280_vm0, %v9935_v0  ;;  %3839 = vmatprep.mubr.f32.mxu0 %v11575_v17  ;;  %v10001_v18 = vpop.f32.mrb[15].mxu1 }
 0x1ec   :  { %3952 = vmatprep.mubr.f32.mxu1 %v11575_v17 }
 0x1ed   :  { %v10003_v2 = vpop.f32.mrb[16].mxu0 }
 0x1ee   :  { %6197 = vmatmul.mubr.msk.f32.gmra.mrb[38].mxu0 %vm3280_vm0, %v9948_v7  ;;  %v10005_v63 = vpop.f32.mrb[16].mxu1  ;;  %v10011_v22 = vpop.f32.mrb[17].mxu0 }
 0x1ef   :  { %6205 = vmatmul.mubr.msk.f32.gmra.mrb[38].mxu1 %vm3280_vm0, %v9948_v7  ;;  %3845 = vmatprep.mubr.f32.mxu0 %v11575_v17  ;;  %v10015_v9 = vpop.f32.mrb[17].mxu1 }
 0x1f0   :  { %3958 = vmatprep.mubr.f32.mxu1 %v11575_v17 }
 0x1f1   :  { %v10018_v57 = vpop.f32.mrb[18].mxu0 }
 0x1f2   :  { %6198 = vmatmul.mubr.msk.f32.gmra.mrb[40].mxu0 %vm3280_vm0, %v9959_v62  ;;  %v10020_v49 = vpop.f32.mrb[18].mxu1  ;;  %v10024_v60 = vpop.f32.mrb[19].mxu0 }
 0x1f3   :  { %6206 = vmatmul.mubr.msk.f32.gmra.mrb[40].mxu1 %vm3280_vm0, %v9959_v62  ;;  %3851 = vmatprep.mubr.f32.mxu0 %v11575_v17  ;;  %v10029_v48 = vpop.f32.mrb[19].mxu1 }
 0x1f4   :  { %3964 = vmatprep.mubr.f32.mxu1 %v11575_v17 }
 0x1f5   :  { %v10032_v38 = vpop.f32.mrb[20].mxu0 }
 0x1f6   :  { %6199 = vmatmul.mubr.msk.f32.gmra.mrb[42].mxu0 %vm3280_vm0, %v7364_v36  ;;  %v10034_v4 = vpop.f32.mrb[20].mxu1  ;;  %v10038_v52 = vpop.f32.mrb[21].mxu0 }
 0x1f7   :  { %6207 = vmatmul.mubr.msk.f32.gmra.mrb[42].mxu1 %vm3280_vm0, %v7364_v36  ;;  %3857 = vmatprep.mubr.f32.mxu0 %v11575_v17  ;;  %v10043_v31 = vpop.f32.mrb[21].mxu1 }
 0x1f8   :  { %3970 = vmatprep.mubr.f32.mxu1 %v11575_v17 }
 0x1f9   :  { %v10046_v35 = vpop.f32.mrb[22].mxu0 }
 0x1fa   :  { %6200 = vmatmul.mubr.msk.f32.gmra.mrb[44].mxu0 %vm3280_vm0, %v7365_v14  ;;  %v10048_v53 = vpop.f32.mrb[22].mxu1  ;;  %v10052_v51 = vpop.f32.mrb[23].mxu0 }
 0x1fb   :  { %6208 = vmatmul.mubr.msk.f32.gmra.mrb[44].mxu1 %vm3280_vm0, %v7365_v14  ;;  %3863 = vmatprep.mubr.f32.mxu0 %v11575_v17  ;;  %11576 = vst [vmem:[#allocation10_spill] sm:$0xff] %v10048_v53  ;;  %11577 = vst [vmem:[#allocation58_spill] sm:$0xff] %v10052_v51  ;;  %v10057_v20 = vpop.f32.mrb[23].mxu1  ;;  %v507_v51 = vld [vmem:[%s11034_s5] sm:$0xff] }
 0x1fc   :  { %3976 = vmatprep.mubr.f32.mxu1 %v11575_v17  ;;  %11578 = vst [vmem:[#allocation61_spill] sm:$0xff] %v10057_v20  ;;  %v6160_v53 = vmul.f32 -1.442695, %v507_v51 }
 0x1fe   :  { %6201 = vmatmul.mubr.msk.f32.gmra.mrb[46].mxu0 %vm3280_vm0, %v7366_v25  ;;  %6775 = vpow2.f32 %v6160_v53 }
 0x1ff   :  { %6209 = vmatmul.mubr.msk.f32.gmra.mrb[46].mxu1 %vm3280_vm0, %v7366_v25  ;;  %4047 = vmatprep.mubr.f32.mxu0 %v11575_v17 }
 0x200   :  { %4160 = vmatprep.mubr.f32.mxu1 %v11575_v17  ;;  %v10060_v33 = vpop.f32.mrb[24].mxu0 }
 0x201   :  { %v10079_v32 = vpop.f32.mrb[24].mxu1  ;;  %v10083_v56 = vpop.f32.mrb[25].mxu0 }
 0x202   :  { %6210 = vmatmul.mubr.msk.f32.vlgmr.msra.gmra.mrb[48].mxu0 %vm3280_vm0, %v9897_v13  ;;  %v10086_v1 = vpop.f32.mrb[25].mxu1 }
 0x203   :  { %6218 = vmatmul.mubr.msk.f32.vlgmr.msra.gmra.mrb[48].mxu1 %vm3280_vm0, %v9897_v13  ;;  %4053 = vmatprep.mubr.f32.mxu0 %v11575_v17 }
 0x204   :  { %4166 = vmatprep.mubr.f32.mxu1 %v11575_v17  ;;  %v10088_v27 = vpop.f32.mrb[26].mxu0 }
 0x205   :  { %v10091_v13 = vpop.f32.mrb[26].mxu1  ;;  %v10094_v45 = vpop.f32.mrb[27].mxu0 }
 0x206   :  { %6211 = vmatmul.mubr.msk.f32.gmra.mrb[50].mxu0 %vm3280_vm0, %v9916_v55  ;;  %11579 = vst [vmem:[#allocation63_spill] sm:$0xff] %v10091_v13  ;;  %11580 = vst [vmem:[#allocation13_spill] sm:$0xff] %v10094_v45 }
 0x207   :  { %6219 = vmatmul.mubr.msk.f32.gmra.mrb[50].mxu1 %vm3280_vm0, %v9916_v55  ;;  %4059 = vmatprep.mubr.f32.mxu0 %v11575_v17  ;;  %v10097_v55 = vpop.f32.mrb[27].mxu1 }
 0x208   :  { %4172 = vmatprep.mubr.f32.mxu1 %v11575_v17  ;;  %11581 = vst [vmem:[#allocation14_spill] sm:$0xff] %v10097_v55 }
 0x20a   :  { %6212 = vmatmul.mubr.msk.f32.gmra.mrb[52].mxu0 %vm3280_vm0, %v9935_v0 }
 0x20b   :  { %6220 = vmatmul.mubr.msk.f32.gmra.mrb[52].mxu1 %vm3280_vm0, %v9935_v0  ;;  %4065 = vmatprep.mubr.f32.mxu0 %v11575_v17  ;;  %v10100_v0 = vpop.f32.mrb[28].mxu0 }
 0x20c   :  { %4178 = vmatprep.mubr.f32.mxu1 %v11575_v17  ;;  %11582 = vst [vmem:[#allocation15_spill] sm:$0xff] %v10100_v0 }
 0x20e   :  { %6213 = vmatmul.mubr.msk.f32.gmra.mrb[54].mxu0 %vm3280_vm0, %v9948_v7 }
 0x20f   :  { %6221 = vmatmul.mubr.msk.f32.gmra.mrb[54].mxu1 %vm3280_vm0, %v9948_v7  ;;  %4071 = vmatprep.mubr.f32.mxu0 %v11575_v17  ;;  %v10102_v7 = vpop.f32.mrb[28].mxu1 }
 0x210   :  { %4184 = vmatprep.mubr.f32.mxu1 %v11575_v17  ;;  %11583 = vst [vmem:[#allocation16_spill] sm:$0xff] %v10102_v7 }
 0x212   :  { %6214 = vmatmul.mubr.msk.f32.gmra.mrb[56].mxu0 %vm3280_vm0, %v9959_v62 }
 0x213   :  { %6222 = vmatmul.mubr.msk.f32.gmra.mrb[56].mxu1 %vm3280_vm0, %v9959_v62  ;;  %4077 = vmatprep.mubr.f32.mxu0 %v11575_v17  ;;  %v10104_v62 = vpop.f32.mrb[29].mxu0 }
 0x214   :  { %4190 = vmatprep.mubr.f32.mxu1 %v11575_v17  ;;  %11584 = vst [vmem:[#allocation17_spill] sm:$0xff] %v10104_v62 }
 0x216   :  { %6215 = vmatmul.mubr.msk.f32.gmra.mrb[58].mxu0 %vm3280_vm0, %v7364_v36 }
 0x217   :  { %6223 = vmatmul.mubr.msk.f32.gmra.mrb[58].mxu1 %vm3280_vm0, %v7364_v36  ;;  %4083 = vmatprep.mubr.f32.mxu0 %v11575_v17  ;;  %v10106_v36 = vpop.f32.mrb[29].mxu1 }
 0x218   :  { %4196 = vmatprep.mubr.f32.mxu1 %v11575_v17  ;;  %11585 = vst [vmem:[#allocation18_spill] sm:$0xff] %v10106_v36  ;;  %v10110_v46 = vpop.f32.mrb[30].mxu1 }
 0x219   :  { %11587 = vst [vmem:[#allocation21_spill] sm:$0xff] %v10110_v46  ;;  %v10114_v20 = vpop.f32.mrb[31].mxu1 }
 0x21a   :  { %6216 = vmatmul.mubr.msk.f32.gmra.mrb[60].mxu0 %vm3280_vm0, %v7365_v14  ;;  %11589 = vst [vmem:[#allocation24_spill] sm:$0xff] %v10114_v20 }
 0x21b   :  { %6224 = vmatmul.mubr.msk.f32.gmra.mrb[60].mxu1 %vm3280_vm0, %v7365_v14  ;;  %4089 = vmatprep.mubr.f32.mxu0 %v11575_v17  ;;  %v10108_v14 = vpop.f32.mrb[30].mxu0 }
 0x21c   :  { %4202 = vmatprep.mubr.f32.mxu1 %v11575_v17  ;;  %11586 = vst [vmem:[#allocation20_spill] sm:$0xff] %v10108_v14 }
 0x21e   :  { %6217 = vmatmul.mubr.msk.f32.gmra.mrb[62].mxu0 %vm3280_vm0, %v7366_v25 }
 0x21f   :  { %6225 = vmatmul.mubr.msk.f32.gmra.mrb[62].mxu1 %vm3280_vm0, %v7366_v25  ;;  %4952 = vmatprep.mubr.f32.mxu0 %v11575_v17  ;;  %v10112_v25 = vpop.f32.mrb[31].mxu0  ;;  %vm4881_vm0 = vcmask 261120  }
 0x220   :  { %5029 = vmatprep.mubr.f32.mxu1 %v11575_v17  ;;  %11588 = vst [vmem:[#allocation22_spill] sm:$0xff] %v10112_v25  ;;  %v6776_v17 = vpop.eup %6775 }
 0x221   :  { %v515_v36 = vadd.f32 1.0, %v6776_v17 }
 0x223   :  { %6777 = vrcp.f32 %v515_v36 }
 0x247   :  { %v10119_v7 = vpop.permute.xlu0 %3262  ;;  %v10121_v62 = vpop.permute.xlu1 %3272 }
 0x248   :  { %v3396_v14 = vadd.f32 %v9923_v61, %v10119_v7  ;;  %v3509_v46 = vadd.f32 %v9926_v42, %v10119_v7  ;;  %v3398_v20 = vadd.f32 %v9928_v19, %v10119_v7  ;;  %v3511_v25 = vadd.f32 %v9930_v40, %v10119_v7 }
 0x24a   :  { %v6226_v0 = vmul.f32 -1.442695, %v3396_v14  ;;  %v6228_v55 = vmul.f32 -1.442695, %v3509_v46  ;;  %v6227_v45 = vmul.f32 -1.442695, %v3398_v20 }
 0x24b   :  { %v10131_v51 = vpop.permute.xlu0 %3267  ;;  %v10133_v53 = vpop.permute.xlu1 %3277  ;;  %v6229_v13 = vmul.f32 -1.442695, %v3511_v25 }
 0x24c   :  { %6779 = vpow2.f32 %v6226_v0 }
 0x24d   :  { %6781 = vpow2.f32 %v6228_v55 }
 0x24e   :  { %6783 = vpow2.f32 %v6227_v45 }
 0x24f   :  { %v10135_v61 = vpop.permute.xlu0 %3242  ;;  %v10141_v40 = vpop.permute.xlu1 %3247  ;;  %6785 = vpow2.f32 %v6229_v13 }
 0x250   :  { %v3372_v42 = vadd.f32 %v9857_v29, %v10135_v61  ;;  %v3485_v19 = vadd.f32 %v9865_v58, %v10135_v61  ;;  %v3374_v17 = vadd.f32 %v9867_v54, %v10135_v61  ;;  %v3487_v46 = vadd.f32 %v9869_v16, %v10135_v61  ;;  %v10159_v13 = vpop.eup %6777 }
 0x251   :  { %v3378_v20 = vadd.f32 %v9873_v44, %v10141_v40  ;;  %v3491_v29 = vadd.f32 %v9876_v10, %v10141_v40  ;;  %v3380_v55 = vadd.f32 %v9878_v37, %v10141_v40  ;;  %v3493_v54 = vadd.f32 %v9881_v43, %v10141_v40 }
 0x252   :  { %6787 = vtanh.f32 %v3372_v42 }
 0x253   :  { %6789 = vtanh.f32 %v3485_v19  ;;  %v10151_v58 = vpop.permute.xlu0 %3252  ;;  %v10163_v10 = vpop.permute.xlu1 %3257  ;;  %v3402_v19 = vadd.f32 %v9942_v59, %v10131_v51  ;;  %v3517_v59 = vadd.f32 %v9971_v21, %v10131_v51  ;;  %v3410_v21 = vadd.f32 %v9983_v11, %v10121_v62 }
 0x254   :  { %6791 = vtanh.f32 %v3374_v17  ;;  %v3384_v16 = vadd.f32 %v9885_v23, %v10151_v58  ;;  %v3497_v44 = vadd.f32 %v9888_v50, %v10151_v58  ;;  %v3386_v37 = vadd.f32 %v9890_v28, %v10151_v58 }
 0x255   :  { %6793 = vtanh.f32 %v3487_v46  ;;  %v3499_v43 = vadd.f32 %v9892_v26, %v10151_v58  ;;  %v3390_v23 = vadd.f32 %v9903_v6, %v10163_v10  ;;  %v3503_v50 = vadd.f32 %v9906_v41, %v10163_v10 }
 0x256   :  { %6795 = vtanh.f32 %v3378_v20  ;;  %v6780_v45 = vpop.eup %6779  ;;  %v3392_v28 = vadd.f32 %v9908_v8, %v10163_v10  ;;  %v3515_v41 = vadd.f32 %v9963_v34, %v10131_v51  ;;  %v3404_v8 = vadd.f32 %v9968_v5, %v10131_v51 }
 0x257   :  { %6797 = vtanh.f32 %v3491_v29  ;;  %v6782_v0 = vpop.eup %6781  ;;  %v4465_v26 = vadd.f32 1.0, %v6780_v45  ;;  %v3408_v34 = vadd.f32 %v9973_v15, %v10121_v62  ;;  %v3521_v5 = vadd.f32 %v9979_v47, %v10121_v62 }
 0x258   :  { %6799 = vtanh.f32 %v3380_v55  ;;  %v6784_v36 = vpop.eup %6783  ;;  %v4467_v6 = vadd.f32 1.0, %v6782_v0  ;;  %v6244_v45 = vmul.f32 -1.442695, %v3515_v41  ;;  %v6243_v0 = vmul.f32 -1.442695, %v3404_v8 }
 0x259   :  { %6801 = vtanh.f32 %v3493_v54  ;;  %v6786_v14 = vpop.eup %6785  ;;  %v4466_v20 = vadd.f32 1.0, %v6784_v36  ;;  %v6245_v36 = vmul.f32 -1.442695, %v3517_v59  ;;  %v3523_v15 = vadd.f32 %v9986_v39, %v10121_v62 }
 0x25a   :  { %6803 = vtanh.f32 %v3384_v16  ;;  %v4468_v55 = vadd.f32 1.0, %v6786_v14  ;;  %v6242_v16 = vmul.f32 -1.442695, %v3402_v19  ;;  %v6258_v14 = vmul.f32 -1.442695, %v3408_v34 }
 0x25b   :  { %6805 = vtanh.f32 %v3497_v44  ;;  %v3414_v47 = vadd.f32 %v9988_v30, %v10133_v53  ;;  %v3527_v11 = vadd.f32 %v9994_v3, %v10133_v53  ;;  %v6259_v19 = vmul.f32 -1.442695, %v3410_v21 }
 0x25c   :  { %v10173_v25 = vpop.eup %6787  ;;  %6807 = vtanh.f32 %v3386_v37  ;;  %v3416_v39 = vadd.f32 %v9998_v24, %v10133_v53  ;;  %v6261_v41 = vmul.f32 -1.442695, %v3523_v15  ;;  %v3529_v30 = vadd.f32 %v10001_v18, %v10133_v53 }
 0x25d   :  { %v10177_v42 = vpop.eup %6789  ;;  %6809 = vtanh.f32 %v3499_v43  ;;  %v6274_v8 = vmul.f32 -1.442695, %v3414_v47  ;;  %v6276_v3 = vmul.f32 -1.442695, %v3527_v11 }
 0x25e   :  { %v10181_v17 = vpop.eup %6791  ;;  %6811 = vtanh.f32 %v3390_v23  ;;  %v6277_v34 = vmul.f32 -1.442695, %v3529_v30 }
 0x25f   :  { %v10185_v46 = vpop.eup %6793  ;;  %6813 = vtanh.f32 %v3503_v50 }
 0x260   :  { %v10189_v29 = vpop.eup %6795  ;;  %6815 = vtanh.f32 %v3392_v28  ;;  %v6260_v28 = vmul.f32 -1.442695, %v3521_v5  ;;  %v3505_v5 = vadd.f32 %v9911_v12, %v10163_v10 }
 0x261   :  { %v10193_v54 = vpop.eup %6797  ;;  %6817 = vrcp.f32 %v4465_v26 }
 0x262   :  { %v10197_v44 = vpop.eup %6799  ;;  %6819 = vrcp.f32 %v4467_v6 }
 0x263   :  { %v10201_v37 = vpop.eup %6801  ;;  %6821 = vrcp.f32 %v4466_v20 }
 0x264   :  { %v10205_v43 = vpop.eup %6803  ;;  %6823 = vrcp.f32 %v4468_v55 }
 0x265   :  { %v10209_v23 = vpop.eup %6805  ;;  %6825 = vpow2.f32 %v6242_v16  ;;  %v6275_v16 = vmul.f32 -1.442695, %v3416_v39 }
 0x266   :  { %v10213_v50 = vpop.eup %6807  ;;  %6827 = vpow2.f32 %v6244_v45 }
 0x267   :  { %v10217_v26 = vpop.eup %6809  ;;  %6829 = vpow2.f32 %v6243_v0 }
 0x268   :  { %v10221_v6 = vpop.eup %6811  ;;  %6831 = vpow2.f32 %v6245_v36 }
 0x269   :  { %v10225_v20 = vpop.eup %6813  ;;  %6833 = vpow2.f32 %v6258_v14 }
 0x26a   :  { %v10227_v55 = vpop.eup %6815  ;;  %6835 = vpow2.f32 %v6260_v28 }
 0x26b   :  { %v10229_v59 = vpop.eup %6817  ;;  %6837 = vpow2.f32 %v6259_v19 }
 0x26c   :  { %v10231_v24 = vpop.eup %6819  ;;  %6839 = vpow2.f32 %v6261_v41  ;;  %v11590_v41 = vld [vmem:[#allocation19_spill] sm:$0xff] }
 0x26d   :  { %v10235_v18 = vpop.eup %6821  ;;  %6841 = vpow2.f32 %v6274_v8  ;;  %v10248_v30 = vsub.s32 0, %v11590_v41  ;;  %v11214_v8 = vsub.s32 2, %v11590_v41  ;;  %v11215_v0 = vsub.s32 1, %v11590_v41 }
 0x26e   :  { %v10241_v21 = vpop.eup %6823  ;;  %6843 = vpow2.f32 %v6276_v3  ;;  %v11216_v14 = vsub.s32 3, %v11590_v41 }
 0x26f   :  { %v6826_v15 = vpop.eup %6825  ;;  %6845 = vpow2.f32 %v6275_v16  ;;  %11591 = vst [vmem:[#allocation25_spill] sm:$0xff] %v10248_v30  ;;  %v10255_v36 = vrot.slane %v10159_v13, %v10248_v30 }
 0x270   :  { %v6828_v47 = vpop.eup %6827  ;;  %v4481_v28 = vadd.f32 1.0, %v6826_v15  ;;  %6847 = vpow2.f32 %v6277_v34 }
 0x271   :  { %v6830_v11 = vpop.eup %6829  ;;  %6849 = vtanh.f32 %v3505_v5  ;;  %v4483_v12 = vadd.f32 1.0, %v6828_v47 }
 0x272   :  { %v6832_v19 = vpop.eup %6831  ;;  %6851 = vrcp.f32 %v4481_v28  ;;  %v4482_v39 = vadd.f32 1.0, %v6830_v11 }
 0x273   :  { %v6834_v3 = vpop.eup %6833  ;;  %6853 = vrcp.f32 %v4483_v12  ;;  %v4484_v16 = vadd.f32 1.0, %v6832_v19  ;;  %v10260_v12 = vrot.slane %v10159_v13, %v11214_v8  ;;  %v3598_v8 = vadd.f32 %v10003_v2, %v10135_v61 }
 0x274   :  { %v6836_v15 = vpop.eup %6835  ;;  %6855 = vrcp.f32 %v4482_v39  ;;  %v4497_v34 = vadd.f32 1.0, %v6834_v3  ;;  %v10265_v39 = vrot.slane %v10159_v13, %v11215_v0  ;;  %v10270_v3 = vrot.slane %v10159_v13, %v11216_v14 }
 0x275   :  { %v6838_v5 = vpop.eup %6837  ;;  %6857 = vrcp.f32 %v4484_v16  ;;  %v4499_v47 = vadd.f32 1.0, %v6836_v15  ;;  %v3711_v0 = vadd.f32 %v10005_v63, %v10135_v61  ;;  %v3717_v2 = vadd.f32 %v10020_v49, %v10141_v40 }
 0x276   :  { %v6840_v28 = vpop.eup %6839  ;;  %6859 = vrcp.f32 %v4497_v34  ;;  %v4498_v11 = vadd.f32 1.0, %v6838_v5  ;;  %v3622_v34 = vadd.f32 %v10060_v33, %v10119_v7  ;;  %v3735_v5 = vadd.f32 %v10079_v32, %v10119_v7 }
 0x277   :  { %v6842_v19 = vpop.eup %6841  ;;  %6861 = vrcp.f32 %v4499_v47  ;;  %v4500_v45 = vadd.f32 1.0, %v6840_v28  ;;  %v3713_v33 = vadd.f32 %v10015_v9, %v10135_v61  ;;  %v3610_v9 = vadd.f32 %v10032_v38, %v10151_v58 }
 0x278   :  { %v6844_v16 = vpop.eup %6843  ;;  %6863 = vrcp.f32 %v4498_v11  ;;  %v4513_v15 = vadd.f32 1.0, %v6842_v19  ;;  %v3600_v11 = vadd.f32 %v10011_v22, %v10135_v61  ;;  %v3719_v22 = vadd.f32 %v10029_v48, %v10141_v40 }
 0x279   :  { %v6846_v47 = vpop.eup %6845  ;;  %6865 = vrcp.f32 %v4500_v45  ;;  %v4515_v28 = vadd.f32 1.0, %v6844_v16  ;;  %v3604_v45 = vadd.f32 %v10018_v57, %v10141_v40  ;;  %v3606_v16 = vadd.f32 %v10024_v60, %v10141_v40 }
 0x27a   :  { %v6848_v14 = vpop.eup %6847  ;;  %6867 = vrcp.f32 %v4513_v15  ;;  %v4514_v30 = vadd.f32 1.0, %v6846_v47  ;;  %v10300_v57 = vadd.f32 %v10038_v52, %v10151_v58  ;;  %v10305_v60 = vadd.f32 %v10043_v31, %v10151_v58 }
 0x27b   :  { %v10284_v19 = vpop.eup %6849  ;;  %6869 = vrcp.f32 %v4515_v28  ;;  %v4516_v32 = vadd.f32 1.0, %v6848_v14  ;;  %v3723_v14 = vadd.f32 %v10034_v4, %v10151_v58  ;;  %v10309_v48 = vadd.f32 %v10046_v35, %v10163_v10 }
 0x27c   :  { %v6852_v63 = vpop.eup %6851  ;;  %6871 = vrcp.f32 %v4514_v30  ;;  %v11592_v38 = vsub.f32 %v10173_v25, %v10229_v59  ;;  %v11594_v35 = vsub.f32 %v10177_v42, %v10231_v24 }
 0x27d   :  { %v6854_v15 = vpop.eup %6853  ;;  %6873 = vrcp.f32 %v4516_v32  ;;  %v4673_v49 = vsub.f32 %v10189_v29, %v6852_v63  ;;  %v11593_v29 = vsub.f32 %v10181_v17, %v10235_v18 }
 0x27e   :  { %v6856_v30 = vpop.eup %6855  ;;  %v4803_v4 = vmul.f32 %v10255_v36, %v11592_v38  ;;  %v4675_v47 = vsub.f32 %v10193_v54, %v6854_v15  ;;  %v4805_v63 = vmul.f32 %v10260_v12, %v11594_v35  ;;  %6875 = vtanh.f32 %v3598_v8 }
 0x27f   :  { %v6858_v52 = vpop.eup %6857  ;;  %v4674_v28 = vsub.f32 %v10197_v44, %v6856_v30  ;;  %v4804_v31 = vmul.f32 %v10265_v39, %v11593_v29  ;;  %v4819_v32 = vmul.f32 %v10255_v36, %v4673_v49  ;;  %v11595_v54 = vsub.f32 %v10185_v46, %v10241_v21 }
 0x280   :  { %v6860_v25 = vpop.eup %6859  ;;  %v4676_v59 = vsub.f32 %v10201_v37, %v6858_v52  ;;  %v4821_v17 = vmul.f32 %v10260_v12, %v4675_v47  ;;  %6877 = vtanh.f32 %v3711_v0  ;;  %v6230_v46 = vmul.f32 -1.442695, %v3622_v34 }
 0x281   :  { %v4806_v44 = vmul.f32 %v10270_v3, %v11595_v54  ;;  %v6862_v18 = vpop.eup %6861  ;;  %v4820_v15 = vmul.f32 %v10265_v39, %v4674_v28  ;;  %v6388_v49 = vpack.c.bf16 %v4819_v32, %v4803_v4  ;;  %v4689_v42 = vsub.f32 %v10205_v43, %v6860_v25 }
 0x282   :  { %v6864_v24 = vpop.eup %6863  ;;  %6879 = vtanh.f32 %v3600_v11  ;;  %v4822_v8 = vmul.f32 %v10270_v3, %v4676_v59  ;;  %v6396_v30 = vpack.c.bf16 %v4821_v17, %v4805_v63  ;;  %v4691_v37 = vsub.f32 %v10209_v23, %v6862_v18 }
 0x283   :  { %v6866_v38 = vpop.eup %6865  ;;  %6881 = vtanh.f32 %v3713_v33  ;;  %v6386_v21 = vpack.c.bf16 %v4820_v15, %v4804_v31  ;;  %v4690_v47 = vsub.f32 %v10213_v50, %v6864_v24  ;;  %v6232_v0 = vmul.f32 -1.442695, %v3735_v5  ;;  %v11596_v5 = vld [vmem:[#allocation63_spill] sm:$0xff] }
 0x284   :  { %v6868_v52 = vpop.eup %6867  ;;  %6883 = vtanh.f32 %v3604_v45  ;;  %v6394_v28 = vpack.c.bf16 %v4822_v8, %v4806_v44  ;;  %v4692_v4 = vsub.f32 %v10217_v26, %v6866_v38  ;;  %v3624_v11 = vadd.f32 %v10083_v56, %v10119_v7 }
 0x285   :  { %v6870_v43 = vpop.eup %6869  ;;  %6885 = vtanh.f32 %v3717_v2  ;;  %v3737_v23 = vadd.f32 %v10086_v1, %v10119_v7  ;;  %6387 = vmatprep.subr.bf16.mxu0 %v6386_v21  ;;  %v4705_v34 = vsub.f32 %v10221_v6, %v6868_v52  ;;  %v3628_v50 = vadd.f32 %v10088_v27, %v10131_v51  ;;  %v11602_v21 = vld [vmem:[#allocation18_spill] sm:$0xff] }
 0x286   :  { %v6872_v33 = vpop.eup %6871  ;;  %6887 = vtanh.f32 %v3606_v16  ;;  %v3741_v45 = vadd.f32 %v11596_v5, %v10131_v51  ;;  %6395 = vmatprep.subr.bf16.mxu1 %v6394_v28  ;;  %6389 = vmatpush1.bf16.msra.mxu0 %v6388_v49  ;;  %v4707_v26 = vsub.f32 %v10225_v20, %v6870_v43  ;;  %v4835_v1 = vmul.f32 %v10255_v36, %v4689_v42  ;;  %v11600_v49 = vld [vmem:[#allocation16_spill] sm:$0xff] }
 0x287   :  { %v6874_v2 = vpop.eup %6873  ;;  %6889 = vtanh.f32 %v3719_v22  ;;  %6397 = vmatpush1.bf16.msra.mxu1 %v6396_v30  ;;  %v4706_v56 = vsub.f32 %v10227_v55, %v6872_v33  ;;  %v4851_v6 = vmul.f32 %v10255_v36, %v4705_v34  ;;  %v4837_v27 = vmul.f32 %v10260_v12, %v4691_v37  ;;  %v10382_v42 = vld [vmem:[%s11035_s8] sm:$0xff]  ;;  %v11601_v30 = vld [vmem:[#allocation17_spill] sm:$0xff] }
 0x288   :  { %6891 = vtanh.f32 %v3610_v9  ;;  %v4708_v16 = vsub.f32 %v10284_v19, %v6874_v2  ;;  %v4853_v29 = vmul.f32 %v10260_v12, %v4707_v26  ;;  %v4836_v31 = vmul.f32 %v10265_v39, %v4690_v47  ;;  %v10356_v32 = vpop.eup %6875  ;;  %v11603_v28 = vld [vmem:[#allocation20_spill] sm:$0xff] }
 0x289   :  { %6893 = vtanh.f32 %v3723_v14  ;;  %v4852_v20 = vmul.f32 %v10265_v39, %v4706_v56  ;;  %v6392_v22 = vpack.c.bf16 %v4851_v6, %v4835_v1  ;;  %v4838_v55 = vmul.f32 %v10270_v3, %v4692_v4  ;;  %v11597_v14 = vld [vmem:[#allocation13_spill] sm:$0xff] }
 0x28a   :  { %6895 = vtanh.f32 %v10300_v57  ;;  %v4854_v36 = vmul.f32 %v10270_v3, %v4708_v16  ;;  %v6400_v9 = vpack.c.bf16 %v4853_v29, %v4837_v27  ;;  %v10361_v19 = vpop.eup %6877  ;;  %v6231_v12 = vmul.f32 -1.442695, %v3624_v11  ;;  %v11598_v57 = vld [vmem:[#allocation14_spill] sm:$0xff]  ;;  %v10406_v34 = vld [vmem:[%s11035_s8 + $0x8] sm:$0xff] }
 0x28b   :  { %6897 = vtanh.f32 %v10305_v60  ;;  %v3630_v35 = vadd.f32 %v11597_v14, %v10131_v51  ;;  %v6390_v63 = vpack.c.bf16 %v4852_v20, %v4836_v31  ;;  %v6233_v25 = vmul.f32 -1.442695, %v3737_v23  ;;  %v11599_v60 = vld [vmem:[#allocation15_spill] sm:$0xff] }
 0x28c   :  { %v10366_v39 = vpop.eup %6879  ;;  %6899 = vtanh.f32 %v10309_v48  ;;  %v3743_v59 = vadd.f32 %v11598_v57, %v10131_v51  ;;  %v6398_v54 = vpack.c.bf16 %v4854_v36, %v4838_v55  ;;  %v6246_v44 = vmul.f32 -1.442695, %v3628_v50 }
 0x28d   :  { %v10371_v3 = vpop.eup %6881  ;;  %6901 = vpow2.f32 %v6230_v46  ;;  %v3634_v17 = vadd.f32 %v11599_v60, %v10121_v62  ;;  %6391 = vmatprep.subr.bf16.mxu0 %v6390_v63  ;;  %v6248_v15 = vmul.f32 -1.442695, %v3741_v45  ;;  %v3747_v48 = vadd.f32 %v11600_v49, %v10121_v62 }
 0x28e   :  { %v10375_v18 = vpop.eup %6883  ;;  %6903 = vpow2.f32 %v6232_v0  ;;  %6399 = vmatprep.subr.bf16.mxu1 %v6398_v54  ;;  %6393 = vmatpush1.bf16.msra.mxu0 %v6392_v22  ;;  %v6247_v8 = vmul.f32 -1.442695, %v3630_v35  ;;  %v3636_v37 = vadd.f32 %v11601_v30, %v10121_v62  ;;  %v6249_v46 = vmul.f32 -1.442695, %v3743_v59  ;;  %v11605_v59 = vld [vmem:[#allocation21_spill] sm:$0xff] }
 0x28f   :  { %v10384_v24 = vpop.eup %6885  ;;  %6905 = vpow2.f32 %v6231_v12  ;;  %6401 = vmatpush1.bf16.msra.mxu1 %v6400_v9  ;;  %v3749_v47 = vadd.f32 %v11602_v21, %v10121_v62  ;;  %v6262_v0 = vmul.f32 -1.442695, %v3634_v17  ;;  %v3640_v4 = vadd.f32 %v11603_v28, %v10133_v53  ;;  %v11606_v17 = vld [vmem:[#allocation22_spill] sm:$0xff] }
 0x290   :  { %v10388_v38 = vpop.eup %6887  ;;  %6907 = vpow2.f32 %v6233_v25  ;;  %v6264_v11 = vmul.f32 -1.442695, %v3747_v48  ;;  %v11604_v23 = vmov 0.0   ;;  %v6263_v50 = vmul.f32 -1.442695, %v3636_v37 }
 0x291   :  { %v10392_v52 = vpop.eup %6889  ;;  %6909 = vpow2.f32 %v6246_v44  ;;  %6290 = vmatmul.mubr.msk.f32.vlgmr.msra.gmra.mrb[64].mxu0 %vm4881_vm0, %v10382_v42  ;;  %v6265_v45 = vmul.f32 -1.442695, %v3749_v47  ;;  %v6278_v2 = vmul.f32 -1.442695, %v3640_v4  ;;  %v3753_v54 = vadd.f32 %v11605_v59, %v10133_v53 }
 0x292   :  { %v10398_v43 = vpop.eup %6891  ;;  %6911 = vpow2.f32 %v6248_v15  ;;  %6292 = vmatmul.mubr.msk.f32.vlgmr.msra.gmra.mrb[64].mxu1 %vm4881_vm0, %v10382_v42  ;;  %4958 = vmatprep.mubr.f32.mxu0 %v11604_v23  ;;  %v3642_v15 = vadd.f32 %v11606_v17, %v10133_v53  ;;  %v11222_v28 = vsub.s32 4, %v11590_v41 }
 0x293   :  { %v10408_v33 = vpop.eup %6893  ;;  %6913 = vpow2.f32 %v6247_v8  ;;  %5035 = vmatprep.mubr.f32.mxu1 %v11604_v23  ;;  %v11607_v8 = vld [vmem:[#allocation24_spill] sm:$0xff] }
 0x294   :  { %v10411_v5 = vpop.eup %6895  ;;  %6915 = vpow2.f32 %v6249_v46  ;;  %v3755_v30 = vadd.f32 %v11607_v8, %v10133_v53 }
 0x295   :  { %v10413_v26 = vpop.eup %6897  ;;  %6917 = vpow2.f32 %v6262_v0  ;;  %6291 = vmatmul.mubr.msk.f32.gmra.mrb[66].mxu0 %vm4881_vm0, %v10406_v34  ;;  %v6280_v0 = vmul.f32 -1.442695, %v3753_v54 }
 0x296   :  { %v10417_v56 = vpop.eup %6899  ;;  %6919 = vpow2.f32 %v6264_v11  ;;  %6293 = vmatmul.mubr.msk.f32.gmra.mrb[66].mxu1 %vm4881_vm0, %v10406_v34  ;;  %5106 = vmatprep.mubr.f32.mxu0 %v11604_v23 }
 0x297   :  { %v6902_v1 = vpop.eup %6901  ;;  %6921 = vpow2.f32 %v6263_v50  ;;  %5183 = vmatprep.mubr.f32.mxu1 %v11604_v23  ;;  %v6279_v50 = vmul.f32 -1.442695, %v3642_v15 }
 0x298   :  { %v6904_v6 = vpop.eup %6903  ;;  %v4469_v16 = vadd.f32 1.0, %v6902_v1  ;;  %6923 = vpow2.f32 %v6265_v45  ;;  %v11221_v45 = vsub.s32 6, %v11590_v41 }
 0x299   :  { %v6906_v27 = vpop.eup %6905  ;;  %v4471_v29 = vadd.f32 1.0, %v6904_v6  ;;  %6925 = vpow2.f32 %v6278_v2  ;;  %v508_v2 = vld [vmem:[%s11034_s5 + $0x8] sm:$0xff]  ;;  %v6281_v6 = vmul.f32 -1.442695, %v3755_v30 }
 0x29a   :  { %v6908_v31 = vpop.eup %6907  ;;  %6927 = vrcp.f32 %v4469_v16  ;;  %v4470_v20 = vadd.f32 1.0, %v6906_v27  ;;  %v11220_v16 = vsub.s32 5, %v11590_v41 }
 0x29b   :  { %v6910_v22 = vpop.eup %6909  ;;  %6929 = vrcp.f32 %v4471_v29  ;;  %v4472_v55 = vadd.f32 1.0, %v6908_v31  ;;  %v11219_v31 = vsub.s32 7, %v11590_v41 }
 0x29c   :  { %v6912_v36 = vpop.eup %6911  ;;  %6931 = vrcp.f32 %v4470_v20  ;;  %v4485_v9 = vadd.f32 1.0, %v6910_v22 }
 0x29d   :  { %v6914_v12 = vpop.eup %6913  ;;  %6933 = vrcp.f32 %v4472_v55  ;;  %v4487_v14 = vadd.f32 1.0, %v6912_v36  ;;  %v4742_v36 = vrot.slane %v10159_v13, %v11222_v28  ;;  %v11613_v28 = vld [vmem:[#allocation25_spill] sm:$0xff] }
 0x29e   :  { %v6916_v35 = vpop.eup %6915  ;;  %6935 = vrcp.f32 %v4485_v9  ;;  %v4486_v63 = vadd.f32 1.0, %v6914_v12  ;;  %v6161_v9 = vmul.f32 -1.442695, %v508_v2 }
 0x29f   :  { %v6918_v25 = vpop.eup %6917  ;;  %6937 = vrcp.f32 %v4487_v14  ;;  %v4488_v57 = vadd.f32 1.0, %v6916_v35 }
 0x2a0   :  { %v6920_v44 = vpop.eup %6919  ;;  %6939 = vrcp.f32 %v4486_v63  ;;  %v4501_v60 = vadd.f32 1.0, %v6918_v25  ;;  %v11608_v25 = vld [vmem:[#allocation10_spill] sm:$0xff] }
 0x2a1   :  { %v6922_v49 = vpop.eup %6921  ;;  %6941 = vrcp.f32 %v4488_v57  ;;  %v4503_v48 = vadd.f32 1.0, %v6920_v44  ;;  %v3729_v57 = vadd.f32 %v11608_v25, %v10163_v10 }
 0x2a2   :  { %v6924_v37 = vpop.eup %6923  ;;  %6943 = vrcp.f32 %v4501_v60  ;;  %v4502_v46 = vadd.f32 1.0, %v6922_v49 }
 0x2a3   :  { %v6926_v21 = vpop.eup %6925  ;;  %6945 = vrcp.f32 %v4503_v48  ;;  %v4504_v47 = vadd.f32 1.0, %v6924_v37 }
 0x2a4   :  { %v6928_v4 = vpop.eup %6927  ;;  %6947 = vrcp.f32 %v4502_v46  ;;  %v4517_v11 = vadd.f32 1.0, %v6926_v21 }
 0x2a5   :  { %v6930_v1 = vpop.eup %6929  ;;  %6949 = vrcp.f32 %v4504_v47  ;;  %v4661_v27 = vsub.f32 %v10356_v32, %v6928_v4  ;;  %v10446_v32 = vrot.slane %v10159_v13, %v11221_v45 }
 0x2a6   :  { %v6932_v29 = vpop.eup %6931  ;;  %6951 = vrcp.f32 %v4517_v11  ;;  %v4663_v20 = vsub.f32 %v10361_v19, %v6930_v1  ;;  %v10451_v19 = vrot.slane %v10159_v13, %v11220_v16 }
 0x2a7   :  { %v6934_v22 = vpop.eup %6933  ;;  %6953 = vpow2.f32 %v6280_v0  ;;  %v4662_v55 = vsub.f32 %v10366_v39, %v6932_v29  ;;  %v4807_v60 = vmul.f32 %v4742_v36, %v4661_v27 }
 0x2a8   :  { %v6936_v12 = vpop.eup %6935  ;;  %6955 = vpow2.f32 %v6279_v50  ;;  %v4664_v14 = vsub.f32 %v10371_v3, %v6934_v22  ;;  %v10459_v3 = vrot.slane %v10159_v13, %v11219_v31  ;;  %v4809_v8 = vmul.f32 %v10446_v32, %v4663_v20  ;;  %v11610_v50 = vld [vmem:[#allocation61_spill] sm:$0xff] }
 0x2a9   :  { %v6938_v35 = vpop.eup %6937  ;;  %6957 = vpow2.f32 %v6281_v6  ;;  %v4677_v39 = vsub.f32 %v10375_v18, %v6936_v12  ;;  %v11609_v18 = vld [vmem:[#allocation58_spill] sm:$0xff]  ;;  %v3731_v2 = vadd.f32 %v11610_v50, %v10163_v10 }
 0x2aa   :  { %v6940_v63 = vpop.eup %6939  ;;  %v4679_v59 = vsub.f32 %v10384_v24, %v6938_v35  ;;  %6959 = vpow2.f32 %v6161_v9  ;;  %v3618_v49 = vadd.f32 %v11609_v18, %v10163_v10  ;;  %v4808_v24 = vmul.f32 %v10451_v19, %v4662_v55 }
 0x2ab   :  { %v6942_v54 = vpop.eup %6941  ;;  %v4678_v44 = vsub.f32 %v10388_v38, %v6940_v63  ;;  %v4823_v17 = vmul.f32 %v4742_v36, %v4677_v39  ;;  %v4810_v47 = vmul.f32 %v10459_v3, %v4664_v14  ;;  %6961 = vtanh.f32 %v3729_v57 }
 0x2ac   :  { %v6944_v15 = vpop.eup %6943  ;;  %v4680_v48 = vsub.f32 %v10392_v52, %v6942_v54  ;;  %v4825_v30 = vmul.f32 %v10446_v32, %v4679_v59  ;;  %6963 = vtanh.f32 %v3618_v49 }
 0x2ad   :  { %v10468_v13 = vpop.eup %6945  ;;  %v4824_v37 = vmul.f32 %v10451_v19, %v4678_v44  ;;  %v6404_v38 = vpack.c.bf16 %v4823_v17, %v4807_v60  ;;  %v4693_v46 = vsub.f32 %v10398_v43, %v6944_v15  ;;  %6965 = vtanh.f32 %v3731_v2 }
 0x2ae   :  { %v10473_v21 = vpop.eup %6947  ;;  %v4826_v0 = vmul.f32 %v10459_v3, %v4680_v48  ;;  %v6412_v52 = vpack.c.bf16 %v4825_v30, %v4809_v8  ;;  %v4695_v4 = vsub.f32 %v10408_v33, %v10468_v13 }
 0x2af   :  { %v10479_v11 = vpop.eup %6949  ;;  %v6402_v1 = vpack.c.bf16 %v4824_v37, %v4808_v24  ;;  %v4694_v6 = vsub.f32 %v10411_v5, %v10473_v21  ;;  %v10488_v35 = vmul.f32 %v4742_v36, %v4693_v46 }
 0x2b0   :  { %v6952_v43 = vpop.eup %6951  ;;  %v6410_v27 = vpack.c.bf16 %v4826_v0, %v4810_v47  ;;  %v4696_v29 = vsub.f32 %v10413_v26, %v10479_v11 }
 0x2b1   :  { %v6954_v20 = vpop.eup %6953  ;;  %6403 = vmatprep.subr.bf16.mxu0 %v6402_v1  ;;  %v4709_v22 = vsub.f32 %v10417_v56, %v6952_v43  ;;  %v4840_v33 = vmul.f32 %v10451_v19, %v4694_v6 }
 0x2b2   :  { %v6956_v55 = vpop.eup %6955  ;;  %v4519_v9 = vadd.f32 1.0, %v6954_v20  ;;  %6411 = vmatprep.subr.bf16.mxu1 %v6410_v27  ;;  %6405 = vmatpush1.bf16.msra.mxu0 %v6404_v38 }
 0x2b3   :  { %v6958_v12 = vpop.eup %6957  ;;  %v4518_v14 = vadd.f32 1.0, %v6956_v55  ;;  %6413 = vmatpush1.bf16.msra.mxu1 %v6412_v52  ;;  %v10490_v39 = vmul.f32 %v4742_v36, %v4709_v22 }
 0x2b4   :  { %6967 = vrcp.f32 %v4519_v9  ;;  %v4520_v63 = vadd.f32 1.0, %v6958_v12  ;;  %v6960_v25 = vpop.eup %6959  ;;  %v4841_v12 = vmul.f32 %v10446_v32, %v4695_v4 }
 0x2b5   :  { %6969 = vrcp.f32 %v4518_v14  ;;  %v3823_v57 = vpop.f32.mrb[32].mxu0  ;;  %v6408_v56 = vpack.c.bf16 %v10490_v39, %v10488_v35  ;;  %v516_v60 = vadd.f32 1.0, %v6960_v25  ;;  %v6962_v48 = vpop.eup %6961 }
 0x2b6   :  { %6971 = vrcp.f32 %v4520_v63  ;;  %v3936_v59 = vpop.f32.mrb[32].mxu1  ;;  %v3825_v54 = vpop.f32.mrb[33].mxu0  ;;  %v3824_v17 = vadd.f32 %v3823_v57, %v10135_v61 }
 0x2b7   :  { %v3938_v44 = vpop.f32.mrb[33].mxu1  ;;  %v3937_v18 = vadd.f32 %v3936_v59, %v10135_v61  ;;  %v3826_v8 = vadd.f32 %v3825_v54, %v10135_v61  ;;  %v6964_v24 = vpop.eup %6963  ;;  %6973 = vrcp.f32 %v516_v60 }
 0x2b8   :  { %v3939_v37 = vadd.f32 %v3938_v44, %v10135_v61  ;;  %v6966_v38 = vpop.eup %6965  ;;  %6975 = vtanh.f32 %v3824_v17 }
 0x2b9   :  { %v3829_v15 = vpop.f32.mrb[34].mxu0  ;;  %6977 = vtanh.f32 %v3937_v18 }
 0x2ba   :  { %v3942_v36 = vpop.f32.mrb[34].mxu1  ;;  %v3831_v49 = vpop.f32.mrb[35].mxu0  ;;  %v3830_v46 = vadd.f32 %v3829_v15, %v10141_v40  ;;  %6979 = vtanh.f32 %v3826_v8 }
 0x2bb   :  { %v3944_v30 = vpop.f32.mrb[35].mxu1  ;;  %v3943_v52 = vadd.f32 %v3942_v36, %v10141_v40  ;;  %v3832_v43 = vadd.f32 %v3831_v49, %v10141_v40  ;;  %6981 = vtanh.f32 %v3939_v37 }
 0x2bc   :  { %v3945_v55 = vadd.f32 %v3944_v30, %v10141_v40  ;;  %6983 = vtanh.f32 %v3830_v46 }
 0x2bd   :  { %v3835_v47 = vpop.f32.mrb[36].mxu0  ;;  %6985 = vtanh.f32 %v3943_v52 }
 0x2be   :  { %v6968_v0 = vpop.eup %6967  ;;  %v3948_v50 = vpop.f32.mrb[36].mxu1  ;;  %v3836_v14 = vadd.f32 %v3835_v47, %v10151_v58  ;;  %6987 = vtanh.f32 %v3832_v43 }
 0x2bf   :  { %v3837_v2 = vpop.f32.mrb[37].mxu0  ;;  %v6970_v1 = vpop.eup %6969  ;;  %v4711_v20 = vsub.f32 %v6962_v48, %v6968_v0  ;;  %v3949_v59 = vadd.f32 %v3948_v50, %v10151_v58  ;;  %6989 = vtanh.f32 %v3945_v55 }
 0x2c0   :  { %v3950_v27 = vpop.f32.mrb[37].mxu1  ;;  %v6972_v22 = vpop.eup %6971  ;;  %v4710_v9 = vsub.f32 %v6964_v24, %v6970_v1  ;;  %v3838_v4 = vadd.f32 %v3837_v2, %v10151_v58  ;;  %6991 = vtanh.f32 %v3836_v14 }
 0x2c1   :  { %v3841_v63 = vpop.f32.mrb[38].mxu0  ;;  %v4712_v25 = vsub.f32 %v6966_v38, %v6972_v22  ;;  %v4857_v57 = vmul.f32 %v10446_v32, %v4711_v20  ;;  %v4842_v32 = vmul.f32 %v10459_v3, %v4696_v29  ;;  %v3951_v15 = vadd.f32 %v3950_v27, %v10151_v58  ;;  %v10528_v36 = vpop.eup %6973 }
 0x2c2   :  { %v10509_v54 = vpop.f32.mrb[38].mxu1  ;;  %v10511_v44 = vpop.f32.mrb[39].mxu0  ;;  %v4856_v13 = vmul.f32 %v10451_v19, %v4710_v9  ;;  %v3842_v19 = vadd.f32 %v3841_v63, %v10163_v10  ;;  %6993 = vtanh.f32 %v3949_v59 }
 0x2c3   :  { %v10519_v60 = vpop.f32.mrb[39].mxu1  ;;  %v4858_v17 = vmul.f32 %v10459_v3, %v4712_v25  ;;  %v6416_v21 = vpack.c.bf16 %v4857_v57, %v4841_v12  ;;  %v10531_v29 = vpop.eup %6975  ;;  %6995 = vtanh.f32 %v3838_v4 }
 0x2c4   :  { %v6406_v5 = vpack.c.bf16 %v4856_v13, %v4840_v33  ;;  %v10538_v30 = vpop.eup %6977  ;;  %6997 = vtanh.f32 %v3951_v15 }
 0x2c5   :  { %v3847_v6 = vpop.f32.mrb[40].mxu0  ;;  %v6414_v18 = vpack.c.bf16 %v4858_v17, %v4842_v32  ;;  %v10541_v38 = vpop.eup %6979  ;;  %6999 = vtanh.f32 %v3842_v19 }
 0x2c6   :  { %v3848_v49 = vadd.f32 %v3847_v6, %v10119_v7  ;;  %v3960_v26 = vpop.f32.mrb[40].mxu1  ;;  %v3849_v11 = vpop.f32.mrb[41].mxu0  ;;  %6407 = vmatprep.subr.bf16.mxu0 %v6406_v5 }
 0x2c7   :  { %v3961_v3 = vadd.f32 %v3960_v26, %v10119_v7  ;;  %v3850_v48 = vadd.f32 %v3849_v11, %v10119_v7  ;;  %v3962_v8 = vpop.f32.mrb[41].mxu1  ;;  %6415 = vmatprep.subr.bf16.mxu1 %v6414_v18  ;;  %6409 = vmatpush1.bf16.msra.mxu0 %v6408_v56  ;;  %v10543_v52 = vpop.eup %6981 }
 0x2c8   :  { %v6234_v24 = vmul.f32 -1.442695, %v3848_v49  ;;  %v3963_v37 = vadd.f32 %v3962_v8, %v10119_v7  ;;  %6417 = vmatpush1.bf16.msra.mxu1 %v6416_v21  ;;  %v10548_v2 = vpop.eup %6983 }
 0x2c9   :  { %v6236_v46 = vmul.f32 -1.442695, %v3961_v3  ;;  %v6235_v47 = vmul.f32 -1.442695, %v3850_v48  ;;  %v3853_v0 = vpop.f32.mrb[42].mxu0  ;;  %v10555_v20 = vpop.eup %6985 }
 0x2ca   :  { %7001 = vpow2.f32 %v6234_v24  ;;  %v6237_v50 = vmul.f32 -1.442695, %v3963_v37  ;;  %v3854_v35 = vadd.f32 %v3853_v0, %v10131_v51  ;;  %v3966_v39 = vpop.f32.mrb[42].mxu1  ;;  %v3855_v56 = vpop.f32.mrb[43].mxu0  ;;  %6294 = vmatmul.mubr.msk.f32.vlgmr.msra.gmra.mrb[68].mxu0 %vm4881_vm0, %v10382_v42 }
 0x2cb   :  { %7003 = vpow2.f32 %v6236_v46  ;;  %v3967_v1 = vadd.f32 %v3966_v39, %v10131_v51  ;;  %v3856_v43 = vadd.f32 %v3855_v56, %v10131_v51  ;;  %v3968_v27 = vpop.f32.mrb[43].mxu1  ;;  %6296 = vmatmul.mubr.msk.f32.vlgmr.msra.gmra.mrb[68].mxu1 %vm4881_vm0, %v10382_v42  ;;  %5112 = vmatprep.mubr.f32.mxu0 %v11604_v23  ;;  %v10559_v9 = vpop.eup %6987 }
 0x2cc   :  { %7005 = vpow2.f32 %v6235_v47  ;;  %v6250_v22 = vmul.f32 -1.442695, %v3854_v35  ;;  %v3969_v55 = vadd.f32 %v3968_v27, %v10131_v51  ;;  %5189 = vmatprep.mubr.f32.mxu1 %v11604_v23  ;;  %v10561_v25 = vpop.eup %6989 }
 0x2cd   :  { %7007 = vpow2.f32 %v6237_v50  ;;  %v6252_v12 = vmul.f32 -1.442695, %v3967_v1  ;;  %v6251_v14 = vmul.f32 -1.442695, %v3856_v43  ;;  %v3859_v63 = vpop.f32.mrb[44].mxu0  ;;  %v10566_v13 = vpop.eup %6991 }
 0x2ce   :  { %7009 = vpow2.f32 %v6250_v22  ;;  %v6253_v42 = vmul.f32 -1.442695, %v3969_v55  ;;  %v3860_v57 = vadd.f32 %v3859_v63, %v10121_v62  ;;  %v3972_v59 = vpop.f32.mrb[44].mxu1  ;;  %v3861_v33 = vpop.f32.mrb[45].mxu0  ;;  %6295 = vmatmul.mubr.msk.f32.gmra.mrb[70].mxu0 %vm4881_vm0, %v10406_v34 }
 0x2cf   :  { %7011 = vpow2.f32 %v6252_v12  ;;  %v3973_v4 = vadd.f32 %v3972_v59, %v10121_v62  ;;  %v3862_v32 = vadd.f32 %v3861_v33, %v10121_v62  ;;  %v3974_v17 = vpop.f32.mrb[45].mxu1  ;;  %6297 = vmatmul.mubr.msk.f32.gmra.mrb[70].mxu1 %vm4881_vm0, %v10406_v34  ;;  %5260 = vmatprep.mubr.f32.mxu0 %v11604_v23  ;;  %v10573_v15 = vpop.eup %6993  ;;  %v3955_v12 = vadd.f32 %v10509_v54, %v10163_v10 }
 0x2d0   :  { %7013 = vpow2.f32 %v6251_v14  ;;  %v6266_v5 = vmul.f32 -1.442695, %v3860_v57  ;;  %v3975_v21 = vadd.f32 %v3974_v17, %v10121_v62  ;;  %5337 = vmatprep.mubr.f32.mxu1 %v11604_v23  ;;  %v10577_v19 = vpop.eup %6995  ;;  %v3844_v17 = vadd.f32 %v10511_v44, %v10163_v10 }
 0x2d1   :  { %7015 = vpow2.f32 %v6253_v42  ;;  %v6268_v6 = vmul.f32 -1.442695, %v3973_v4  ;;  %v6267_v18 = vmul.f32 -1.442695, %v3862_v32  ;;  %v3865_v49 = vpop.f32.mrb[46].mxu0  ;;  %v10579_v26 = vpop.eup %6997 }
 0x2d2   :  { %7017 = vpow2.f32 %v6266_v5  ;;  %v6269_v34 = vmul.f32 -1.442695, %v3975_v21  ;;  %v3866_v11 = vadd.f32 %v3865_v49, %v10133_v53  ;;  %v3978_v3 = vpop.f32.mrb[46].mxu1  ;;  %v3867_v48 = vpop.f32.mrb[47].mxu0 }
 0x2d3   :  { %v10582_v8 = vpop.eup %6999  ;;  %7019 = vpow2.f32 %v6268_v6  ;;  %v3980_v24 = vpop.f32.mrb[47].mxu1  ;;  %v3957_v6 = vadd.f32 %v10519_v60, %v10163_v10  ;;  %v3979_v49 = vadd.f32 %v3978_v3, %v10133_v53 }
 0x2d4   :  { %v7002_v37 = vpop.eup %7001  ;;  %7021 = vpow2.f32 %v6267_v18  ;;  %v6282_v46 = vmul.f32 -1.442695, %v3866_v11 }
 0x2d5   :  { %v7004_v47 = vpop.eup %7003  ;;  %v4473_v0 = vadd.f32 1.0, %v7002_v37  ;;  %7023 = vpow2.f32 %v6269_v34  ;;  %v10584_v50 = vpop.f32.mrb[48].mxu0  ;;  %v3868_v37 = vadd.f32 %v3867_v48, %v10133_v53 }
 0x2d6   :  { %v7006_v35 = vpop.eup %7005  ;;  %v4475_v39 = vadd.f32 1.0, %v7004_v47  ;;  %7025 = vpow2.f32 %v6282_v46  ;;  %v10586_v56 = vpop.f32.mrb[48].mxu1 }
 0x2d7   :  { %v10588_v1 = vpop.f32.mrb[49].mxu0  ;;  %v7008_v43 = vpop.eup %7007  ;;  %7027 = vrcp.f32 %v4473_v0  ;;  %v4474_v27 = vadd.f32 1.0, %v7006_v35  ;;  %v3981_v0 = vadd.f32 %v3980_v24, %v10133_v53 }
 0x2d8   :  { %v10590_v22 = vpop.f32.mrb[49].mxu1  ;;  %v7010_v55 = vpop.eup %7009  ;;  %7029 = vrcp.f32 %v4475_v39  ;;  %v4476_v14 = vadd.f32 1.0, %v7008_v43 }
 0x2d9   :  { %v7012_v63 = vpop.eup %7011  ;;  %7031 = vrcp.f32 %v4474_v27  ;;  %v4489_v42 = vadd.f32 1.0, %v7010_v55  ;;  %v10594_v57 = vpop.f32.mrb[50].mxu0  ;;  %v6284_v55 = vmul.f32 -1.442695, %v3979_v49  ;;  %v6285_v24 = vmul.f32 -1.442695, %v3981_v0 }
 0x2da   :  { %v7014_v59 = vpop.eup %7013  ;;  %7033 = vrcp.f32 %v4476_v14  ;;  %v10596_v33 = vpop.f32.mrb[50].mxu1  ;;  %v4491_v11 = vadd.f32 1.0, %v7012_v63 }
 0x2db   :  { %v10598_v4 = vpop.f32.mrb[51].mxu0  ;;  %v7016_v32 = vpop.eup %7015  ;;  %7035 = vrcp.f32 %v4489_v42  ;;  %v4490_v5 = vadd.f32 1.0, %v7014_v59 }
 0x2dc   :  { %v10602_v54 = vpop.f32.mrb[51].mxu1  ;;  %v7018_v21 = vpop.eup %7017  ;;  %7037 = vtanh.f32 %v3955_v12  ;;  %v4492_v18 = vadd.f32 1.0, %v7016_v32  ;;  %v6283_v12 = vmul.f32 -1.442695, %v3868_v37 }
 0x2dd   :  { %v7020_v34 = vpop.eup %7019  ;;  %7039 = vrcp.f32 %v4490_v5  ;;  %v10608_v46 = vpop.f32.mrb[52].mxu0  ;;  %v4505_v47 = vadd.f32 1.0, %v7018_v21 }
 0x2de   :  { %v7022_v44 = vpop.eup %7021  ;;  %7041 = vrcp.f32 %v4492_v18  ;;  %v10611_v35 = vpop.f32.mrb[52].mxu1  ;;  %v4507_v43 = vadd.f32 1.0, %v7020_v34 }
 0x2df   :  { %v10613_v39 = vpop.f32.mrb[53].mxu0  ;;  %v7024_v60 = vpop.eup %7023  ;;  %7043 = vtanh.f32 %v3844_v17  ;;  %v4506_v5 = vadd.f32 1.0, %v7022_v44  ;;  %v4050_v44 = vadd.f32 %v10584_v50, %v10135_v61 }
 0x2e0   :  { %v10615_v3 = vpop.f32.mrb[53].mxu1  ;;  %v7026_v27 = vpop.eup %7025  ;;  %7045 = vtanh.f32 %v3957_v6  ;;  %v4508_v49 = vadd.f32 1.0, %v7024_v60  ;;  %v11611_v60 = vsub.s32 1, %v11590_v41  ;;  %v11614_v6 = vsub.s32 2, %v11590_v41 }
 0x2e1   :  { %v10617_v48 = vpop.eup %7027  ;;  %7047 = vrcp.f32 %v4491_v11  ;;  %v10619_v14 = vpop.f32.mrb[54].mxu0  ;;  %v4521_v37 = vadd.f32 1.0, %v7026_v27 }
 0x2e2   :  { %v10621_v63 = vpop.eup %7029  ;;  %7049 = vrcp.f32 %v4505_v47  ;;  %v10623_v42 = vpop.f32.mrb[54].mxu1 }
 0x2e3   :  { %v10625_v59 = vpop.f32.mrb[55].mxu0  ;;  %v7032_v17 = vpop.eup %7031  ;;  %7051 = vrcp.f32 %v4507_v43 }
 0x2e4   :  { %v10629_v21 = vpop.f32.mrb[55].mxu1  ;;  %v7034_v18 = vpop.eup %7033  ;;  %7053 = vpow2.f32 %v6284_v55  ;;  %v4666_v34 = vsub.f32 %v10541_v38, %v7032_v17  ;;  %v10644_v55 = vrot.slane %v10528_v36, %v11611_v60 }
 0x2e5   :  { %v7036_v11 = vpop.eup %7035  ;;  %7055 = vpow2.f32 %v6283_v12  ;;  %v4073_v47 = vpop.f32.mrb[56].mxu0  ;;  %v4668_v0 = vsub.f32 %v10543_v52, %v7034_v18  ;;  %v4163_v52 = vadd.f32 %v10586_v56, %v10135_v61  ;;  %v4052_v18 = vadd.f32 %v10588_v1, %v10135_v61 }
 0x2e6   :  { %v10635_v31 = vpop.eup %7037  ;;  %7057 = vpow2.f32 %v6285_v24  ;;  %v4186_v43 = vpop.f32.mrb[56].mxu1  ;;  %v4681_v38 = vsub.f32 %v10548_v2, %v7036_v11  ;;  %v11612_v24 = vsub.s32 3, %v11590_v41  ;;  %v4165_v56 = vadd.f32 %v10590_v22, %v10135_v61 }
 0x2e7   :  { %v10639_v16 = vpop.f32.mrb[57].mxu0  ;;  %v7040_v27 = vpop.eup %7039  ;;  %7059 = vrcp.f32 %v4506_v5  ;;  %v4169_v61 = vadd.f32 %v10596_v33, %v10141_v40  ;;  %v4171_v33 = vadd.f32 %v10602_v54, %v10141_v40 }
 0x2e8   :  { %v10649_v12 = vpop.f32.mrb[57].mxu1  ;;  %v10654_v50 = vrot.slane %v10528_v36, %v11612_v24  ;;  %v7042_v17 = vpop.eup %7041  ;;  %7061 = vrcp.f32 %v4508_v49  ;;  %v4682_v60 = vsub.f32 %v10559_v9, %v7040_v27  ;;  %v4056_v49 = vadd.f32 %v10594_v57, %v10141_v40 }
 0x2e9   :  { %v10659_v2 = vpop.eup %7043  ;;  %7063 = vrcp.f32 %v4521_v37  ;;  %v10663_v5 = vpop.f32.mrb[58].mxu0  ;;  %v4684_v11 = vsub.f32 %v10561_v25, %v7042_v17  ;;  %v4812_v9 = vmul.f32 %v10644_v55, %v4666_v34  ;;  %v4058_v17 = vadd.f32 %v10598_v4, %v10141_v40 }
 0x2ea   :  { %v10666_v45 = vpop.eup %7045  ;;  %7065 = vtanh.f32 %v4050_v44  ;;  %v10670_v24 = vpop.f32.mrb[58].mxu1  ;;  %v4828_v37 = vmul.f32 %v10644_v55, %v4682_v60  ;;  %v4814_v22 = vmul.f32 %v10654_v50, %v4668_v0  ;;  %v10688_v60 = vrot.slane %v10528_v36, %v11613_v28 }
 0x2eb   :  { %v10672_v1 = vpop.f32.mrb[59].mxu0  ;;  %v7048_v27 = vpop.eup %7047  ;;  %7067 = vtanh.f32 %v4163_v52  ;;  %v4830_v44 = vmul.f32 %v10654_v50, %v4684_v11  ;;  %v11615_v28 = vsub.f32 %v10531_v29, %v10617_v48  ;;  %v4068_v29 = vadd.f32 %v10619_v14, %v10163_v10 }
 0x2ec   :  { %v10678_v25 = vpop.f32.mrb[59].mxu1  ;;  %v10682_v57 = vpop.eup %7049  ;;  %7069 = vtanh.f32 %v4052_v18  ;;  %v6418_v34 = vpack.c.bf16 %v4828_v37, %v4812_v9  ;;  %v10699_v18 = vrot.slane %v10528_v36, %v11614_v6  ;;  %v4062_v9 = vadd.f32 %v10608_v46, %v10151_v58 }
 0x2ed   :  { %v10690_v52 = vpop.eup %7051  ;;  %7071 = vtanh.f32 %v4165_v56  ;;  %v10694_v0 = vpop.f32.mrb[60].mxu0  ;;  %v6426_v11 = vpack.c.bf16 %v4830_v44, %v4814_v22  ;;  %v4175_v37 = vadd.f32 %v10611_v35, %v10151_v58  ;;  %v4827_v54 = vmul.f32 %v10688_v60, %v4681_v38 }
 0x2ee   :  { %v7054_v4 = vpop.eup %7053  ;;  %7073 = vtanh.f32 %v4056_v49  ;;  %v10705_v56 = vpop.f32.mrb[60].mxu1  ;;  %6419 = vmatprep.subr.bf16.mxu0 %v6418_v34  ;;  %v4064_v6 = vadd.f32 %v10613_v39, %v10151_v58  ;;  %v4074_v49 = vadd.f32 %v4073_v47, %v10119_v7  ;;  %v4187_v34 = vadd.f32 %v4186_v43, %v10119_v7 }
 0x2ef   :  { %v10707_v40 = vpop.f32.mrb[61].mxu0  ;;  %v7056_v22 = vpop.eup %7055  ;;  %v4523_v44 = vadd.f32 1.0, %v7054_v4  ;;  %7075 = vtanh.f32 %v4169_v61  ;;  %6427 = vmatprep.subr.bf16.mxu1 %v6426_v11  ;;  %v4811_v38 = vmul.f32 %v10688_v60, %v11615_v28  ;;  %v4177_v39 = vadd.f32 %v10615_v3, %v10151_v58 }
 0x2f0   :  { %v10713_v46 = vpop.f32.mrb[61].mxu1  ;;  %v7058_v32 = vpop.eup %7057  ;;  %v4522_v35 = vadd.f32 1.0, %v7056_v22  ;;  %7077 = vtanh.f32 %v4058_v17  ;;  %v4076_v47 = vadd.f32 %v10639_v16, %v10119_v7  ;;  %v4683_v28 = vsub.f32 %v10555_v20, %v7048_v27 }
 0x2f1   :  { %v10720_v4 = vpop.eup %7059  ;;  %7079 = vrcp.f32 %v4523_v44  ;;  %v4524_v61 = vadd.f32 1.0, %v7058_v32  ;;  %v10726_v11 = vpop.f32.mrb[62].mxu0  ;;  %v6420_v48 = vpack.c.bf16 %v4827_v54, %v4811_v38  ;;  %v6238_v58 = vmul.f32 -1.442695, %v4074_v49 }
 0x2f2   :  { %v10728_v17 = vpop.eup %7061  ;;  %7081 = vrcp.f32 %v4522_v35  ;;  %v10733_v43 = vpop.f32.mrb[62].mxu1  ;;  %v4189_v16 = vadd.f32 %v10649_v12, %v10119_v7  ;;  %v11616_v3 = vsub.f32 %v10538_v30, %v10621_v63  ;;  %v6240_v20 = vmul.f32 -1.442695, %v4187_v34 }
 0x2f3   :  { %v10735_v32 = vpop.f32.mrb[63].mxu0  ;;  %v7064_v22 = vpop.eup %7063  ;;  %7083 = vrcp.f32 %v4524_v61  ;;  %6421 = vmatpush1.bf16.msra.mxu0 %v6420_v48  ;;  %v4829_v27 = vmul.f32 %v10699_v18, %v4683_v28  ;;  %v4698_v54 = vsub.f32 %v10577_v19, %v10720_v4  ;;  %v6239_v7 = vmul.f32 -1.442695, %v4076_v47 }
 0x2f4   :  { %v4813_v44 = vmul.f32 %v10699_v18, %v11616_v3  ;;  %v10743_v35 = vpop.f32.mrb[63].mxu1  ;;  %v10745_v14 = vpop.eup %7065  ;;  %7085 = vtanh.f32 %v4171_v33  ;;  %v4080_v30 = vadd.f32 %v10663_v5, %v10131_v51  ;;  %v4193_v63 = vadd.f32 %v10670_v24, %v10131_v51 }
 0x2f5   :  { %v10750_v49 = vpop.eup %7067  ;;  %7087 = vtanh.f32 %v4062_v9  ;;  %v4082_v33 = vadd.f32 %v10672_v1, %v10131_v51  ;;  %v4195_v34 = vadd.f32 %v10678_v25, %v10131_v51  ;;  %v4700_v9 = vsub.f32 %v10579_v26, %v10728_v17 }
 0x2f6   :  { %v10756_v12 = vpop.eup %7069  ;;  %7089 = vtanh.f32 %v4175_v37  ;;  %v6428_v19 = vpack.c.bf16 %v4829_v27, %v4813_v44  ;;  %v4697_v5 = vsub.f32 %v10566_v13, %v10682_v57  ;;  %v4713_v24 = vsub.f32 %v10582_v8, %v7064_v22 }
 0x2f7   :  { %v10762_v38 = vpop.eup %7071  ;;  %7091 = vtanh.f32 %v4064_v6  ;;  %v6241_v37 = vmul.f32 -1.442695, %v4189_v16  ;;  %v4086_v1 = vadd.f32 %v10694_v0, %v10121_v62  ;;  %v4699_v51 = vsub.f32 %v10573_v15, %v10690_v52 }
 0x2f8   :  { %v10769_v4 = vpop.eup %7073  ;;  %7093 = vtanh.f32 %v4177_v39  ;;  %6429 = vmatpush1.bf16.msra.mxu1 %v6428_v19  ;;  %v4199_v26 = vadd.f32 %v10705_v56, %v10121_v62  ;;  %v4843_v13 = vmul.f32 %v10688_v60, %v4697_v5  ;;  %v4859_v8 = vmul.f32 %v10688_v60, %v4713_v24 }
 0x2f9   :  { %v10775_v25 = vpop.eup %7075  ;;  %7095 = vtanh.f32 %v4068_v29  ;;  %v6254_v6 = vmul.f32 -1.442695, %v4080_v30  ;;  %v6256_v61 = vmul.f32 -1.442695, %v4193_v63  ;;  %v6255_v0 = vmul.f32 -1.442695, %v4082_v33 }
 0x2fa   :  { %v10781_v57 = vpop.eup %7077  ;;  %7097 = vpow2.f32 %v6238_v58  ;;  %v6257_v47 = vmul.f32 -1.442695, %v4195_v34  ;;  %v4088_v15 = vadd.f32 %v10707_v40, %v10121_v62  ;;  %v6424_v52 = vpack.c.bf16 %v4859_v8, %v4843_v13 }
 0x2fb   :  { %v7080_v39 = vpop.eup %7079  ;;  %7099 = vpow2.f32 %v6240_v20  ;;  %v6270_v56 = vmul.f32 -1.442695, %v4086_v1  ;;  %v4201_v29 = vadd.f32 %v10713_v46, %v10121_v62  ;;  %v6272_v28 = vmul.f32 -1.442695, %v4199_v26  ;;  %v10813_v1 = vld [vmem:[%s11035_s8] sm:$0xff] }
 0x2fc   :  { %v7082_v17 = vpop.eup %7081  ;;  %7101 = vpow2.f32 %v6239_v7  ;;  %v4715_v60 = vsub.f32 %v10635_v31, %v7080_v39  ;;  %v4092_v22 = vadd.f32 %v10726_v11, %v10133_v53  ;;  %v4845_v3 = vmul.f32 %v10699_v18, %v4699_v51 }
 0x2fd   :  { %v7084_v48 = vpop.eup %7083  ;;  %7103 = vpow2.f32 %v6241_v37  ;;  %v4714_v58 = vsub.f32 %v10659_v2, %v7082_v17  ;;  %v6271_v31 = vmul.f32 -1.442695, %v4088_v15  ;;  %v4844_v46 = vmul.f32 %v10644_v55, %v4698_v54 }
 0x2fe   :  { %v10791_v16 = vpop.eup %7085  ;;  %7105 = vpow2.f32 %v6254_v6  ;;  %v4716_v40 = vsub.f32 %v10666_v45, %v7084_v48  ;;  %v4861_v44 = vmul.f32 %v10699_v18, %v4715_v60  ;;  %v4846_v2 = vmul.f32 %v10654_v50, %v4700_v9 }
 0x2ff   :  { %v10796_v62 = vpop.eup %7087  ;;  %7107 = vpow2.f32 %v6256_v61  ;;  %v4860_v20 = vmul.f32 %v10644_v55, %v4714_v58  ;;  %v6273_v18 = vmul.f32 -1.442695, %v4201_v29  ;;  %v6286_v33 = vmul.f32 -1.442695, %v4092_v22 }
 0x300   :  { %v10800_v11 = vpop.eup %7089  ;;  %7109 = vpow2.f32 %v6255_v0  ;;  %v4862_v27 = vmul.f32 %v10654_v50, %v4716_v40  ;;  %v6432_v45 = vpack.c.bf16 %v4861_v44, %v4845_v3  ;;  %v4205_v17 = vadd.f32 %v10733_v43, %v10133_v53 }
 0x301   :  { %v10804_v7 = vpop.eup %7091  ;;  %7111 = vpow2.f32 %v6257_v47  ;;  %v6422_v30 = vpack.c.bf16 %v4860_v20, %v4844_v46  ;;  %v10824_v47 = vld [vmem:[%s11035_s8 + $0x8] sm:$0xff]  ;;  %v4094_v60 = vadd.f32 %v10735_v32, %v10133_v53  ;;  %v4207_v22 = vadd.f32 %v10743_v35, %v10133_v53 }
 0x302   :  { %v10806_v63 = vpop.eup %7093  ;;  %7113 = vpow2.f32 %v6270_v56  ;;  %v6430_v54 = vpack.c.bf16 %v4862_v27, %v4846_v2  ;;  %v6288_v44 = vmul.f32 -1.442695, %v4205_v17 }
 0x303   :  { %v10808_v34 = vpop.eup %7095  ;;  %7115 = vpow2.f32 %v6272_v28  ;;  %6423 = vmatprep.subr.bf16.mxu0 %v6422_v30  ;;  %v6287_v20 = vmul.f32 -1.442695, %v4094_v60  ;;  %v6289_v2 = vmul.f32 -1.442695, %v4207_v22  ;;  %v11617_v30 = vsub.s32 4, %v11590_v41 }
 0x304   :  { %v7098_v55 = vpop.eup %7097  ;;  %7117 = vpow2.f32 %v6271_v31  ;;  %6431 = vmatprep.subr.bf16.mxu1 %v6430_v54  ;;  %6425 = vmatpush1.bf16.msra.mxu0 %v6424_v52  ;;  %v4183_v60 = vadd.f32 %v10629_v21, %v10163_v10 }
 0x305   :  { %v7100_v50 = vpop.eup %7099  ;;  %v4477_v19 = vadd.f32 1.0, %v7098_v55  ;;  %7119 = vpow2.f32 %v6273_v18  ;;  %6433 = vmatpush1.bf16.msra.mxu1 %v6432_v45 }
 0x306   :  { %v7102_v9 = vpop.eup %7101  ;;  %v4479_v5 = vadd.f32 1.0, %v7100_v50  ;;  %7121 = vpow2.f32 %v6286_v33  ;;  %v4774_v33 = vrot.slane %v10528_v36, %v11617_v30  ;;  %v11618_v50 = vsub.s32 6, %v11590_v41 }
 0x307   :  { %v7104_v24 = vpop.eup %7103  ;;  %7123 = vrcp.f32 %v4477_v19  ;;  %v4478_v37 = vadd.f32 1.0, %v7102_v9  ;;  %6298 = vmatmul.mubr.msk.f32.vlgmr.msra.gmra.mrb[72].mxu0 %vm4881_vm0, %v10813_v1 }
 0x308   :  { %v7106_v51 = vpop.eup %7105  ;;  %7125 = vrcp.f32 %v4479_v5  ;;  %v4480_v26 = vadd.f32 1.0, %v7104_v24  ;;  %6300 = vmatmul.mubr.msk.f32.vlgmr.msra.gmra.mrb[72].mxu1 %vm4881_vm0, %v10813_v1  ;;  %5266 = vmatprep.mubr.f32.mxu0 %v11604_v23  ;;  %v11620_v24 = vsub.s32 7, %v11590_v41 }
 0x309   :  { %v7108_v13 = vpop.eup %7107  ;;  %7127 = vrcp.f32 %v4478_v37  ;;  %v4493_v8 = vadd.f32 1.0, %v7106_v51  ;;  %5343 = vmatprep.mubr.f32.mxu1 %v11604_v23 }
 0x30a   :  { %v7110_v6 = vpop.eup %7109  ;;  %7129 = vrcp.f32 %v4480_v26  ;;  %v4495_v61 = vadd.f32 1.0, %v7108_v13  ;;  %v10859_v37 = vrot.slane %v10528_v36, %v11620_v24  ;;  %v4181_v26 = vadd.f32 %v10623_v42, %v10163_v10 }
 0x30b   :  { %v7112_v0 = vpop.eup %7111  ;;  %7131 = vrcp.f32 %v4493_v8  ;;  %v4494_v39 = vadd.f32 1.0, %v7110_v6  ;;  %6299 = vmatmul.mubr.msk.f32.gmra.mrb[74].mxu0 %vm4881_vm0, %v10824_v47 }
 0x30c   :  { %v7114_v15 = vpop.eup %7113  ;;  %7133 = vrcp.f32 %v4495_v61  ;;  %v4496_v52 = vadd.f32 1.0, %v7112_v0  ;;  %6301 = vmatmul.mubr.msk.f32.gmra.mrb[74].mxu1 %vm4881_vm0, %v10824_v47  ;;  %5414 = vmatprep.mubr.f32.mxu0 %v11604_v23 }
 0x30d   :  { %v7116_v56 = vpop.eup %7115  ;;  %7135 = vrcp.f32 %v4494_v39  ;;  %v4509_v29 = vadd.f32 1.0, %v7114_v15  ;;  %5491 = vmatprep.mubr.f32.mxu1 %v11604_v23 }
 0x30e   :  { %v7118_v48 = vpop.eup %7117  ;;  %7137 = vrcp.f32 %v4496_v52  ;;  %v4511_v28 = vadd.f32 1.0, %v7116_v56 }
 0x30f   :  { %v7120_v43 = vpop.eup %7119  ;;  %7139 = vrcp.f32 %v4509_v29  ;;  %v4510_v58 = vadd.f32 1.0, %v7118_v48 }
 0x310   :  { %v7122_v40 = vpop.eup %7121  ;;  %7141 = vrcp.f32 %v4511_v28  ;;  %v4512_v3 = vadd.f32 1.0, %v7120_v43 }
 0x311   :  { %v7124_v31 = vpop.eup %7123  ;;  %7143 = vrcp.f32 %v4510_v58  ;;  %v4525_v46 = vadd.f32 1.0, %v7122_v40 }
 0x312   :  { %v7126_v32 = vpop.eup %7125  ;;  %7145 = vrcp.f32 %v4512_v3  ;;  %v4669_v27 = vsub.f32 %v10745_v14, %v7124_v31  ;;  %v10848_v14 = vrot.slane %v10528_v36, %v11618_v50 }
 0x313   :  { %v7128_v45 = vpop.eup %7127  ;;  %7147 = vrcp.f32 %v4525_v46  ;;  %v4671_v53 = vsub.f32 %v10750_v49, %v7126_v32  ;;  %v11619_v49 = vsub.s32 5, %v11590_v41 }
 0x314   :  { %v7130_v35 = vpop.eup %7129  ;;  %7149 = vpow2.f32 %v6288_v44  ;;  %v4670_v18 = vsub.f32 %v10756_v12, %v7128_v45  ;;  %v4815_v8 = vmul.f32 %v4774_v33, %v4669_v27 }
 0x315   :  { %v7132_v54 = vpop.eup %7131  ;;  %7151 = vpow2.f32 %v6287_v20  ;;  %v4672_v55 = vsub.f32 %v10762_v38, %v7130_v35  ;;  %v10853_v9 = vrot.slane %v10528_v36, %v11619_v49  ;;  %v4817_v41 = vmul.f32 %v10848_v14, %v4671_v53 }
 0x316   :  { %v7134_v19 = vpop.eup %7133  ;;  %7153 = vpow2.f32 %v6289_v2  ;;  %v4685_v12 = vsub.f32 %v10769_v4, %v7132_v54  ;;  %v4070_v4 = vadd.f32 %v10625_v59, %v10163_v10 }
 0x317   :  { %v7136_v5 = vpop.eup %7135  ;;  %v4687_v38 = vsub.f32 %v10775_v25, %v7134_v19  ;;  %v4816_v25 = vmul.f32 %v10853_v9, %v4670_v18  ;;  %v4818_v17 = vmul.f32 %v10859_v37, %v4672_v55  ;;  %7155 = vtanh.f32 %v4181_v26 }
 0x318   :  { %v7138_v51 = vpop.eup %7137  ;;  %v4686_v13 = vsub.f32 %v10781_v57, %v7136_v5  ;;  %v4831_v6 = vmul.f32 %v4774_v33, %v4685_v12  ;;  %7157 = vtanh.f32 %v4070_v4 }
 0x319   :  { %v7140_v61 = vpop.eup %7139  ;;  %v4688_v0 = vsub.f32 %v10791_v16, %v7138_v51  ;;  %v4833_v36 = vmul.f32 %v10848_v14, %v4687_v38  ;;  %7159 = vtanh.f32 %v4183_v60 }
 0x31a   :  { %v7142_v39 = vpop.eup %7141  ;;  %v4832_v15 = vmul.f32 %v10853_v9, %v4686_v13  ;;  %v6436_v42 = vpack.c.bf16 %v4831_v6, %v4815_v8  ;;  %v4701_v57 = vsub.f32 %v10796_v62, %v7140_v61  ;;  %v10903_v13 = vpop.permute.xlu1 %4878 }
 0x31b   :  { %v7144_v52 = vpop.eup %7143  ;;  %v4834_v56 = vmul.f32 %v10859_v37, %v4688_v0  ;;  %v6444_v59 = vpack.c.bf16 %v4833_v36, %v4817_v41  ;;  %v4703_v16 = vsub.f32 %v10800_v11, %v7142_v39 }
 0x31c   :  { %v7146_v29 = vpop.eup %7145  ;;  %v6434_v48 = vpack.c.bf16 %v4832_v15, %v4816_v25  ;;  %v4702_v28 = vsub.f32 %v10804_v7, %v7144_v52  ;;  %v4847_v21 = vmul.f32 %v4774_v33, %v4701_v57 }
 0x31d   :  { %v7148_v22 = vpop.eup %7147  ;;  %v6442_v43 = vpack.c.bf16 %v4834_v56, %v4818_v17  ;;  %v4704_v58 = vsub.f32 %v10806_v63, %v7146_v29  ;;  %v4849_v18 = vmul.f32 %v10848_v14, %v4703_v16 }
 0x31e   :  { %v7150_v62 = vpop.eup %7149  ;;  %6435 = vmatprep.subr.bf16.mxu0 %v6434_v48  ;;  %v4717_v40 = vsub.f32 %v10808_v34, %v7148_v22 }
 0x31f   :  { %v7152_v3 = vpop.eup %7151  ;;  %v4527_v44 = vadd.f32 1.0, %v7150_v62  ;;  %6443 = vmatprep.subr.bf16.mxu1 %v6442_v43  ;;  %6437 = vmatpush1.bf16.msra.mxu0 %v6436_v42  ;;  %v4850_v55 = vmul.f32 %v10859_v37, %v4704_v58 }
 0x320   :  { %v7154_v11 = vpop.eup %7153  ;;  %v4526_v10 = vadd.f32 1.0, %v7152_v3  ;;  %6445 = vmatpush1.bf16.msra.mxu1 %v6444_v59  ;;  %v4863_v7 = vmul.f32 %v4774_v33, %v4717_v40  ;;  %v4848_v33 = vmul.f32 %v10853_v9, %v4702_v28 }
 0x321   :  { %7161 = vrcp.f32 %v4527_v44  ;;  %v4528_v31 = vadd.f32 1.0, %v7154_v11  ;;  %v7156_v46 = vpop.eup %7155 }
 0x322   :  { %7163 = vrcp.f32 %v4526_v10  ;;  %v6440_v63 = vpack.c.bf16 %v4863_v7, %v4847_v21  ;;  %v7158_v20 = vpop.eup %7157 }
 0x323   :  { %7165 = vrcp.f32 %v4528_v31  ;;  %v7160_v32 = vpop.eup %7159 }
 0x32b   :  { %v7162_v34 = vpop.eup %7161 }
 0x32c   :  { %v7164_v2 = vpop.eup %7163  ;;  %v4719_v27 = vsub.f32 %v7156_v46, %v7162_v34 }
 0x32d   :  { %v7166_v45 = vpop.eup %7165  ;;  %v4718_v53 = vsub.f32 %v7158_v20, %v7164_v2 }
 0x32e   :  { %v4720_v35 = vsub.f32 %v7160_v32, %v7166_v45  ;;  %v4865_v30 = vmul.f32 %v10848_v14, %v4719_v27  ;;  %v10897_v14 = vpop.permute.xlu0 %4873  ;;  %v10911_v32 = vpop.permute.xlu1 %5705 }
 0x32f   :  { %v4864_v54 = vmul.f32 %v10853_v9, %v4718_v53 }
 0x330   :  { %v4866_v50 = vmul.f32 %v10859_v37, %v4720_v35  ;;  %v6448_v19 = vpack.c.bf16 %v4865_v30, %v4849_v18 }
 0x331   :  { %v6438_v49 = vpack.c.bf16 %v4864_v54, %v4848_v33 }
 0x332   :  { %v6446_v12 = vpack.c.bf16 %v4866_v50, %v4850_v55  ;;  %v10909_v20 = vpop.permute.xlu0 %5700 }
 0x333   :  { %6439 = vmatprep.subr.bf16.mxu0 %v6438_v49 }
 0x334   :  { %6447 = vmatprep.subr.bf16.mxu1 %v6446_v12  ;;  %6441 = vmatpush1.bf16.msra.mxu0 %v6440_v63 }
 0x335   :  { %6449 = vmatpush1.bf16.msra.mxu1 %v6448_v19 }
 0x337   :  { %6302 = vmatmul.mubr.msk.f32.vlgmr.msra.gmra.mrb[76].mxu0 %vm4881_vm0, %v10813_v1 }
 0x338   :  { %6304 = vmatmul.mubr.msk.f32.vlgmr.msra.gmra.mrb[76].mxu1 %vm4881_vm0, %v10813_v1  ;;  %5420 = vmatprep.mubr.f32.mxu0 %v11604_v23 }
 0x339   :  { %5497 = vmatprep.mubr.f32.mxu1 %v11604_v23 }
 0x33b   :  { %6303 = vmatmul.mubr.msk.f32.gmra.mrb[78].mxu0 %vm4881_vm0, %v10824_v47 }
 0x33c   :  { %6305 = vmatmul.mubr.msk.f32.gmra.mrb[78].mxu1 %vm4881_vm0, %v10824_v47 }
 0x364   :  { %v4954_v9 = vpop.f32.mrb[64].mxu0 }
 0x365   :  { %v4955_v5 = vadd.f32 %v4954_v9, %v10897_v14  ;;  %v5031_v24 = vpop.f32.mrb[64].mxu1  ;;  %v4956_v37 = vpop.f32.mrb[65].mxu0 }
 0x366   :  { %v5032_v38 = vadd.f32 %v5031_v24, %v10897_v14  ;;  %v4957_v1 = vadd.f32 %v4956_v37, %v10897_v14  ;;  %v5033_v51 = vpop.f32.mrb[65].mxu1 }
 0x367   :  { %v6306_v26 = vmul.f32 -1.442695, %v4955_v5  ;;  %v5034_v23 = vadd.f32 %v5033_v51, %v10897_v14 }
 0x368   :  { %v6308_v8 = vmul.f32 -1.442695, %v5032_v38  ;;  %v6307_v6 = vmul.f32 -1.442695, %v4957_v1  ;;  %v4960_v47 = vpop.f32.mrb[66].mxu0 }
 0x369   :  { %7167 = vpow2.f32 %v6306_v26  ;;  %v6309_v61 = vmul.f32 -1.442695, %v5034_v23  ;;  %v4961_v4 = vadd.f32 %v4960_v47, %v10903_v13  ;;  %v5037_v0 = vpop.f32.mrb[66].mxu1  ;;  %v4962_v41 = vpop.f32.mrb[67].mxu0 }
 0x36a   :  { %7169 = vpow2.f32 %v6308_v8  ;;  %v5038_v36 = vadd.f32 %v5037_v0, %v10903_v13  ;;  %v4963_v39 = vadd.f32 %v4962_v41, %v10903_v13  ;;  %v5039_v25 = vpop.f32.mrb[67].mxu1 }
 0x36b   :  { %7171 = vpow2.f32 %v6307_v6  ;;  %v6322_v15 = vmul.f32 -1.442695, %v4961_v4  ;;  %v5040_v42 = vadd.f32 %v5039_v25, %v10903_v13 }
 0x36c   :  { %7173 = vpow2.f32 %v6309_v61  ;;  %v6324_v57 = vmul.f32 -1.442695, %v5038_v36  ;;  %v6323_v52 = vmul.f32 -1.442695, %v4963_v39  ;;  %v5856_v61 = vpop.permute.xlu0 %5855 }
 0x36d   :  { %7175 = vpow2.f32 %v6322_v15  ;;  %v6325_v17 = vmul.f32 -1.442695, %v5040_v42  ;;  %v11621_v15 = vld [vmem:[#allocation25_spill] sm:$0xff] }
 0x36e   :  { %7177 = vpow2.f32 %v6324_v57  ;;  %v10922_v42 = vrot.slane %v5856_v61, %v11621_v15 }
 0x36f   :  { %7179 = vpow2.f32 %v6323_v52 }
 0x370   :  { %7181 = vpow2.f32 %v6325_v17 }
 0x373   :  { %v7168_v56 = vpop.eup %7167 }
 0x374   :  { %v7170_v59 = vpop.eup %7169  ;;  %v5600_v16 = vadd.f32 1.0, %v7168_v56 }
 0x375   :  { %v7172_v29 = vpop.eup %7171  ;;  %v5602_v60 = vadd.f32 1.0, %v7170_v59 }
 0x376   :  { %v7174_v48 = vpop.eup %7173  ;;  %7183 = vrcp.f32 %v5600_v16  ;;  %v5601_v28 = vadd.f32 1.0, %v7172_v29 }
 0x377   :  { %v7176_v22 = vpop.eup %7175  ;;  %7185 = vrcp.f32 %v5602_v60  ;;  %v5603_v43 = vadd.f32 1.0, %v7174_v48 }
 0x378   :  { %v7178_v58 = vpop.eup %7177  ;;  %7187 = vrcp.f32 %v5601_v28  ;;  %v5616_v62 = vadd.f32 1.0, %v7176_v22 }
 0x379   :  { %v7180_v40 = vpop.eup %7179  ;;  %7189 = vrcp.f32 %v5603_v43  ;;  %v5618_v3 = vadd.f32 1.0, %v7178_v58 }
 0x37a   :  { %v7182_v44 = vpop.eup %7181  ;;  %7191 = vrcp.f32 %v5616_v62  ;;  %v5617_v11 = vadd.f32 1.0, %v7180_v40 }
 0x37b   :  { %7193 = vrcp.f32 %v5618_v3  ;;  %v5619_v10 = vadd.f32 1.0, %v7182_v44 }
 0x37c   :  { %7195 = vrcp.f32 %v5617_v11 }
 0x37d   :  { %7197 = vrcp.f32 %v5619_v10 }
 0x380   :  { %v7184_v21 = vpop.eup %7183 }
 0x381   :  { %v7186_v7 = vpop.eup %7185  ;;  %v5708_v2 = vmul.f32 %v7184_v21, %v10909_v20 }
 0x382   :  { %v7188_v31 = vpop.eup %7187  ;;  %v5710_v53 = vmul.f32 %v7186_v7, %v10909_v20 }
 0x383   :  { %v7190_v63 = vpop.eup %7189  ;;  %v5709_v30 = vmul.f32 %v7188_v31, %v10909_v20 }
 0x384   :  { %v7192_v46 = vpop.eup %7191  ;;  %v5711_v55 = vmul.f32 %v7190_v63, %v10909_v20 }
 0x385   :  { %v7194_v34 = vpop.eup %7193  ;;  %v5724_v27 = vmul.f32 %v7192_v46, %v10911_v32 }
 0x386   :  { %v7196_v45 = vpop.eup %7195  ;;  %v5726_v35 = vmul.f32 %v7194_v34, %v10911_v32 }
 0x387   :  { %v7198_v18 = vpop.eup %7197  ;;  %v5740_v33 = vadd.f32 %v5724_v27, %v5708_v2  ;;  %v5725_v54 = vmul.f32 %v7196_v45, %v10911_v32 }
 0x388   :  { %v5754_v50 = vadd.f32 %v5726_v35, %v5710_v53  ;;  %v5727_v19 = vmul.f32 %v7198_v18, %v10911_v32 }
 0x389   :  { %v5741_v49 = vrot.slane %v5740_v33, 4  ;;  %v5747_v12 = vadd.f32 %v5725_v54, %v5709_v30 }
 0x38a   :  { %v5755_v9 = vrot.slane %v5754_v50, 4  ;;  %v5761_v5 = vadd.f32 %v5727_v19, %v5711_v55 }
 0x38b   :  { %v5742_v24 = vadd.f32 %v5741_v49, %v5740_v33  ;;  %v5748_v37 = vrot.slane %v5747_v12, 4 }
 0x38c   :  { %v5756_v38 = vadd.f32 %v5755_v9, %v5754_v50  ;;  %v5762_v1 = vrot.slane %v5761_v5, 4 }
 0x38d   :  { %v5743_v51 = vrot.slane %v5742_v24, 2  ;;  %v5749_v26 = vadd.f32 %v5748_v37, %v5747_v12 }
 0x38e   :  { %v5757_v23 = vrot.slane %v5756_v38, 2  ;;  %v5763_v8 = vadd.f32 %v5762_v1, %v5761_v5 }
 0x38f   :  { %v5744_v6 = vadd.f32 %v5743_v51, %v5742_v24  ;;  %v5750_v47 = vrot.slane %v5749_v26, 2 }
 0x390   :  { %v5758_v4 = vadd.f32 %v5757_v23, %v5756_v38  ;;  %v5764_v0 = vrot.slane %v5763_v8, 2 }
 0x391   :  { %v5745_v41 = vrot.slane %v5744_v6, 1  ;;  %v5751_v36 = vadd.f32 %v5750_v47, %v5749_v26 }
 0x392   :  { %v5759_v39 = vrot.slane %v5758_v4, 1  ;;  %v5765_v25 = vadd.f32 %v5764_v0, %v5763_v8 }
 0x393   :  { %v5746_v57 = vadd.f32 %v5745_v41, %v5744_v6  ;;  %v5752_v52 = vrot.slane %v5751_v36, 1 }
 0x394   :  { %v5760_v17 = vadd.f32 %v5759_v39, %v5758_v4  ;;  %v5766_v56 = vrot.slane %v5765_v25, 1 }
 0x395   :  { %v5862_v59 = vadd.f32 %v10922_v42, %v5746_v57  ;;  %v5753_v16 = vadd.f32 %v5752_v52, %v5751_v36 }
 0x396   :  { %v5864_v29 = vadd.f32 %v10922_v42, %v5760_v17  ;;  %v5767_v60 = vadd.f32 %v5766_v56, %v5765_v25  ;;  %v11622_v56 = vld [vmem:[#allocation32_spill] sm:$0xff] }
 0x397   :  { %v6338_v48 = vmul.f32 -1.442695, %v5862_v59  ;;  %v5863_v28 = vadd.f32 %v10922_v42, %v5753_v16 }
 0x398   :  { %v6340_v22 = vmul.f32 -1.442695, %v5864_v29  ;;  %v5865_v43 = vadd.f32 %v10922_v42, %v5767_v60 }
 0x399   :  { %7199 = vpow2.f32 %v6338_v48  ;;  %v6339_v58 = vmul.f32 -1.442695, %v5863_v28 }
 0x39a   :  { %7201 = vpow2.f32 %v6340_v22  ;;  %v6341_v62 = vmul.f32 -1.442695, %v5865_v43 }
 0x39b   :  { %7203 = vpow2.f32 %v6339_v58 }
 0x39c   :  { %7205 = vpow2.f32 %v6341_v62 }
 0x39d   :  { %v5108_v40 = vpop.f32.mrb[68].mxu0 }
 0x39e   :  { %v5109_v3 = vadd.f32 %v5108_v40, %v10897_v14  ;;  %v5185_v44 = vpop.f32.mrb[68].mxu1  ;;  %v5110_v11 = vpop.f32.mrb[69].mxu0 }
 0x39f   :  { %v5186_v10 = vadd.f32 %v5185_v44, %v10897_v14  ;;  %v5111_v21 = vadd.f32 %v5110_v11, %v10897_v14  ;;  %v5187_v7 = vpop.f32.mrb[69].mxu1 }
 0x3a0   :  { %v6310_v31 = vmul.f32 -1.442695, %v5109_v3  ;;  %v5188_v63 = vadd.f32 %v5187_v7, %v10897_v14 }
 0x3a1   :  { %v6312_v46 = vmul.f32 -1.442695, %v5186_v10  ;;  %v6311_v34 = vmul.f32 -1.442695, %v5111_v21  ;;  %v5114_v2 = vpop.f32.mrb[70].mxu0 }
 0x3a2   :  { %7207 = vpow2.f32 %v6310_v31  ;;  %v6313_v27 = vmul.f32 -1.442695, %v5188_v63  ;;  %v5115_v45 = vadd.f32 %v5114_v2, %v10903_v13  ;;  %v5191_v53 = vpop.f32.mrb[70].mxu1  ;;  %v5116_v35 = vpop.f32.mrb[71].mxu0 }
 0x3a3   :  { %v7200_v18 = vpop.eup %7199  ;;  %7209 = vpow2.f32 %v6312_v46  ;;  %v5192_v30 = vadd.f32 %v5191_v53, %v10903_v13  ;;  %v5193_v33 = vpop.f32.mrb[71].mxu1  ;;  %v5117_v50 = vadd.f32 %v5116_v35, %v10903_v13 }
 0x3a4   :  { %v7202_v54 = vpop.eup %7201  ;;  %v5926_v55 = vadd.f32 1.0, %v7200_v18  ;;  %7211 = vpow2.f32 %v6311_v34  ;;  %v5194_v12 = vadd.f32 %v5193_v33, %v10903_v13  ;;  %v6326_v24 = vmul.f32 -1.442695, %v5115_v45 }
 0x3a5   :  { %v7204_v19 = vpop.eup %7203  ;;  %v5928_v49 = vadd.f32 1.0, %v7202_v54  ;;  %7213 = vpow2.f32 %v6313_v27  ;;  %v6328_v38 = vmul.f32 -1.442695, %v5192_v30  ;;  %v6327_v1 = vmul.f32 -1.442695, %v5117_v50 }
 0x3a6   :  { %v7206_v9 = vpop.eup %7205  ;;  %7215 = vrcp.f32 %v5926_v55  ;;  %v5927_v5 = vadd.f32 1.0, %v7204_v19  ;;  %v6329_v51 = vmul.f32 -1.442695, %v5194_v12 }
 0x3a7   :  { %7217 = vrcp.f32 %v5928_v49  ;;  %v5929_v37 = vadd.f32 1.0, %v7206_v9 }
 0x3a8   :  { %7219 = vrcp.f32 %v5927_v5 }
 0x3a9   :  { %7221 = vrcp.f32 %v5929_v37 }
 0x3aa   :  { %7223 = vpow2.f32 %v6326_v24 }
 0x3ab   :  { %7225 = vpow2.f32 %v6328_v38 }
 0x3ac   :  { %v7208_v26 = vpop.eup %7207  ;;  %7227 = vpow2.f32 %v6327_v1 }
 0x3ad   :  { %v7210_v23 = vpop.eup %7209  ;;  %7229 = vpow2.f32 %v6329_v51  ;;  %v5604_v47 = vadd.f32 1.0, %v7208_v26 }
 0x3ae   :  { %v7212_v8 = vpop.eup %7211  ;;  %v5606_v4 = vadd.f32 1.0, %v7210_v23 }
 0x3af   :  { %v7214_v6 = vpop.eup %7213  ;;  %v5605_v41 = vadd.f32 1.0, %v7212_v8  ;;  %7231 = vrcp.f32 %v5604_v47 }
 0x3b0   :  { %v7216_v61 = vpop.eup %7215  ;;  %v5607_v39 = vadd.f32 1.0, %v7214_v6  ;;  %7233 = vrcp.f32 %v5606_v4 }
 0x3b1   :  { %v7218_v0 = vpop.eup %7217  ;;  %7235 = vrcp.f32 %v5605_v41 }
 0x3b2   :  { %v7220_v36 = vpop.eup %7219  ;;  %7237 = vrcp.f32 %v5607_v39 }
 0x3b3   :  { %v7222_v25 = vpop.eup %7221  ;;  %v5990_v15 = vcombine.low %v7216_v61, %v7220_v36 }
 0x3b4   :  { %v7224_v57 = vpop.eup %7223  ;;  %v5991_v52 = vcombine.low %v7218_v0, %v7222_v25 }
 0x3b5   :  { %v7226_v17 = vpop.eup %7225  ;;  %v10937_v59 = vrot.slane %v5990_v15, %v11622_v56  ;;  %v5620_v16 = vadd.f32 1.0, %v7224_v57 }
 0x3b6   :  { %v7228_v29 = vpop.eup %7227  ;;  %v10940_v60 = vrot.slane %v5991_v52, %v11622_v56  ;;  %v5622_v48 = vadd.f32 1.0, %v7226_v17 }
 0x3b7   :  { %v7230_v28 = vpop.eup %7229  ;;  %7239 = vrcp.f32 %v5620_v16  ;;  %v5621_v22 = vadd.f32 1.0, %v7228_v29 }
 0x3b8   :  { %v6022_v43 = vcombine.low %v10937_v59, %v10940_v60  ;;  %7241 = vrcp.f32 %v5622_v48  ;;  %v5623_v58 = vadd.f32 1.0, %v7230_v28 }
 0x3b9   :  { %7243 = vrcp.f32 %v5621_v22  ;;  %v7232_v62 = vpop.eup %7231 }
 0x3ba   :  { %7245 = vrcp.f32 %v5623_v58  ;;  %v7234_v40 = vpop.eup %7233  ;;  %v5712_v21 = vmul.f32 %v7232_v62, %v10909_v20 }
 0x3bb   :  { %v7236_v3 = vpop.eup %7235  ;;  %v5714_v63 = vmul.f32 %v7234_v40, %v10909_v20 }
 0x3bc   :  { %v7238_v44 = vpop.eup %7237  ;;  %v5713_v2 = vmul.f32 %v7236_v3, %v10909_v20 }
 0x3bd   :  { %v5715_v53 = vmul.f32 %v7238_v44, %v10909_v20 }
 0x3c1   :  { %v7240_v11 = vpop.eup %7239 }
 0x3c2   :  { %v7242_v10 = vpop.eup %7241  ;;  %v5728_v7 = vmul.f32 %v7240_v11, %v10911_v32 }
 0x3c3   :  { %v7244_v31 = vpop.eup %7243  ;;  %v5730_v46 = vmul.f32 %v7242_v10, %v10911_v32 }
 0x3c4   :  { %v7246_v34 = vpop.eup %7245  ;;  %v5768_v27 = vadd.f32 %v5728_v7, %v5712_v21  ;;  %v5729_v45 = vmul.f32 %v7244_v31, %v10911_v32 }
 0x3c5   :  { %v5782_v35 = vadd.f32 %v5730_v46, %v5714_v63  ;;  %v5731_v18 = vmul.f32 %v7246_v34, %v10911_v32 }
 0x3c6   :  { %v5769_v30 = vrot.slane %v5768_v27, 4  ;;  %v5775_v33 = vadd.f32 %v5729_v45, %v5713_v2 }
 0x3c7   :  { %v5783_v54 = vrot.slane %v5782_v35, 4  ;;  %v5789_v55 = vadd.f32 %v5731_v18, %v5715_v53 }
 0x3c8   :  { %v5770_v50 = vadd.f32 %v5769_v30, %v5768_v27  ;;  %v5776_v19 = vrot.slane %v5775_v33, 4 }
 0x3c9   :  { %v5784_v49 = vadd.f32 %v5783_v54, %v5782_v35  ;;  %v5790_v12 = vrot.slane %v5789_v55, 4 }
 0x3ca   :  { %v5771_v9 = vrot.slane %v5770_v50, 2  ;;  %v5777_v5 = vadd.f32 %v5776_v19, %v5775_v33 }
 0x3cb   :  { %v5785_v24 = vrot.slane %v5784_v49, 2  ;;  %v5791_v37 = vadd.f32 %v5790_v12, %v5789_v55 }
 0x3cc   :  { %v5772_v38 = vadd.f32 %v5771_v9, %v5770_v50  ;;  %v5778_v1 = vrot.slane %v5777_v5, 2 }
 0x3cd   :  { %v5786_v51 = vadd.f32 %v5785_v24, %v5784_v49  ;;  %v5792_v26 = vrot.slane %v5791_v37, 2 }
 0x3ce   :  { %v5773_v23 = vrot.slane %v5772_v38, 1  ;;  %v5779_v8 = vadd.f32 %v5778_v1, %v5777_v5 }
 0x3cf   :  { %v5787_v6 = vrot.slane %v5786_v51, 1  ;;  %v5793_v47 = vadd.f32 %v5792_v26, %v5791_v37 }
 0x3d0   :  { %v5774_v61 = vadd.f32 %v5773_v23, %v5772_v38  ;;  %v5780_v4 = vrot.slane %v5779_v8, 1 }
 0x3d1   :  { %v5788_v0 = vadd.f32 %v5787_v6, %v5786_v51  ;;  %v5794_v41 = vrot.slane %v5793_v47, 1 }
 0x3d2   :  { %v5866_v36 = vadd.f32 %v10922_v42, %v5774_v61  ;;  %v5781_v39 = vadd.f32 %v5780_v4, %v5779_v8 }
 0x3d3   :  { %v5868_v25 = vadd.f32 %v10922_v42, %v5788_v0  ;;  %v5795_v15 = vadd.f32 %v5794_v41, %v5793_v47 }
 0x3d4   :  { %v6342_v57 = vmul.f32 -1.442695, %v5866_v36  ;;  %v5867_v52 = vadd.f32 %v10922_v42, %v5781_v39 }
 0x3d5   :  { %v6344_v17 = vmul.f32 -1.442695, %v5868_v25  ;;  %v5869_v16 = vadd.f32 %v10922_v42, %v5795_v15 }
 0x3d6   :  { %7247 = vpow2.f32 %v6342_v57  ;;  %v6343_v29 = vmul.f32 -1.442695, %v5867_v52 }
 0x3d7   :  { %7249 = vpow2.f32 %v6344_v17  ;;  %v6345_v48 = vmul.f32 -1.442695, %v5869_v16 }
 0x3d8   :  { %7251 = vpow2.f32 %v6343_v29 }
 0x3d9   :  { %7253 = vpow2.f32 %v6345_v48 }
 0x3da   :  { %v5262_v28 = vpop.f32.mrb[72].mxu0 }
 0x3db   :  { %v5263_v22 = vadd.f32 %v5262_v28, %v10897_v14  ;;  %v5339_v58 = vpop.f32.mrb[72].mxu1  ;;  %v5264_v62 = vpop.f32.mrb[73].mxu0 }
 0x3dc   :  { %v5340_v40 = vadd.f32 %v5339_v58, %v10897_v14  ;;  %v5265_v3 = vadd.f32 %v5264_v62, %v10897_v14  ;;  %v5341_v44 = vpop.f32.mrb[73].mxu1  ;;  %v6030_v58 = vrot.slane %v6022_v43, %v11622_v56 }
 0x3dd   :  { %v6314_v11 = vmul.f32 -1.442695, %v5263_v22  ;;  %v5342_v10 = vadd.f32 %v5341_v44, %v10897_v14 }
 0x3de   :  { %v6316_v21 = vmul.f32 -1.442695, %v5340_v40  ;;  %v6315_v7 = vmul.f32 -1.442695, %v5265_v3  ;;  %v5268_v31 = vpop.f32.mrb[74].mxu0 }
 0x3df   :  { %7255 = vpow2.f32 %v6314_v11  ;;  %v6317_v63 = vmul.f32 -1.442695, %v5342_v10  ;;  %v5269_v46 = vadd.f32 %v5268_v31, %v10903_v13  ;;  %v5345_v34 = vpop.f32.mrb[74].mxu1  ;;  %v5270_v2 = vpop.f32.mrb[75].mxu0 }
 0x3e0   :  { %v7248_v27 = vpop.eup %7247  ;;  %7257 = vpow2.f32 %v6316_v21  ;;  %v5346_v45 = vadd.f32 %v5345_v34, %v10903_v13  ;;  %v5347_v53 = vpop.f32.mrb[75].mxu1  ;;  %v5271_v30 = vadd.f32 %v5270_v2, %v10903_v13 }
 0x3e1   :  { %v7250_v35 = vpop.eup %7249  ;;  %v5930_v18 = vadd.f32 1.0, %v7248_v27  ;;  %7259 = vpow2.f32 %v6315_v7  ;;  %v5348_v55 = vadd.f32 %v5347_v53, %v10903_v13  ;;  %v6330_v49 = vmul.f32 -1.442695, %v5269_v46 }
 0x3e2   :  { %v7252_v33 = vpop.eup %7251  ;;  %v5932_v54 = vadd.f32 1.0, %v7250_v35  ;;  %7261 = vpow2.f32 %v6317_v63  ;;  %v6332_v9 = vmul.f32 -1.442695, %v5346_v45  ;;  %v6331_v5 = vmul.f32 -1.442695, %v5271_v30 }
 0x3e3   :  { %v7254_v50 = vpop.eup %7253  ;;  %7263 = vrcp.f32 %v5930_v18  ;;  %v5931_v19 = vadd.f32 1.0, %v7252_v33  ;;  %v6333_v24 = vmul.f32 -1.442695, %v5348_v55 }
 0x3e4   :  { %7265 = vrcp.f32 %v5932_v54  ;;  %v5933_v12 = vadd.f32 1.0, %v7254_v50 }
 0x3e5   :  { %7267 = vrcp.f32 %v5931_v19 }
 0x3e6   :  { %7269 = vrcp.f32 %v5933_v12 }
 0x3e7   :  { %7271 = vpow2.f32 %v6330_v49 }
 0x3e8   :  { %7273 = vpow2.f32 %v6332_v9 }
 0x3e9   :  { %v7256_v37 = vpop.eup %7255  ;;  %7275 = vpow2.f32 %v6331_v5 }
 0x3ea   :  { %v7258_v38 = vpop.eup %7257  ;;  %7277 = vpow2.f32 %v6333_v24  ;;  %v5608_v26 = vadd.f32 1.0, %v7256_v37 }
 0x3eb   :  { %v7260_v1 = vpop.eup %7259  ;;  %v5610_v8 = vadd.f32 1.0, %v7258_v38 }
 0x3ec   :  { %v7262_v51 = vpop.eup %7261  ;;  %v5609_v47 = vadd.f32 1.0, %v7260_v1  ;;  %7279 = vrcp.f32 %v5608_v26 }
 0x3ed   :  { %v7264_v23 = vpop.eup %7263  ;;  %v5611_v4 = vadd.f32 1.0, %v7262_v51  ;;  %7281 = vrcp.f32 %v5610_v8 }
 0x3ee   :  { %v7266_v6 = vpop.eup %7265  ;;  %7283 = vrcp.f32 %v5609_v47 }
 0x3ef   :  { %v7268_v61 = vpop.eup %7267  ;;  %7285 = vrcp.f32 %v5611_v4 }
 0x3f0   :  { %v7270_v0 = vpop.eup %7269  ;;  %v5992_v41 = vcombine.low %v7264_v23, %v7268_v61 }
 0x3f1   :  { %v7272_v36 = vpop.eup %7271  ;;  %v5993_v39 = vcombine.low %v7266_v6, %v7270_v0 }
 0x3f2   :  { %v7274_v25 = vpop.eup %7273  ;;  %v6014_v15 = vrot.slane %v5992_v41, %v11622_v56  ;;  %v5624_v57 = vadd.f32 1.0, %v7272_v36 }
 0x3f3   :  { %v7276_v52 = vpop.eup %7275  ;;  %v6021_v17 = vrot.slane %v5993_v39, %v11622_v56  ;;  %v5626_v16 = vadd.f32 1.0, %v7274_v25 }
 0x3f4   :  { %v7278_v29 = vpop.eup %7277  ;;  %7287 = vrcp.f32 %v5624_v57  ;;  %v5625_v48 = vadd.f32 1.0, %v7276_v52 }
 0x3f5   :  { %v6023_v28 = vcombine.low %v6014_v15, %v6021_v17  ;;  %7289 = vrcp.f32 %v5626_v16  ;;  %v5627_v22 = vadd.f32 1.0, %v7278_v29 }
 0x3f6   :  { %7291 = vrcp.f32 %v5625_v48  ;;  %v7280_v3 = vpop.eup %7279 }
 0x3f7   :  { %v6037_v62 = vrot.slane %v6023_v28, %v11622_v56  ;;  %7293 = vrcp.f32 %v5627_v22  ;;  %v7282_v44 = vpop.eup %7281  ;;  %v5716_v31 = vmul.f32 %v7280_v3, %v10909_v20 }
 0x3f8   :  { %v7284_v11 = vpop.eup %7283  ;;  %v5718_v60 = vmul.f32 %v7282_v44, %v10909_v20 }
 0x3f9   :  { %v6038_v40 = vcombine.low %v6030_v58, %v6037_v62  ;;  %v7286_v10 = vpop.eup %7285  ;;  %v5717_v34 = vmul.f32 %v7284_v11, %v10909_v20 }
 0x3fa   :  { %v5719_v45 = vmul.f32 %v7286_v10, %v10909_v20 }
 0x3fb   :  { %6090 = vst [vmem:[%s11036_s12] sm:$0xff] %v6038_v40 }
 0x3fe   :  { %v7288_v21 = vpop.eup %7287 }
 0x3ff   :  { %v7290_v7 = vpop.eup %7289  ;;  %v5732_v63 = vmul.f32 %v7288_v21, %v10911_v32 }
 0x400   :  { %v7292_v59 = vpop.eup %7291  ;;  %v5734_v43 = vmul.f32 %v7290_v7, %v10911_v32 }
 0x401   :  { %v7294_v46 = vpop.eup %7293  ;;  %v5796_v2 = vadd.f32 %v5732_v63, %v5716_v31  ;;  %v5733_v27 = vmul.f32 %v7292_v59, %v10911_v32 }
 0x402   :  { %v5810_v53 = vadd.f32 %v5734_v43, %v5718_v60  ;;  %v5735_v35 = vmul.f32 %v7294_v46, %v10911_v32 }
 0x403   :  { %v5797_v18 = vrot.slane %v5796_v2, 4  ;;  %v5803_v30 = vadd.f32 %v5733_v27, %v5717_v34 }
 0x404   :  { %v5811_v33 = vrot.slane %v5810_v53, 4  ;;  %v5817_v54 = vadd.f32 %v5735_v35, %v5719_v45 }
 0x405   :  { %v5798_v55 = vadd.f32 %v5797_v18, %v5796_v2  ;;  %v5804_v50 = vrot.slane %v5803_v30, 4 }
 0x406   :  { %v5812_v19 = vadd.f32 %v5811_v33, %v5810_v53  ;;  %v5818_v49 = vrot.slane %v5817_v54, 4 }
 0x407   :  { %v5799_v12 = vrot.slane %v5798_v55, 2  ;;  %v5805_v9 = vadd.f32 %v5804_v50, %v5803_v30 }
 0x408   :  { %v5813_v5 = vrot.slane %v5812_v19, 2  ;;  %v5819_v24 = vadd.f32 %v5818_v49, %v5817_v54 }
 0x409   :  { %v5800_v37 = vadd.f32 %v5799_v12, %v5798_v55  ;;  %v5806_v38 = vrot.slane %v5805_v9, 2 }
 0x40a   :  { %v5814_v1 = vadd.f32 %v5813_v5, %v5812_v19  ;;  %v5820_v51 = vrot.slane %v5819_v24, 2  ;;  %v5416_v26 = vpop.f32.mrb[76].mxu0 }
 0x40b   :  { %v5801_v23 = vrot.slane %v5800_v37, 1  ;;  %v5807_v8 = vadd.f32 %v5806_v38, %v5805_v9  ;;  %v5417_v6 = vadd.f32 %v5416_v26, %v10897_v14  ;;  %v5493_v47 = vpop.f32.mrb[76].mxu1  ;;  %v5418_v61 = vpop.f32.mrb[77].mxu0 }
 0x40c   :  { %v5815_v4 = vrot.slane %v5814_v1, 1  ;;  %v5821_v0 = vadd.f32 %v5820_v51, %v5819_v24  ;;  %v5494_v41 = vadd.f32 %v5493_v47, %v10897_v14  ;;  %v5419_v36 = vadd.f32 %v5418_v61, %v10897_v14  ;;  %v5495_v39 = vpop.f32.mrb[77].mxu1 }
 0x40d   :  { %v5802_v25 = vadd.f32 %v5801_v23, %v5800_v37  ;;  %v5808_v15 = vrot.slane %v5807_v8, 1  ;;  %v6318_v57 = vmul.f32 -1.442695, %v5417_v6  ;;  %v5496_v52 = vadd.f32 %v5495_v39, %v10897_v14 }
 0x40e   :  { %v5816_v17 = vadd.f32 %v5815_v4, %v5814_v1  ;;  %v5822_v16 = vrot.slane %v5821_v0, 1  ;;  %v6320_v29 = vmul.f32 -1.442695, %v5494_v41  ;;  %v6319_v48 = vmul.f32 -1.442695, %v5419_v36  ;;  %v5422_v28 = vpop.f32.mrb[78].mxu0 }
 0x40f   :  { %v5870_v22 = vadd.f32 %v10922_v42, %v5802_v25  ;;  %v5809_v58 = vadd.f32 %v5808_v15, %v5807_v8  ;;  %7295 = vpow2.f32 %v6318_v57  ;;  %v6321_v62 = vmul.f32 -1.442695, %v5496_v52  ;;  %v5499_v40 = vpop.f32.mrb[78].mxu1  ;;  %v5424_v3 = vpop.f32.mrb[79].mxu0 }
 0x410   :  { %v5872_v44 = vadd.f32 %v10922_v42, %v5816_v17  ;;  %v5823_v11 = vadd.f32 %v5822_v16, %v5821_v0  ;;  %7297 = vpow2.f32 %v6320_v29  ;;  %v5423_v10 = vadd.f32 %v5422_v28, %v10903_v13  ;;  %v5501_v21 = vpop.f32.mrb[79].mxu1 }
 0x411   :  { %v6346_v14 = vmul.f32 -1.442695, %v5870_v22  ;;  %v5871_v7 = vadd.f32 %v10922_v42, %v5809_v58  ;;  %7299 = vpow2.f32 %v6319_v48  ;;  %v5500_v31 = vadd.f32 %v5499_v40, %v10903_v13 }
 0x412   :  { %v6348_v63 = vmul.f32 -1.442695, %v5872_v44  ;;  %v5873_v59 = vadd.f32 %v10922_v42, %v5823_v11  ;;  %7301 = vpow2.f32 %v6321_v62  ;;  %v6334_v43 = vmul.f32 -1.442695, %v5423_v10 }
 0x413   :  { %7303 = vpow2.f32 %v6346_v14  ;;  %v6347_v60 = vmul.f32 -1.442695, %v5871_v7  ;;  %v5425_v46 = vadd.f32 %v5424_v3, %v10903_v13  ;;  %v6336_v2 = vmul.f32 -1.442695, %v5500_v31 }
 0x414   :  { %7305 = vpow2.f32 %v6348_v63  ;;  %v6349_v34 = vmul.f32 -1.442695, %v5873_v59  ;;  %v5502_v27 = vadd.f32 %v5501_v21, %v10903_v13 }
 0x415   :  { %7307 = vpow2.f32 %v6347_v60  ;;  %v6335_v45 = vmul.f32 -1.442695, %v5425_v46 }
 0x416   :  { %7309 = vpow2.f32 %v6349_v34  ;;  %v6337_v53 = vmul.f32 -1.442695, %v5502_v27 }
 0x417   :  { %7311 = vpow2.f32 %v6334_v43 }
 0x418   :  { %7313 = vpow2.f32 %v6336_v2 }
 0x419   :  { %v7296_v35 = vpop.eup %7295  ;;  %7315 = vpow2.f32 %v6335_v45 }
 0x41a   :  { %v7298_v18 = vpop.eup %7297  ;;  %v5612_v30 = vadd.f32 1.0, %v7296_v35  ;;  %7317 = vpow2.f32 %v6337_v53 }
 0x41b   :  { %v7300_v33 = vpop.eup %7299  ;;  %v5614_v54 = vadd.f32 1.0, %v7298_v18 }
 0x41c   :  { %v7302_v55 = vpop.eup %7301  ;;  %7319 = vrcp.f32 %v5612_v30  ;;  %v5613_v50 = vadd.f32 1.0, %v7300_v33 }
 0x41d   :  { %v7304_v19 = vpop.eup %7303  ;;  %7321 = vrcp.f32 %v5614_v54  ;;  %v5615_v49 = vadd.f32 1.0, %v7302_v55 }
 0x41e   :  { %v7306_v13 = vpop.eup %7305  ;;  %v5934_v12 = vadd.f32 1.0, %v7304_v19  ;;  %7323 = vrcp.f32 %v5613_v50 }
 0x41f   :  { %v7308_v9 = vpop.eup %7307  ;;  %v5936_v5 = vadd.f32 1.0, %v7306_v13  ;;  %7325 = vrcp.f32 %v5615_v49 }
 0x420   :  { %v7310_v24 = vpop.eup %7309  ;;  %7327 = vrcp.f32 %v5934_v12  ;;  %v5935_v37 = vadd.f32 1.0, %v7308_v9 }
 0x421   :  { %v7312_v38 = vpop.eup %7311  ;;  %7329 = vrcp.f32 %v5936_v5  ;;  %v5937_v1 = vadd.f32 1.0, %v7310_v24 }
 0x422   :  { %v7314_v51 = vpop.eup %7313  ;;  %7331 = vrcp.f32 %v5935_v37  ;;  %v5628_v26 = vadd.f32 1.0, %v7312_v38 }
 0x423   :  { %v7316_v23 = vpop.eup %7315  ;;  %7333 = vrcp.f32 %v5937_v1  ;;  %v5630_v8 = vadd.f32 1.0, %v7314_v51 }
 0x424   :  { %v7318_v6 = vpop.eup %7317  ;;  %7335 = vrcp.f32 %v5628_v26  ;;  %v5629_v47 = vadd.f32 1.0, %v7316_v23 }
 0x425   :  { %7337 = vrcp.f32 %v5630_v8  ;;  %v5631_v61 = vadd.f32 1.0, %v7318_v6 }
 0x426   :  { %v7320_v4 = vpop.eup %7319  ;;  %7339 = vrcp.f32 %v5629_v47 }
 0x427   :  { %v7322_v0 = vpop.eup %7321  ;;  %7341 = vrcp.f32 %v5631_v61  ;;  %v5720_v28 = vmul.f32 %v7320_v4, %v10909_v20 }
 0x428   :  { %v7324_v41 = vpop.eup %7323  ;;  %v5722_v40 = vmul.f32 %v7322_v0, %v10909_v20 }
 0x429   :  { %v7326_v36 = vpop.eup %7325  ;;  %v5721_v11 = vmul.f32 %v7324_v41, %v10909_v20 }
 0x42a   :  { %v7328_v39 = vpop.eup %7327  ;;  %v5723_v7 = vmul.f32 %v7326_v36, %v10909_v20 }
 0x42b   :  { %v7330_v25 = vpop.eup %7329 }
 0x42c   :  { %v7332_v15 = vpop.eup %7331 }
 0x42d   :  { %v7334_v57 = vpop.eup %7333  ;;  %v6039_v52 = vcombine.low %v7328_v39, %v7332_v15 }
 0x42e   :  { %v7336_v17 = vpop.eup %7335  ;;  %v6040_v16 = vcombine.low %v7330_v25, %v7334_v57 }
 0x42f   :  { %v7338_v29 = vpop.eup %7337  ;;  %v10995_v48 = vrot.slane %v6039_v52, %v11622_v56  ;;  %v5736_v22 = vmul.f32 %v7336_v17, %v10911_v32 }
 0x430   :  { %v7340_v58 = vpop.eup %7339  ;;  %v11000_v62 = vrot.slane %v6040_v16, %v11622_v56  ;;  %v5738_v3 = vmul.f32 %v7338_v29, %v10911_v32 }
 0x431   :  { %v7342_v44 = vpop.eup %7341  ;;  %v5824_v10 = vadd.f32 %v5736_v22, %v5720_v28  ;;  %v5737_v21 = vmul.f32 %v7340_v58, %v10911_v32 }
 0x432   :  { %v6071_v14 = vcombine.low %v10995_v48, %v11000_v62  ;;  %v5838_v31 = vadd.f32 %v5738_v3, %v5722_v40  ;;  %v5739_v63 = vmul.f32 %v7342_v44, %v10911_v32 }
 0x433   :  { %v5825_v59 = vrot.slane %v5824_v10, 4  ;;  %v5831_v60 = vadd.f32 %v5737_v21, %v5721_v11 }
 0x434   :  { %v5839_v43 = vrot.slane %v5838_v31, 4  ;;  %v5845_v46 = vadd.f32 %v5739_v63, %v5723_v7  ;;  %v6079_v40 = vrot.slane %v6071_v14, %v11622_v56 }
 0x435   :  { %v5826_v34 = vadd.f32 %v5825_v59, %v5824_v10  ;;  %v5832_v2 = vrot.slane %v5831_v60, 4 }
 0x436   :  { %v5840_v27 = vadd.f32 %v5839_v43, %v5838_v31  ;;  %v5846_v45 = vrot.slane %v5845_v46, 4 }
 0x437   :  { %v5827_v53 = vrot.slane %v5826_v34, 2  ;;  %v5833_v35 = vadd.f32 %v5832_v2, %v5831_v60 }
 0x438   :  { %v5841_v18 = vrot.slane %v5840_v27, 2  ;;  %v5847_v30 = vadd.f32 %v5846_v45, %v5845_v46 }
 0x439   :  { %v5828_v33 = vadd.f32 %v5827_v53, %v5826_v34  ;;  %v5834_v54 = vrot.slane %v5833_v35, 2 }
 0x43a   :  { %v5842_v55 = vadd.f32 %v5841_v18, %v5840_v27  ;;  %v5848_v50 = vrot.slane %v5847_v30, 2 }
 0x43b   :  { %v5829_v20 = vrot.slane %v5828_v33, 1  ;;  %v5835_v19 = vadd.f32 %v5834_v54, %v5833_v35 }
 0x43c   :  { %v5843_v49 = vrot.slane %v5842_v55, 1  ;;  %v5849_v32 = vadd.f32 %v5848_v50, %v5847_v30 }
 0x43d   :  { %v5830_v13 = vadd.f32 %v5829_v20, %v5828_v33  ;;  %v5836_v12 = vrot.slane %v5835_v19, 1 }
 0x43e   :  { %v5844_v9 = vadd.f32 %v5843_v49, %v5842_v55  ;;  %v5850_v5 = vrot.slane %v5849_v32, 1 }
 0x43f   :  { %v5874_v24 = vadd.f32 %v10922_v42, %v5830_v13  ;;  %v5837_v37 = vadd.f32 %v5836_v12, %v5835_v19 }
 0x440   :  { %v5876_v38 = vadd.f32 %v10922_v42, %v5844_v9  ;;  %v5851_v1 = vadd.f32 %v5850_v5, %v5849_v32 }
 0x441   :  { %v6350_v51 = vmul.f32 -1.442695, %v5874_v24  ;;  %v5875_v26 = vadd.f32 %v10922_v42, %v5837_v37 }
 0x442   :  { %v6352_v23 = vmul.f32 -1.442695, %v5876_v38  ;;  %v5877_v8 = vadd.f32 %v10922_v42, %v5851_v1 }
 0x443   :  { %7343 = vpow2.f32 %v6350_v51  ;;  %v6351_v6 = vmul.f32 -1.442695, %v5875_v26 }
 0x444   :  { %7345 = vpow2.f32 %v6352_v23  ;;  %v6353_v47 = vmul.f32 -1.442695, %v5877_v8 }
 0x445   :  { %7347 = vpow2.f32 %v6351_v6 }
 0x446   :  { %7349 = vpow2.f32 %v6353_v47 }
 0x44d   :  { %v7344_v61 = vpop.eup %7343 }
 0x44e   :  { %v7346_v4 = vpop.eup %7345  ;;  %v5938_v0 = vadd.f32 1.0, %v7344_v61 }
 0x44f   :  { %v7348_v41 = vpop.eup %7347  ;;  %v5940_v36 = vadd.f32 1.0, %v7346_v4 }
 0x450   :  { %v7350_v39 = vpop.eup %7349  ;;  %7351 = vrcp.f32 %v5938_v0  ;;  %v5939_v25 = vadd.f32 1.0, %v7348_v41 }
 0x451   :  { %7353 = vrcp.f32 %v5940_v36  ;;  %v5941_v15 = vadd.f32 1.0, %v7350_v39 }
 0x452   :  { %7355 = vrcp.f32 %v5939_v25 }
 0x453   :  { %7357 = vrcp.f32 %v5941_v15 }
 0x45a   :  { %v7352_v57 = vpop.eup %7351 }
 0x45b   :  { %v7354_v42 = vpop.eup %7353 }
 0x45c   :  { %v7356_v52 = vpop.eup %7355 }
 0x45d   :  { %v7358_v17 = vpop.eup %7357  ;;  %v6041_v16 = vcombine.low %v7352_v57, %v7356_v52 }
 0x45e   :  { %v6042_v29 = vcombine.low %v7354_v42, %v7358_v17 }
 0x45f   :  { %v6063_v28 = vrot.slane %v6041_v16, %v11622_v56 }
 0x460   :  { %v6070_v22 = vrot.slane %v6042_v29, %v11622_v56 }
 0x462   :  { %v6072_v58 = vcombine.low %v6063_v28, %v6070_v22 }
 0x464   :  { %v6086_v3 = vrot.slane %v6072_v58, %v11622_v56 }
 0x466   :  { %v6087_v44 = vcombine.low %v6079_v40, %v6086_v3 }
 0x468   :  { %6091 = vst [vmem:[%s11036_s12 + $0x8] sm:$0xff] %v6087_v44 }

</bundles_post_ra>
